<compile_context>
chip_gen: v6e
topology: v6e:2x2x1
jax: 0.10.0
libtpu: 0.0.40
codegen_flags: <defaults>
</compile_context>

<pallas_src>
import jax
import jax.numpy as jnp
from jax import lax
from jax.experimental import pallas as pl
from jax.experimental.pallas import tpu as pltpu


_VMEM_LIMIT = 64 * 1024 * 1024   # fits v5e/v6e (128 MiB) and v7x (64 MiB) physical


# ----------------------------------------------------------------------------
# helpers
# ----------------------------------------------------------------------------
def _round_up(x, m):
    return ((x + m - 1) // m) * m


def _pick_tile(dim, target, align=1):
    """Largest t <= target with dim % t == 0 and t % align == 0, else full dim.

    Falling back to the full dimension keeps the (8,128) BlockSpec rule
    satisfied ('divisible by (8,128) OR equal to the full array dim')."""
    for cand in range(min(target, dim), 0, -1):
        if dim % cand == 0 and cand % align == 0:
            return cand
    return dim


# ----------------------------------------------------------------------------
# tiled linear:  o = x @ w_t + b        (bf16 operands, f32 accumulation)
# ----------------------------------------------------------------------------
def _matmul_bias_kernel(x_ref, w_ref, b_ref, o_ref, acc_ref):
    @pl.when(pl.program_id(2) == 0)
    def _():
        acc_ref[...] = jnp.zeros_like(acc_ref)

    acc_ref[...] += jnp.dot(x_ref[...], w_ref[...],
                            preferred_element_type=jnp.float32)

    @pl.when(pl.program_id(2) == pl.num_programs(2) - 1)
    def _():
        o_ref[...] = (acc_ref[...] + b_ref[...]).astype(o_ref.dtype)


def linear(x, w_t, b, *, out_dtype=jnp.float32, tm=512, tn=512, tk=512):
    """x: (M, K) @ w_t: (K, N) + b: (N,) -> (M, N), MXU-tiled, f32 accumulate.

    M is padded to a friendly multiple so _pick_tile never falls back to one
    giant tile (the padding rows compute `b` and are sliced off)."""
    M, K = x.shape
    N = w_t.shape[1]
    gran = 128 if M >= 128 else 8
    m_pad = _round_up(M, gran)
    if m_pad != M:
        x = jnp.pad(x, ((0, m_pad - M), (0, 0)))
    tm_ = _pick_tile(m_pad, tm, 8)
    tn_ = _pick_tile(N, tn, 128)   # full-N fallback is legal (== array dim)
    tk_ = _pick_tile(K, tk, 128)   # full-K fallback is legal (== array dim)
    grid = (m_pad // tm_, N // tn_, K // tk_)
    out = pl.pallas_call(
        _matmul_bias_kernel,
        out_shape=jax.ShapeDtypeStruct((m_pad, N), out_dtype),
        grid_spec=pltpu.PrefetchScalarGridSpec(
            num_scalar_prefetch=0,
            grid=grid,
            in_specs=[pl.BlockSpec((tm_, tk_), lambda i, j, k: (i, k)),
                      pl.BlockSpec((tk_, tn_), lambda i, j, k: (k, j)),
                      pl.BlockSpec((1, tn_), lambda i, j, k: (0, j))],
            out_specs=pl.BlockSpec((tm_, tn_), lambda i, j, k: (i, j)),
            scratch_shapes=[pltpu.VMEM((tm_, tn_), jnp.float32)]),
        compiler_params=pltpu.CompilerParams(
            dimension_semantics=("parallel", "parallel", "arbitrary"),
            vmem_limit_bytes=_VMEM_LIMIT),
    )(x, w_t, b.reshape(1, N).astype(jnp.float32))
    return out[:M] if m_pad != M else out


# ----------------------------------------------------------------------------
# dual-input linear:  o = x1 @ w1_t + x2 @ w2_t + b
# (replaces the per-layer concatenate([hf, hb]) with an in-kernel accumulate;
#  K = H is small enough to keep un-tiled)
# ----------------------------------------------------------------------------
def _matmul2_bias_kernel(x1_ref, x2_ref, w1_ref, w2_ref, b_ref, o_ref):
    acc = jnp.dot(x1_ref[...], w1_ref[...], preferred_element_type=jnp.float32)
    acc = acc + jnp.dot(x2_ref[...], w2_ref[...],
                        preferred_element_type=jnp.float32)
    o_ref[...] = (acc + b_ref[...]).astype(o_ref.dtype)


def linear_dual(x1, x2, w1_t, w2_t, b, *, out_dtype=jnp.float32, tm=256, tn=512):
    M, K = x1.shape
    N = w1_t.shape[1]
    gran = 128 if M >= 128 else 8
    m_pad = _round_up(M, gran)
    if m_pad != M:
        pad = ((0, m_pad - M), (0, 0))
        x1 = jnp.pad(x1, pad)
        x2 = jnp.pad(x2, pad)
    tm_ = _pick_tile(m_pad, tm, 8)
    tn_ = _pick_tile(N, tn, 128)
    grid = (m_pad // tm_, N // tn_)
    out = pl.pallas_call(
        _matmul2_bias_kernel,
        out_shape=jax.ShapeDtypeStruct((m_pad, N), out_dtype),
        grid_spec=pltpu.PrefetchScalarGridSpec(
            num_scalar_prefetch=0,
            grid=grid,
            in_specs=[pl.BlockSpec((tm_, K), lambda i, j: (i, 0)),
                      pl.BlockSpec((tm_, K), lambda i, j: (i, 0)),
                      pl.BlockSpec((K, tn_), lambda i, j: (0, j)),
                      pl.BlockSpec((K, tn_), lambda i, j: (0, j)),
                      pl.BlockSpec((1, tn_), lambda i, j: (0, j))],
            out_specs=pl.BlockSpec((tm_, tn_), lambda i, j: (i, j))),
        compiler_params=pltpu.CompilerParams(
            dimension_semantics=("parallel", "parallel"),
            vmem_limit_bytes=_VMEM_LIMIT),
    )(x1, x2, w1_t, w2_t, b.reshape(1, N).astype(jnp.float32))
    return out[:M] if m_pad != M else out


# ----------------------------------------------------------------------------
# fused bidirectional LSTM recurrence for one layer, streamed over T
# ----------------------------------------------------------------------------
def _bilstm_kernel(gxf_ref, gxb_ref, whhf_ref, whhr_ref, h0_ref, lens_ref,
                   hf_ref, hb_ref, hf_sc, cf_sc, hb_sc, cb_sc):
    """One T-chunk of the forward direction and one of the backward direction.

    gxf_ref/gxb_ref: (Tc, B, 4H) bf16  x_t @ W_ih^T + (b_ih + b_hh) per dir.
                     (Lane-halves of one (T,B,8H) array selected by BlockSpec;
                      the backward chunk is the (nc-1-i)-th one, processed in
                      descending local time order.)
    whh*_ref:        (H, 4H) bf16      W_hh^T per direction (VMEM-resident).
    h0_ref:          (B, H)  f32       initial h == initial c (PyTorch repeat).
    lens_ref:        (B, 1)  int32     sequence lengths (mask computed in-kernel).
    hf_ref/hb_ref:   (Tc, B, H) bf16   per-step hidden outputs (zeros on padding).
    *_sc:            (B, H)  f32       persistent h/c state per direction.
    """
    Tc = gxf_ref.shape[0]
    H = h0_ref.shape[1]
    i = pl.program_id(0)
    nc = pl.num_programs(0)

    @pl.when(i == 0)
    def _():
        hf_sc[...] = h0_ref[...]
        cf_sc[...] = h0_ref[...]
        hb_sc[...] = h0_ref[...]
        cb_sc[...] = h0_ref[...]

    lens = lens_ref[...]                       # (B, 1) int32, loop-invariant

    # NOTE: gate slices below are lane-aligned when H % 128 == 0 (recommended
    # for production shapes); otherwise they take the masked/relayout path.
    def cell(gates, h_prev, c_prev, valid):
        ig = jax.nn.sigmoid(gates[:, 0 * H:1 * H])
        fg = jax.nn.sigmoid(gates[:, 1 * H:2 * H])
        gg = jnp.tanh(gates[:, 2 * H:3 * H])
        og = jax.nn.sigmoid(gates[:, 3 * H:4 * H])
        c_new = fg * c_prev + ig * gg
        h_new = og * jnp.tanh(c_new)
        h_next = jnp.where(valid, h_new, h_prev)   # hold state on padding
        c_next = jnp.where(valid, c_new, c_prev)
        h_out = jnp.where(valid, h_new, 0.0)       # zeros at padded steps
        return h_next, c_next, h_out

    def step(s, carry):
        # ---- forward direction: global time ascending ----
        tf = i * Tc + s
        gates_f = gxf_ref[s].astype(jnp.float32) + jnp.dot(
            hf_sc[...].astype(jnp.bfloat16), whhf_ref[...],
            preferred_element_type=jnp.float32)
        hf_new, cf_new, hf_out = cell(gates_f, hf_sc[...], cf_sc[...], tf < lens)
        hf_sc[...] = hf_new
        cf_sc[...] = cf_new
        hf_ref[s] = hf_out.astype(hf_ref.dtype)

        # ---- backward direction: global time descending ----
        sl = Tc - 1 - s
        tb = (nc - 1 - i) * Tc + sl
        gates_b = gxb_ref[sl].astype(jnp.float32) + jnp.dot(
            hb_sc[...].astype(jnp.bfloat16), whhr_ref[...],
            preferred_element_type=jnp.float32)
        hb_new, cb_new, hb_out = cell(gates_b, hb_sc[...], cb_sc[...], tb < lens)
        hb_sc[...] = hb_new
        cb_sc[...] = cb_new
        hb_ref[sl] = hb_out.astype(hb_ref.dtype)
        return carry

    # Fully unrolled so the two independent direction chains interleave.
    lax.fori_loop(0, Tc, step, 0, unroll=True)


def bilstm_layer(gx, whhf_t, whhr_t, h0, lens_b1, *, t_chunk=8):
    """gx: (T, B, 8H) bf16 fused gate pre-activations [fwd 4H | bwd 4H].

    Returns (hf, hb), each (T, B, H) bf16, time-major, zeros on padding.
    t_chunk=8 keeps the double-buffered gx chunks inside v7x's VMEM budget;
    v6e (128 MiB) can raise it to 32-64."""
    T, B, G8 = gx.shape
    H = whhf_t.shape[0]
    G4 = 4 * H
    Tc = _pick_tile(T, t_chunk, 1)
    nc = T // Tc

    if G4 % 128 == 0:
        # Both directions read lane-halves of the SAME (T,B,8H) array.
        gxf_in, gxb_in = gx, gx
        gxf_spec = pl.BlockSpec((Tc, B, G4), lambda i: (i, 0, 0))
        gxb_spec = pl.BlockSpec((Tc, B, G4), lambda i: (nc - 1 - i, 0, 1))
    else:
        # TODO(synk): lane-split fallback when 4H is not a multiple of 128
        # (materializes the two halves once in XLA).
        gxf_in, gxb_in = gx[..., :G4], gx[..., G4:]
        gxf_spec = pl.BlockSpec((Tc, B, G4), lambda i: (i, 0, 0))
        gxb_spec = pl.BlockSpec((Tc, B, G4), lambda i: (nc - 1 - i, 0, 0))

    out_sds = jax.ShapeDtypeStruct((T, B, H), jnp.bfloat16)
    return pl.pallas_call(
        _bilstm_kernel,
        out_shape=(out_sds, out_sds),
        grid_spec=pltpu.PrefetchScalarGridSpec(
            num_scalar_prefetch=0,
            grid=(nc,),
            in_specs=[
                gxf_spec,
                gxb_spec,
                pl.BlockSpec((H, G4), lambda i: (0, 0)),
                pl.BlockSpec((H, G4), lambda i: (0, 0)),
                pl.BlockSpec((B, H), lambda i: (0, 0)),
                pl.BlockSpec((B, 1), lambda i: (0, 0)),
            ],
            out_specs=(
                pl.BlockSpec((Tc, B, H), lambda i: (i, 0, 0)),
                pl.BlockSpec((Tc, B, H), lambda i: (nc - 1 - i, 0, 0)),
            ),
            scratch_shapes=[pltpu.VMEM((B, H), jnp.float32)] * 4),
        compiler_params=pltpu.CompilerParams(
            dimension_semantics=("arbitrary",),
            vmem_limit_bytes=_VMEM_LIMIT),
    )(gxf_in, gxb_in, whhf_t, whhr_t, h0, lens_b1)


# ----------------------------------------------------------------------------
# pack kernel: fused concat + transpose -> batch-first (B, T, 2H) f32
# ----------------------------------------------------------------------------
def _pack_kernel(hf_ref, hb_ref, out_ref):
    Tc, _, H = hf_ref.shape
    for t in range(Tc):          # Tc is a small static block dim
        out_ref[:, t, 0:H] = hf_ref[t].astype(jnp.float32)
        out_ref[:, t, H:2 * H] = hb_ref[t].astype(jnp.float32)


def pack_bidir(hf, hb, *, t_chunk=16):
    T, B, H = hf.shape
    Tc = _pick_tile(T, t_chunk, 8) if T % 8 == 0 else T
    nc = T // Tc
    return pl.pallas_call(
        _pack_kernel,
        out_shape=jax.ShapeDtypeStruct((B, T, 2 * H), jnp.float32),
        grid_spec=pltpu.PrefetchScalarGridSpec(
            num_scalar_prefetch=0,
            grid=(nc,),
            in_specs=[pl.BlockSpec((Tc, B, H), lambda i: (i, 0, 0)),
                      pl.BlockSpec((Tc, B, H), lambda i: (i, 0, 0))],
            out_specs=pl.BlockSpec((B, Tc, 2 * H), lambda i: (0, i, 0))),
        compiler_params=pltpu.CompilerParams(
            dimension_semantics=("parallel",),
            vmem_limit_bytes=_VMEM_LIMIT),
    )(hf, hb)


# ----------------------------------------------------------------------------
# mean pooling over valid steps + 0.5*(word_repr + mean_hidden)
# (consumes the native time-major per-direction outputs; padded steps are
#  exact zeros, so no mask is needed — just divide by the length)
# ----------------------------------------------------------------------------
def _meta_kernel(hf_ref, hb_ref, lens_ref, wf_ref, wb_ref, meta_ref,
                 accf_sc, accb_sc):
    i = pl.program_id(0)

    @pl.when(i == 0)
    def _():
        accf_sc[...] = jnp.zeros_like(accf_sc)
        accb_sc[...] = jnp.zeros_like(accb_sc)

    accf_sc[...] += jnp.sum(hf_ref[...].astype(jnp.float32), axis=0)
    accb_sc[...] += jnp.sum(hb_ref[...].astype(jnp.float32), axis=0)

    @pl.when(i == pl.num_programs(0) - 1)
    def _():
        len_f = jnp.maximum(lens_ref[...], 1).astype(jnp.float32)   # guard len=0
        meta_ref[:, 0, :] = 0.5 * (wf_ref[...] + accf_sc[...] / len_f)
        meta_ref[:, 1, :] = 0.5 * (wb_ref[...] + accb_sc[...] / len_f)


def masked_mean_meta(hf, hb, lens_b1, wrep_f, wrep_b, *, t_chunk=32):
    T, B, H = hf.shape
    Tc = _pick_tile(T, t_chunk, 1)
    nc = T // Tc
    meta2 = pl.pallas_call(
        _meta_kernel,
        out_shape=jax.ShapeDtypeStruct((B, 2, H), jnp.float32),
        grid_spec=pltpu.PrefetchScalarGridSpec(
            num_scalar_prefetch=0,
            grid=(nc,),
            in_specs=[pl.BlockSpec((Tc, B, H), lambda i: (i, 0, 0)),
                      pl.BlockSpec((Tc, B, H), lambda i: (i, 0, 0)),
                      pl.BlockSpec((B, 1), lambda i: (0, 0)),
                      pl.BlockSpec((B, H), lambda i: (0, 0)),
                      pl.BlockSpec((B, H), lambda i: (0, 0))],
            out_specs=pl.BlockSpec((B, 2, H), lambda i: (0, 0, 0)),
            scratch_shapes=[pltpu.VMEM((B, H), jnp.float32)] * 2),
        compiler_params=pltpu.CompilerParams(
            dimension_semantics=("arbitrary",),
            vmem_limit_bytes=_VMEM_LIMIT),
    )(hf, hb, lens_b1, wrep_f, wrep_b)
    return meta2.reshape(B, 2 * H)    # contiguous reshape, no data movement


# ----------------------------------------------------------------------------
# module forward (glue: embedding gathers only; no transposes, no concats)
# ----------------------------------------------------------------------------
def lstm_word_attention_forward(params, word, context, context_lengths,
                                index_of_word):
    emb = params["embedding"]
    B, T = context.shape
    H = params["s_b"].shape[0]

    # TODO(synk): embedding lookups are data-dependent gathers; done in XLA.
    e_word = emb[word]                                              # (B, E) f32
    h0 = linear(e_word.astype(jnp.bfloat16), params["s_wt"], params["s_b"],
                out_dtype=jnp.float32)                              # (B, H)

    x_tm = emb[context.T].astype(jnp.bfloat16)                      # (T, B, E)
    E = x_tm.shape[-1]
    lens_b1 = context_lengths.astype(jnp.int32)[:, None]            # (B, 1)

    # ---- layer 0: fused fwd+bwd input projection, then recurrence ----
    l0 = params["lstm"][0]
    gx0 = linear(x_tm.reshape(T * B, E), l0["wih_t"], l0["b"],
                 out_dtype=jnp.bfloat16).reshape(T, B, 8 * H)
    hf1, hb1 = bilstm_layer(gx0, l0["whh_f_t"], l0["whh_r_t"], h0, lens_b1)

    # ---- layer 1: two-input projection (no concatenate of hf1/hb1) ----
    l1 = params["lstm"][1]
    gx1 = linear_dual(hf1.reshape(T * B, H), hb1.reshape(T * B, H),
                      l1["wih_t_hf"], l1["wih_t_hb"], l1["b"],
                      out_dtype=jnp.bfloat16).reshape(T, B, 8 * H)
    hf2, hb2 = bilstm_layer(gx1, l1["whh_f_t"], l1["whh_r_t"], h0, lens_b1)

    # ---- batch-first encoder_hidden (fused concat+transpose kernel) ----
    encoder_hidden = pack_bidir(hf2, hb2)                           # (B, T, 2H)

    # word_repr gathered straight from the time-major outputs (tiny XLA gather)
    b_idx = jnp.arange(B)
    wrep_f = hf2[index_of_word, b_idx].astype(jnp.float32)          # (B, H)
    wrep_b = hb2[index_of_word, b_idx].astype(jnp.float32)          # (B, H)

    meta = masked_mean_meta(hf2, hb2, lens_b1, wrep_f, wrep_b)      # (B, 2H)

    # The PyTorch module also computes out = dropout(f(cat([meta, e_word])))
    # and discards it; removed here (wasted MXU/HBM work).  Dropouts = eval.
    return meta, encoder_hidden


# ----------------------------------------------------------------------------
# parameter preparation (done ONCE, outside jit): transpose weights, fold the
# two LSTM biases, fuse the two directions' W_ih, cast matmul operands to bf16
# ----------------------------------------------------------------------------
def prepare_params(p):
    H = p["s_b"].shape[0]
    out = {
        "embedding": p["embedding"],
        "s_wt": p["s_w"].T.astype(jnp.bfloat16),        # (E, H)
        "s_b": p["s_b"].astype(jnp.float32),
        "lstm": [],
    }
    for li, layer in enumerate(p["lstm"]):
        wih_t = jnp.concatenate([layer["wih_f"].T, layer["wih_r"].T],
                                axis=1).astype(jnp.bfloat16)        # (din, 8H)
        b = jnp.concatenate([layer["bih_f"] + layer["bhh_f"],
                             layer["bih_r"] + layer["bhh_r"]]).astype(jnp.float32)
        entry = {
            "b": b,
            "whh_f_t": layer["whh_f"].T.astype(jnp.bfloat16),       # (H, 4H)
            "whh_r_t": layer["whh_r"].T.astype(jnp.bfloat16),       # (H, 4H)
        }
        if li == 0:
            entry["wih_t"] = wih_t                                  # (E, 8H)
        else:
            entry["wih_t_hf"] = wih_t[:H]                           # (H, 8H)
            entry["wih_t_hb"] = wih_t[H:]                           # (H, 8H)
        out["lstm"].append(entry)
    # p["f_w"], p["f_b"] are unused by the returned values (output discarded).
    return out


# ----------------------------------------------------------------------------
# deterministic parameter initialization (shapes from LSTMWordAttention.__init__)
# ----------------------------------------------------------------------------
def init_params(key, vocab, E, H):
    scale = 0.1
    keys = iter(jax.random.split(key, 40))

    def nrm(shape):
        return scale * jax.random.normal(next(keys), shape, dtype=jnp.float32)

    params = {
        "embedding": nrm((vocab, E)),                 # nn.Embedding(vocab, E)
        "s_w": nrm((H, E)), "s_b": nrm((H,)),         # nn.Linear(E, H)
        "f_w": nrm((2 * H, 2 * H + E)),               # nn.Linear(2H + E, 2H)
        "f_b": nrm((2 * H,)),                         # (unused by the output)
        "lstm": [],
    }
    for l in range(2):                                # 2-layer bidirectional LSTM
        din = E if l == 0 else 2 * H
        params["lstm"].append({
            "wih_f": nrm((4 * H, din)), "whh_f": nrm((4 * H, H)),
            "bih_f": nrm((4 * H,)),     "bhh_f": nrm((4 * H,)),
            "wih_r": nrm((4 * H, din)), "whh_r": nrm((4 * H, H)),
            "bih_r": nrm((4 * H,)),     "bhh_r": nrm((4 * H,)),
        })
    return params


# ----------------------------------------------------------------------------
if __name__ == "__main__":
    B, T, V, E, H = 2, 8, 20, 16, 32
    key = jax.random.PRNGKey(0)
    kp, kc, kw = jax.random.split(key, 3)

    params = prepare_params(init_params(kp, V, E, H))   # kernel layout, once
    word = jax.random.randint(kw, (B,), 0, V)                  # (B,)
    context = jax.random.randint(kc, (B, T), 0, V)             # (B, T)
    context_lengths = jnp.array([8, 5], dtype=jnp.int32)       # (B,)
    index_of_word = jnp.array([2, 1], dtype=jnp.int32)         # (B,)

    fwd = jax.jit(lstm_word_attention_forward)
    meta, encoder_hidden = fwd(params, word, context,
                               context_lengths, index_of_word)
    jax.block_until_ready((meta, encoder_hidden))

    assert meta.shape == (B, 2 * H)
    assert encoder_hidden.shape == (B, T, 2 * H)
    assert bool(jnp.all(jnp.isfinite(meta)))
    assert bool(jnp.all(jnp.isfinite(encoder_hidden)))
    # padded steps of the shorter sequence must be exact zeros (pack/pad semantics)
    assert bool(jnp.all(encoder_hidden[1, 5:, :] == 0.0))
    print("KERNEL_OK")
</pallas_src>

<mosaic_0001>
module attributes {stable_mosaic.version = 11 : i64} {
  func.func @_matmul_bias_kernel(%arg0: i32, %arg1: i32, %arg2: i32, %arg3: memref<8x16xbf16, #tpu.memory_space<vmem>>, %arg4: memref<16x32xbf16, #tpu.memory_space<vmem>>, %arg5: memref<1x32xf32, #tpu.memory_space<vmem>>, %arg6: memref<8x32xf32, #tpu.memory_space<vmem>>, %arg7: memref<8x32xf32, #tpu.memory_space<vmem>>) attributes {dimension_semantics = [#tpu.dimension_semantics<parallel>, #tpu.dimension_semantics<parallel>, #tpu.dimension_semantics<arbitrary>], iteration_bounds = array<i64: 1, 1, 1>, scalar_prefetch = 0 : i64, scratch_operands = 1 : i64, tpu.core_type = #tpu.core_type<tc>, window_params = [{transform_indices = @transform_0, window_bounds = array<i64: 8, 16>}, {transform_indices = @transform_1, window_bounds = array<i64: 16, 32>}, {transform_indices = @transform_2, window_bounds = array<i64: 1, 32>}, {transform_indices = @transform_3, window_bounds = array<i64: 8, 32>}]} {
    %c0_i32 = arith.constant 0 : i32
    %0 = arith.cmpi eq, %arg2, %c0_i32 : i32
    %1 = arith.extui %0 : i1 to i32
    %c0_i32_0 = arith.constant 0 : i32
    %2 = arith.cmpi ne, %1, %c0_i32_0 : i32
    scf.if %2 {
      %cst_10 = arith.constant 0.000000e+00 : f32
      %12 = vector.broadcast %cst_10 : f32 to vector<8x32xf32>
      %c0_11 = arith.constant 0 : index
      %c0_12 = arith.constant 0 : index
      %13 = vector.load %arg7[%c0_11, %c0_12] : memref<8x32xf32, #tpu.memory_space<vmem>>, vector<8x32xf32>
      tpu.vector_store %arg7[%c0_11, %c0_12], %12 {strides = array<i32>} : memref<8x32xf32, #tpu.memory_space<vmem>>, vector<8x32xf32>,
    } else {
    }
    %c0 = arith.constant 0 : index
    %c0_1 = arith.constant 0 : index
    %3 = vector.load %arg7[%c0, %c0_1] : memref<8x32xf32, #tpu.memory_space<vmem>>, vector<8x32xf32>
    %c0_2 = arith.constant 0 : index
    %c0_3 = arith.constant 0 : index
    %4 = vector.load %arg3[%c0_2, %c0_3] : memref<8x16xbf16, #tpu.memory_space<vmem>>, vector<8x16xbf16>
    %c0_4 = arith.constant 0 : index
    %c0_5 = arith.constant 0 : index
    %5 = vector.load %arg4[%c0_4, %c0_5] : memref<16x32xbf16, #tpu.memory_space<vmem>>, vector<16x32xbf16>
    %cst = arith.constant dense<0.000000e+00> : vector<8x32xf32>
    %6 = tpu.matmul %4, %5, %cst {dimension_numbers = #tpu.dot_dimension_numbers<[1], [0], [0], [1], [0, 0, 1, 1], [], []>} : vector<8x16xbf16>, vector<16x32xbf16>, vector<8x32xf32> -> vector<8x32xf32>
    %7 = arith.addf %3, %6 : vector<8x32xf32>
    %c0_6 = arith.constant 0 : index
    %c0_7 = arith.constant 0 : index
    %8 = vector.load %arg7[%c0_6, %c0_7] : memref<8x32xf32, #tpu.memory_space<vmem>>, vector<8x32xf32>
    tpu.vector_store %arg7[%c0_6, %c0_7], %7 {strides = array<i32>} : memref<8x32xf32, #tpu.memory_space<vmem>>, vector<8x32xf32>,
    %c0_i32_8 = arith.constant 0 : i32
    %9 = arith.cmpi eq, %arg2, %c0_i32_8 : i32
    %10 = arith.extui %9 : i1 to i32
    %c0_i32_9 = arith.constant 0 : i32
    %11 = arith.cmpi ne, %10, %c0_i32_9 : i32
    scf.if %11 {
      %c0_10 = arith.constant 0 : index
      %c0_11 = arith.constant 0 : index
      %12 = vector.load %arg7[%c0_10, %c0_11] : memref<8x32xf32, #tpu.memory_space<vmem>>, vector<8x32xf32>
      %c0_12 = arith.constant 0 : index
      %c0_13 = arith.constant 0 : index
      %13 = vector.load %arg5[%c0_12, %c0_13] : memref<1x32xf32, #tpu.memory_space<vmem>>, vector<1x32xf32>
      %14 = vector.broadcast %13 : vector<1x32xf32> to vector<8x32xf32>
      %15 = arith.addf %12, %14 : vector<8x32xf32>
      %c0_14 = arith.constant 0 : index
      %c0_15 = arith.constant 0 : index
      %16 = vector.load %arg6[%c0_14, %c0_15] : memref<8x32xf32, #tpu.memory_space<vmem>>, vector<8x32xf32>
      tpu.vector_store %arg6[%c0_14, %c0_15], %15 {strides = array<i32>} : memref<8x32xf32, #tpu.memory_space<vmem>>, vector<8x32xf32>,
    } else {
    }
    return
  }
  func.func @transform_0(%arg0: i32, %arg1: i32, %arg2: i32) -> (i32, i32) {
    %c0_i32 = arith.constant 0 : i32
    return %arg0, %arg2 : i32, i32
  }
  func.func @transform_1(%arg0: i32, %arg1: i32, %arg2: i32) -> (i32, i32) {
    %c0_i32 = arith.constant 0 : i32
    return %arg2, %arg1 : i32, i32
  }
  func.func @transform_2(%arg0: i32, %arg1: i32, %arg2: i32) -> (i32, i32) {
    %c0_i32 = arith.constant 0 : i32
    %c0_i32_0 = arith.constant 0 : i32
    return %c0_i32, %arg1 : i32, i32
  }
  func.func @transform_3(%arg0: i32, %arg1: i32, %arg2: i32) -> (i32, i32) {
    %c0_i32 = arith.constant 0 : i32
    return %arg0, %arg1 : i32, i32
  }
}

module attributes {stable_mosaic.version = 11 : i64} {
  func.func @_matmul_bias_kernel(%arg0: i32, %arg1: i32, %arg2: i32, %arg3: memref<16x16xbf16, #tpu.memory_space<vmem>>, %arg4: memref<16x256xbf16, #tpu.memory_space<vmem>>, %arg5: memref<1x256xf32, #tpu.memory_space<vmem>>, %arg6: memref<16x256xbf16, #tpu.memory_space<vmem>>, %arg7: memref<16x256xf32, #tpu.memory_space<vmem>>) attributes {dimension_semantics = [#tpu.dimension_semantics<parallel>, #tpu.dimension_semantics<parallel>, #tpu.dimension_semantics<arbitrary>], iteration_bounds = array<i64: 1, 1, 1>, scalar_prefetch = 0 : i64, scratch_operands = 1 : i64, tpu.core_type = #tpu.core_type<tc>, window_params = [{transform_indices = @transform_0, window_bounds = array<i64: 16, 16>}, {transform_indices = @transform_1, window_bounds = array<i64: 16, 256>}, {transform_indices = @transform_2, window_bounds = array<i64: 1, 256>}, {transform_indices = @transform_3, window_bounds = array<i64: 16, 256>}]} {
    %c0_i32 = arith.constant 0 : i32
    %0 = arith.cmpi eq, %arg2, %c0_i32 : i32
    %1 = arith.extui %0 : i1 to i32
    %c0_i32_0 = arith.constant 0 : i32
    %2 = arith.cmpi ne, %1, %c0_i32_0 : i32
    scf.if %2 {
      %cst_10 = arith.constant 0.000000e+00 : f32
      %12 = vector.broadcast %cst_10 : f32 to vector<16x256xf32>
      %c0_11 = arith.constant 0 : index
      %c0_12 = arith.constant 0 : index
      %13 = vector.load %arg7[%c0_11, %c0_12] : memref<16x256xf32, #tpu.memory_space<vmem>>, vector<16x256xf32>
      tpu.vector_store %arg7[%c0_11, %c0_12], %12 {strides = array<i32>} : memref<16x256xf32, #tpu.memory_space<vmem>>, vector<16x256xf32>,
    } else {
    }
    %c0 = arith.constant 0 : index
    %c0_1 = arith.constant 0 : index
    %3 = vector.load %arg7[%c0, %c0_1] : memref<16x256xf32, #tpu.memory_space<vmem>>, vector<16x256xf32>
    %c0_2 = arith.constant 0 : index
    %c0_3 = arith.constant 0 : index
    %4 = vector.load %arg3[%c0_2, %c0_3] : memref<16x16xbf16, #tpu.memory_space<vmem>>, vector<16x16xbf16>
    %c0_4 = arith.constant 0 : index
    %c0_5 = arith.constant 0 : index
    %5 = vector.load %arg4[%c0_4, %c0_5] : memref<16x256xbf16, #tpu.memory_space<vmem>>, vector<16x256xbf16>
    %cst = arith.constant dense<0.000000e+00> : vector<16x256xf32>
    %6 = tpu.matmul %4, %5, %cst {dimension_numbers = #tpu.dot_dimension_numbers<[1], [0], [0], [1], [0, 0, 1, 1], [], []>} : vector<16x16xbf16>, vector<16x256xbf16>, vector<16x256xf32> -> vector<16x256xf32>
    %7 = arith.addf %3, %6 : vector<16x256xf32>
    %c0_6 = arith.constant 0 : index
    %c0_7 = arith.constant 0 : index
    %8 = vector.load %arg7[%c0_6, %c0_7] : memref<16x256xf32, #tpu.memory_space<vmem>>, vector<16x256xf32>
    tpu.vector_store %arg7[%c0_6, %c0_7], %7 {strides = array<i32>} : memref<16x256xf32, #tpu.memory_space<vmem>>, vector<16x256xf32>,
    %c0_i32_8 = arith.constant 0 : i32
    %9 = arith.cmpi eq, %arg2, %c0_i32_8 : i32
    %10 = arith.extui %9 : i1 to i32
    %c0_i32_9 = arith.constant 0 : i32
    %11 = arith.cmpi ne, %10, %c0_i32_9 : i32
    scf.if %11 {
      %c0_10 = arith.constant 0 : index
      %c0_11 = arith.constant 0 : index
      %12 = vector.load %arg7[%c0_10, %c0_11] : memref<16x256xf32, #tpu.memory_space<vmem>>, vector<16x256xf32>
      %c0_12 = arith.constant 0 : index
      %c0_13 = arith.constant 0 : index
      %13 = vector.load %arg5[%c0_12, %c0_13] : memref<1x256xf32, #tpu.memory_space<vmem>>, vector<1x256xf32>
      %14 = vector.broadcast %13 : vector<1x256xf32> to vector<16x256xf32>
      %15 = arith.addf %12, %14 : vector<16x256xf32>
      %16 = arith.truncf %15 : vector<16x256xf32> to vector<16x256xbf16>
      %c0_14 = arith.constant 0 : index
      %c0_15 = arith.constant 0 : index
      %17 = vector.load %arg6[%c0_14, %c0_15] : memref<16x256xbf16, #tpu.memory_space<vmem>>, vector<16x256xbf16>
      tpu.vector_store %arg6[%c0_14, %c0_15], %16 {strides = array<i32>} : memref<16x256xbf16, #tpu.memory_space<vmem>>, vector<16x256xbf16>,
    } else {
    }
    return
  }
  func.func @transform_0(%arg0: i32, %arg1: i32, %arg2: i32) -> (i32, i32) {
    %c0_i32 = arith.constant 0 : i32
    return %arg0, %arg2 : i32, i32
  }
  func.func @transform_1(%arg0: i32, %arg1: i32, %arg2: i32) -> (i32, i32) {
    %c0_i32 = arith.constant 0 : i32
    return %arg2, %arg1 : i32, i32
  }
  func.func @transform_2(%arg0: i32, %arg1: i32, %arg2: i32) -> (i32, i32) {
    %c0_i32 = arith.constant 0 : i32
    %c0_i32_0 = arith.constant 0 : i32
    return %c0_i32, %arg1 : i32, i32
  }
  func.func @transform_3(%arg0: i32, %arg1: i32, %arg2: i32) -> (i32, i32) {
    %c0_i32 = arith.constant 0 : i32
    return %arg0, %arg1 : i32, i32
  }
}

module attributes {stable_mosaic.version = 11 : i64} {
  func.func @_matmul2_bias_kernel(%arg0: i32, %arg1: i32, %arg2: memref<16x32xbf16, #tpu.memory_space<vmem>>, %arg3: memref<16x32xbf16, #tpu.memory_space<vmem>>, %arg4: memref<32x256xbf16, #tpu.memory_space<vmem>>, %arg5: memref<32x256xbf16, #tpu.memory_space<vmem>>, %arg6: memref<1x256xf32, #tpu.memory_space<vmem>>, %arg7: memref<16x256xbf16, #tpu.memory_space<vmem>>) attributes {dimension_semantics = [#tpu.dimension_semantics<parallel>, #tpu.dimension_semantics<parallel>], iteration_bounds = array<i64: 1, 1>, scalar_prefetch = 0 : i64, scratch_operands = 0 : i64, tpu.core_type = #tpu.core_type<tc>, window_params = [{transform_indices = @transform_0, window_bounds = array<i64: 16, 32>}, {transform_indices = @transform_1, window_bounds = array<i64: 16, 32>}, {transform_indices = @transform_2, window_bounds = array<i64: 32, 256>}, {transform_indices = @transform_3, window_bounds = array<i64: 32, 256>}, {transform_indices = @transform_4, window_bounds = array<i64: 1, 256>}, {transform_indices = @transform_5, window_bounds = array<i64: 16, 256>}]} {
    %c0 = arith.constant 0 : index
    %c0_0 = arith.constant 0 : index
    %0 = vector.load %arg2[%c0, %c0_0] : memref<16x32xbf16, #tpu.memory_space<vmem>>, vector<16x32xbf16>
    %c0_1 = arith.constant 0 : index
    %c0_2 = arith.constant 0 : index
    %1 = vector.load %arg4[%c0_1, %c0_2] : memref<32x256xbf16, #tpu.memory_space<vmem>>, vector<32x256xbf16>
    %cst = arith.constant dense<0.000000e+00> : vector<16x256xf32>
    %2 = tpu.matmul %0, %1, %cst {dimension_numbers = #tpu.dot_dimension_numbers<[1], [0], [0], [1], [0, 0, 1, 1], [], []>} : vector<16x32xbf16>, vector<32x256xbf16>, vector<16x256xf32> -> vector<16x256xf32>
    %c0_3 = arith.constant 0 : index
    %c0_4 = arith.constant 0 : index
    %3 = vector.load %arg3[%c0_3, %c0_4] : memref<16x32xbf16, #tpu.memory_space<vmem>>, vector<16x32xbf16>
    %c0_5 = arith.constant 0 : index
    %c0_6 = arith.constant 0 : index
    %4 = vector.load %arg5[%c0_5, %c0_6] : memref<32x256xbf16, #tpu.memory_space<vmem>>, vector<32x256xbf16>
    %cst_7 = arith.constant dense<0.000000e+00> : vector<16x256xf32>
    %5 = tpu.matmul %3, %4, %cst_7 {dimension_numbers = #tpu.dot_dimension_numbers<[1], [0], [0], [1], [0, 0, 1, 1], [], []>} : vector<16x32xbf16>, vector<32x256xbf16>, vector<16x256xf32> -> vector<16x256xf32>
    %6 = arith.addf %2, %5 : vector<16x256xf32>
    %c0_8 = arith.constant 0 : index
    %c0_9 = arith.constant 0 : index
    %7 = vector.load %arg6[%c0_8, %c0_9] : memref<1x256xf32, #tpu.memory_space<vmem>>, vector<1x256xf32>
    %8 = vector.broadcast %7 : vector<1x256xf32> to vector<16x256xf32>
    %9 = arith.addf %6, %8 : vector<16x256xf32>
    %10 = arith.truncf %9 : vector<16x256xf32> to vector<16x256xbf16>
    %c0_10 = arith.constant 0 : index
    %c0_11 = arith.constant 0 : index
    %11 = vector.load %arg7[%c0_10, %c0_11] : memref<16x256xbf16, #tpu.memory_space<vmem>>, vector<16x256xbf16>
    tpu.vector_store %arg7[%c0_10, %c0_11], %10 {strides = array<i32>} : memref<16x256xbf16, #tpu.memory_space<vmem>>, vector<16x256xbf16>,
    return
  }
  func.func @transform_0(%arg0: i32, %arg1: i32) -> (i32, i32) {
    %c0_i32 = arith.constant 0 : i32
    %c0_i32_0 = arith.constant 0 : i32
    return %arg0, %c0_i32 : i32, i32
  }
  func.func @transform_1(%arg0: i32, %arg1: i32) -> (i32, i32) {
    %c0_i32 = arith.constant 0 : i32
    %c0_i32_0 = arith.constant 0 : i32
    return %arg0, %c0_i32 : i32, i32
  }
  func.func @transform_2(%arg0: i32, %arg1: i32) -> (i32, i32) {
    %c0_i32 = arith.constant 0 : i32
    %c0_i32_0 = arith.constant 0 : i32
    return %c0_i32, %arg1 : i32, i32
  }
  func.func @transform_3(%arg0: i32, %arg1: i32) -> (i32, i32) {
    %c0_i32 = arith.constant 0 : i32
    %c0_i32_0 = arith.constant 0 : i32
    return %c0_i32, %arg1 : i32, i32
  }
  func.func @transform_4(%arg0: i32, %arg1: i32) -> (i32, i32) {
    %c0_i32 = arith.constant 0 : i32
    %c0_i32_0 = arith.constant 0 : i32
    return %c0_i32, %arg1 : i32, i32
  }
  func.func @transform_5(%arg0: i32, %arg1: i32) -> (i32, i32) {
    %c0_i32 = arith.constant 0 : i32
    return %arg0, %arg1 : i32, i32
  }
}

module attributes {stable_mosaic.version = 11 : i64} {
  func.func @_bilstm_kernel(%arg0: i32, %arg1: memref<8x2x128xbf16, #tpu.memory_space<vmem>>, %arg2: memref<8x2x128xbf16, #tpu.memory_space<vmem>>, %arg3: memref<32x128xbf16, #tpu.memory_space<vmem>>, %arg4: memref<32x128xbf16, #tpu.memory_space<vmem>>, %arg5: memref<2x32xf32, #tpu.memory_space<vmem>>, %arg6: memref<2x1xi32, #tpu.memory_space<vmem>>, %arg7: memref<8x2x32xbf16, #tpu.memory_space<vmem>>, %arg8: memref<8x2x32xbf16, #tpu.memory_space<vmem>>, %arg9: memref<2x32xf32, #tpu.memory_space<vmem>>, %arg10: memref<2x32xf32, #tpu.memory_space<vmem>>, %arg11: memref<2x32xf32, #tpu.memory_space<vmem>>, %arg12: memref<2x32xf32, #tpu.memory_space<vmem>>) attributes {dimension_semantics = [#tpu.dimension_semantics<arbitrary>], iteration_bounds = array<i64: 1>, scalar_prefetch = 0 : i64, scratch_operands = 4 : i64, tpu.core_type = #tpu.core_type<tc>, window_params = [{transform_indices = @transform_0, window_bounds = array<i64: 8, 2, 128>}, {transform_indices = @transform_1, window_bounds = array<i64: 8, 2, 128>}, {pipeline_mode = #tpu.pipeline_mode<synchronous>, transform_indices = @transform_2, window_bounds = array<i64: 32, 128>}, {pipeline_mode = #tpu.pipeline_mode<synchronous>, transform_indices = @transform_3, window_bounds = array<i64: 32, 128>}, {pipeline_mode = #tpu.pipeline_mode<synchronous>, transform_indices = @transform_4, window_bounds = array<i64: 2, 32>}, {pipeline_mode = #tpu.pipeline_mode<synchronous>, transform_indices = @transform_5, window_bounds = array<i64: 2, 1>}, {transform_indices = @transform_6, window_bounds = array<i64: 8, 2, 32>}, {transform_indices = @transform_7, window_bounds = array<i64: 8, 2, 32>}]} {
    %c0_i32 = arith.constant 0 : i32
    %0 = arith.cmpi eq, %arg0, %c0_i32 : i32
    %1 = arith.extui %0 : i1 to i32
    %c0_i32_0 = arith.constant 0 : i32
    %2 = arith.cmpi ne, %1, %c0_i32_0 : i32
    scf.if %2 {
      %c0_370 = arith.constant 0 : index
      %c0_371 = arith.constant 0 : index
      %932 = vector.load %arg5[%c0_370, %c0_371] : memref<2x32xf32, #tpu.memory_space<vmem>>, vector<2x32xf32>
      %c0_372 = arith.constant 0 : index
      %c0_373 = arith.constant 0 : index
      %933 = vector.load %arg9[%c0_372, %c0_373] : memref<2x32xf32, #tpu.memory_space<vmem>>, vector<2x32xf32>
      tpu.vector_store %arg9[%c0_372, %c0_373], %932 {strides = array<i32>} : memref<2x32xf32, #tpu.memory_space<vmem>>, vector<2x32xf32>,
      %c0_374 = arith.constant 0 : index
      %c0_375 = arith.constant 0 : index
      %934 = vector.load %arg5[%c0_374, %c0_375] : memref<2x32xf32, #tpu.memory_space<vmem>>, vector<2x32xf32>
      %c0_376 = arith.constant 0 : index
      %c0_377 = arith.constant 0 : index
      %935 = vector.load %arg10[%c0_376, %c0_377] : memref<2x32xf32, #tpu.memory_space<vmem>>, vector<2x32xf32>
      tpu.vector_store %arg10[%c0_376, %c0_377], %934 {strides = array<i32>} : memref<2x32xf32, #tpu.memory_space<vmem>>, vector<2x32xf32>,
      %c0_378 = arith.constant 0 : index
      %c0_379 = arith.constant 0 : index
      %936 = vector.load %arg5[%c0_378, %c0_379] : memref<2x32xf32, #tpu.memory_space<vmem>>, vector<2x32xf32>
      %c0_380 = arith.constant 0 : index
      %c0_381 = arith.constant 0 : index
      %937 = vector.load %arg11[%c0_380, %c0_381] : memref<2x32xf32, #tpu.memory_space<vmem>>, vector<2x32xf32>
      tpu.vector_store %arg11[%c0_380, %c0_381], %936 {strides = array<i32>} : memref<2x32xf32, #tpu.memory_space<vmem>>, vector<2x32xf32>,
      %c0_382 = arith.constant 0 : index
      %c0_383 = arith.constant 0 : index
      %938 = vector.load %arg5[%c0_382, %c0_383] : memref<2x32xf32, #tpu.memory_space<vmem>>, vector<2x32xf32>
      %c0_384 = arith.constant 0 : index
      %c0_385 = arith.constant 0 : index
      %939 = vector.load %arg12[%c0_384, %c0_385] : memref<2x32xf32, #tpu.memory_space<vmem>>, vector<2x32xf32>
      tpu.vector_store %arg12[%c0_384, %c0_385], %938 {strides = array<i32>} : memref<2x32xf32, #tpu.memory_space<vmem>>, vector<2x32xf32>,
    } else {
    }
    %c0 = arith.constant 0 : index
    %c0_1 = arith.constant 0 : index
    %3 = vector.load %arg6[%c0, %c0_1] : memref<2x1xi32, #tpu.memory_space<vmem>>, vector<2x1xi32>
    %c0_i32_2 = arith.constant 0 : i32
    %c8_i32 = arith.constant 8 : i32
    %4 = arith.muli %arg0, %c8_i32 : i32
    %5 = arith.addi %4, %c0_i32_2 : i32
    %6 = arith.index_cast %c0_i32_2 : i32 to index
    %c0_3 = arith.constant 0 : index
    %c0_4 = arith.constant 0 : index
    %7 = vector.load %arg1[%6, %c0_3, %c0_4] : memref<8x2x128xbf16, #tpu.memory_space<vmem>>, vector<1x2x128xbf16>
    %8 = vector.shape_cast %7 : vector<1x2x128xbf16> to vector<2x128xbf16>
    %9 = arith.extf %8 : vector<2x128xbf16> to vector<2x128xf32>
    %c0_5 = arith.constant 0 : index
    %c0_6 = arith.constant 0 : index
    %10 = vector.load %arg9[%c0_5, %c0_6] : memref<2x32xf32, #tpu.memory_space<vmem>>, vector<2x32xf32>
    %11 = arith.truncf %10 : vector<2x32xf32> to vector<2x32xbf16>
    %c0_7 = arith.constant 0 : index
    %c0_8 = arith.constant 0 : index
    %12 = vector.load %arg3[%c0_7, %c0_8] : memref<32x128xbf16, #tpu.memory_space<vmem>>, vector<32x128xbf16>
    %cst = arith.constant dense<0.000000e+00> : vector<2x128xf32>
    %13 = tpu.matmul %11, %12, %cst {dimension_numbers = #tpu.dot_dimension_numbers<[1], [0], [0], [1], [0, 0, 1, 1], [], []>} : vector<2x32xbf16>, vector<32x128xbf16>, vector<2x128xf32> -> vector<2x128xf32>
    %14 = arith.addf %9, %13 : vector<2x128xf32>
    %c0_9 = arith.constant 0 : index
    %c0_10 = arith.constant 0 : index
    %15 = vector.load %arg9[%c0_9, %c0_10] : memref<2x32xf32, #tpu.memory_space<vmem>>, vector<2x32xf32>
    %c0_11 = arith.constant 0 : index
    %c0_12 = arith.constant 0 : index
    %16 = vector.load %arg10[%c0_11, %c0_12] : memref<2x32xf32, #tpu.memory_space<vmem>>, vector<2x32xf32>
    %17 = vector.broadcast %5 : i32 to vector<2x1xi32>
    %18 = arith.cmpi slt, %17, %3 : vector<2x1xi32>
    %19 = vector.extract_strided_slice %14 {offsets = [0, 0], sizes = [2, 32], strides = [1, 1]} : vector<2x128xf32> to vector<2x32xf32>
    %20 = arith.negf %19 : vector<2x32xf32>
    %21 = math.exp %20 : vector<2x32xf32>
    %cst_13 = arith.constant 1.000000e+00 : f32
    %22 = vector.broadcast %cst_13 : f32 to vector<2x32xf32>
    %23 = arith.addf %22, %21 : vector<2x32xf32>
    %24 = arith.divf %22, %23 : vector<2x32xf32>
    %25 = vector.extract_strided_slice %14 {offsets = [0, 32], sizes = [2, 32], strides = [1, 1]} : vector<2x128xf32> to vector<2x32xf32>
    %26 = arith.negf %25 : vector<2x32xf32>
    %27 = math.exp %26 : vector<2x32xf32>
    %cst_14 = arith.constant 1.000000e+00 : f32
    %28 = vector.broadcast %cst_14 : f32 to vector<2x32xf32>
    %29 = arith.addf %28, %27 : vector<2x32xf32>
    %30 = arith.divf %28, %29 : vector<2x32xf32>
    %31 = vector.extract_strided_slice %14 {offsets = [0, 64], sizes = [2, 32], strides = [1, 1]} : vector<2x128xf32> to vector<2x32xf32>
    %32 = math.tanh %31 : vector<2x32xf32>
    %33 = vector.extract_strided_slice %14 {offsets = [0, 96], sizes = [2, 32], strides = [1, 1]} : vector<2x128xf32> to vector<2x32xf32>
    %34 = arith.negf %33 : vector<2x32xf32>
    %35 = math.exp %34 : vector<2x32xf32>
    %cst_15 = arith.constant 1.000000e+00 : f32
    %36 = vector.broadcast %cst_15 : f32 to vector<2x32xf32>
    %37 = arith.addf %36, %35 : vector<2x32xf32>
    %38 = arith.divf %36, %37 : vector<2x32xf32>
    %39 = arith.mulf %30, %16 : vector<2x32xf32>
    %40 = arith.mulf %24, %32 : vector<2x32xf32>
    %41 = arith.addf %39, %40 : vector<2x32xf32>
    %42 = math.tanh %41 : vector<2x32xf32>
    %43 = arith.mulf %38, %42 : vector<2x32xf32>
    %44 = vector.shape_cast %18 : vector<2x1xi1> to vector<2x1xi1>
    %45 = vector.broadcast %44 : vector<2x1xi1> to vector<2x32xi1>
    %46 = arith.select %45, %43, %15 : vector<2x32xi1>, vector<2x32xf32>
    %47 = vector.shape_cast %18 : vector<2x1xi1> to vector<2x1xi1>
    %48 = vector.broadcast %47 : vector<2x1xi1> to vector<2x32xi1>
    %49 = arith.select %48, %41, %16 : vector<2x32xi1>, vector<2x32xf32>
    %cst_16 = arith.constant 0.000000e+00 : f32
    %50 = vector.shape_cast %18 : vector<2x1xi1> to vector<2x1xi1>
    %51 = vector.broadcast %50 : vector<2x1xi1> to vector<2x32xi1>
    %52 = vector.broadcast %cst_16 : f32 to vector<2x32xf32>
    %53 = arith.select %51, %43, %52 : vector<2x32xi1>, vector<2x32xf32>
    %c0_17 = arith.constant 0 : index
    %c0_18 = arith.constant 0 : index
    %54 = vector.load %arg9[%c0_17, %c0_18] : memref<2x32xf32, #tpu.memory_space<vmem>>, vector<2x32xf32>
    tpu.vector_store %arg9[%c0_17, %c0_18], %46 {strides = array<i32>} : memref<2x32xf32, #tpu.memory_space<vmem>>, vector<2x32xf32>,
    %c0_19 = arith.constant 0 : index
    %c0_20 = arith.constant 0 : index
    %55 = vector.load %arg10[%c0_19, %c0_20] : memref<2x32xf32, #tpu.memory_space<vmem>>, vector<2x32xf32>
    tpu.vector_store %arg10[%c0_19, %c0_20], %49 {strides = array<i32>} : memref<2x32xf32, #tpu.memory_space<vmem>>, vector<2x32xf32>,
    %56 = arith.truncf %53 : vector<2x32xf32> to vector<2x32xbf16>
    %57 = arith.index_cast %c0_i32_2 : i32 to index
    %c0_21 = arith.constant 0 : index
    %c0_22 = arith.constant 0 : index
    %58 = vector.load %arg7[%57, %c0_21, %c0_22] : memref<8x2x32xbf16, #tpu.memory_space<vmem>>, vector<1x2x32xbf16>
    %59 = vector.shape_cast %58 : vector<1x2x32xbf16> to vector<2x32xbf16>
    %60 = vector.shape_cast %56 : vector<2x32xbf16> to vector<1x2x32xbf16>
    tpu.vector_store %arg7[%57, %c0_21, %c0_22], %60 {strides = array<i32>} : memref<8x2x32xbf16, #tpu.memory_space<vmem>>, vector<1x2x32xbf16>,
    %c7_i32 = arith.constant 7 : i32
    %61 = arith.subi %c7_i32, %c0_i32_2 : i32
    %c0_i32_23 = arith.constant 0 : i32
    %62 = arith.subi %c0_i32_23, %arg0 : i32
    %c8_i32_24 = arith.constant 8 : i32
    %63 = arith.muli %62, %c8_i32_24 : i32
    %64 = arith.addi %63, %61 : i32
    %65 = arith.index_cast %61 : i32 to index
    %c0_25 = arith.constant 0 : index
    %c0_26 = arith.constant 0 : index
    %66 = vector.load %arg2[%65, %c0_25, %c0_26] : memref<8x2x128xbf16, #tpu.memory_space<vmem>>, vector<1x2x128xbf16>
    %67 = vector.shape_cast %66 : vector<1x2x128xbf16> to vector<2x128xbf16>
    %68 = arith.extf %67 : vector<2x128xbf16> to vector<2x128xf32>
    %c0_27 = arith.constant 0 : index
    %c0_28 = arith.constant 0 : index
    %69 = vector.load %arg11[%c0_27, %c0_28] : memref<2x32xf32, #tpu.memory_space<vmem>>, vector<2x32xf32>
    %70 = arith.truncf %69 : vector<2x32xf32> to vector<2x32xbf16>
    %c0_29 = arith.constant 0 : index
    %c0_30 = arith.constant 0 : index
    %71 = vector.load %arg4[%c0_29, %c0_30] : memref<32x128xbf16, #tpu.memory_space<vmem>>, vector<32x128xbf16>
    %cst_31 = arith.constant dense<0.000000e+00> : vector<2x128xf32>
    %72 = tpu.matmul %70, %71, %cst_31 {dimension_numbers = #tpu.dot_dimension_numbers<[1], [0], [0], [1], [0, 0, 1, 1], [], []>} : vector<2x32xbf16>, vector<32x128xbf16>, vector<2x128xf32> -> vector<2x128xf32>
    %73 = arith.addf %68, %72 : vector<2x128xf32>
    %c0_32 = arith.constant 0 : index
    %c0_33 = arith.constant 0 : index
    %74 = vector.load %arg11[%c0_32, %c0_33] : memref<2x32xf32, #tpu.memory_space<vmem>>, vector<2x32xf32>
    %c0_34 = arith.constant 0 : index
    %c0_35 = arith.constant 0 : index
    %75 = vector.load %arg12[%c0_34, %c0_35] : memref<2x32xf32, #tpu.memory_space<vmem>>, vector<2x32xf32>
    %76 = vector.broadcast %64 : i32 to vector<2x1xi32>
    %77 = arith.cmpi slt, %76, %3 : vector<2x1xi32>
    %78 = vector.extract_strided_slice %73 {offsets = [0, 0], sizes = [2, 32], strides = [1, 1]} : vector<2x128xf32> to vector<2x32xf32>
    %79 = arith.negf %78 : vector<2x32xf32>
    %80 = math.exp %79 : vector<2x32xf32>
    %cst_36 = arith.constant 1.000000e+00 : f32
    %81 = vector.broadcast %cst_36 : f32 to vector<2x32xf32>
    %82 = arith.addf %81, %80 : vector<2x32xf32>
    %83 = arith.divf %81, %82 : vector<2x32xf32>
    %84 = vector.extract_strided_slice %73 {offsets = [0, 32], sizes = [2, 32], strides = [1, 1]} : vector<2x128xf32> to vector<2x32xf32>
    %85 = arith.negf %84 : vector<2x32xf32>
    %86 = math.exp %85 : vector<2x32xf32>
    %cst_37 = arith.constant 1.000000e+00 : f32
    %87 = vector.broadcast %cst_37 : f32 to vector<2x32xf32>
    %88 = arith.addf %87, %86 : vector<2x32xf32>
    %89 = arith.divf %87, %88 : vector<2x32xf32>
    %90 = vector.extract_strided_slice %73 {offsets = [0, 64], sizes = [2, 32], strides = [1, 1]} : vector<2x128xf32> to vector<2x32xf32>
    %91 = math.tanh %90 : vector<2x32xf32>
    %92 = vector.extract_strided_slice %73 {offsets = [0, 96], sizes = [2, 32], strides = [1, 1]} : vector<2x128xf32> to vector<2x32xf32>
    %93 = arith.negf %92 : vector<2x32xf32>
    %94 = math.exp %93 : vector<2x32xf32>
    %cst_38 = arith.constant 1.000000e+00 : f32
    %95 = vector.broadcast %cst_38 : f32 to vector<2x32xf32>
    %96 = arith.addf %95, %94 : vector<2x32xf32>
    %97 = arith.divf %95, %96 : vector<2x32xf32>
    %98 = arith.mulf %89, %75 : vector<2x32xf32>
    %99 = arith.mulf %83, %91 : vector<2x32xf32>
    %100 = arith.addf %98, %99 : vector<2x32xf32>
    %101 = math.tanh %100 : vector<2x32xf32>
    %102 = arith.mulf %97, %101 : vector<2x32xf32>
    %103 = vector.shape_cast %77 : vector<2x1xi1> to vector<2x1xi1>
    %104 = vector.broadcast %103 : vector<2x1xi1> to vector<2x32xi1>
    %105 = arith.select %104, %102, %74 : vector<2x32xi1>, vector<2x32xf32>
    %106 = vector.shape_cast %77 : vector<2x1xi1> to vector<2x1xi1>
    %107 = vector.broadcast %106 : vector<2x1xi1> to vector<2x32xi1>
    %108 = arith.select %107, %100, %75 : vector<2x32xi1>, vector<2x32xf32>
    %cst_39 = arith.constant 0.000000e+00 : f32
    %109 = vector.shape_cast %77 : vector<2x1xi1> to vector<2x1xi1>
    %110 = vector.broadcast %109 : vector<2x1xi1> to vector<2x32xi1>
    %111 = vector.broadcast %cst_39 : f32 to vector<2x32xf32>
    %112 = arith.select %110, %102, %111 : vector<2x32xi1>, vector<2x32xf32>
    %c0_40 = arith.constant 0 : index
    %c0_41 = arith.constant 0 : index
    %113 = vector.load %arg11[%c0_40, %c0_41] : memref<2x32xf32, #tpu.memory_space<vmem>>, vector<2x32xf32>
    tpu.vector_store %arg11[%c0_40, %c0_41], %105 {strides = array<i32>} : memref<2x32xf32, #tpu.memory_space<vmem>>, vector<2x32xf32>,
    %c0_42 = arith.constant 0 : index
    %c0_43 = arith.constant 0 : index
    %114 = vector.load %arg12[%c0_42, %c0_43] : memref<2x32xf32, #tpu.memory_space<vmem>>, vector<2x32xf32>
    tpu.vector_store %arg12[%c0_42, %c0_43], %108 {strides = array<i32>} : memref<2x32xf32, #tpu.memory_space<vmem>>, vector<2x32xf32>,
    %115 = arith.truncf %112 : vector<2x32xf32> to vector<2x32xbf16>
    %116 = arith.index_cast %61 : i32 to index
    %c0_44 = arith.constant 0 : index
    %c0_45 = arith.constant 0 : index
    %117 = vector.load %arg8[%116, %c0_44, %c0_45] : memref<8x2x32xbf16, #tpu.memory_space<vmem>>, vector<1x2x32xbf16>
    %118 = vector.shape_cast %117 : vector<1x2x32xbf16> to vector<2x32xbf16>
    %119 = vector.shape_cast %115 : vector<2x32xbf16> to vector<1x2x32xbf16>
    tpu.vector_store %arg8[%116, %c0_44, %c0_45], %119 {strides = array<i32>} : memref<8x2x32xbf16, #tpu.memory_space<vmem>>, vector<1x2x32xbf16>,
    %c1_i32 = arith.constant 1 : i32
    %c8_i32_46 = arith.constant 8 : i32
    %120 = arith.muli %arg0, %c8_i32_46 : i32
    %121 = arith.addi %120, %c1_i32 : i32
    %122 = arith.index_cast %c1_i32 : i32 to index
    %c0_47 = arith.constant 0 : index
    %c0_48 = arith.constant 0 : index
    %123 = vector.load %arg1[%122, %c0_47, %c0_48] : memref<8x2x128xbf16, #tpu.memory_space<vmem>>, vector<1x2x128xbf16>
    %124 = vector.shape_cast %123 : vector<1x2x128xbf16> to vector<2x128xbf16>
    %125 = arith.extf %124 : vector<2x128xbf16> to vector<2x128xf32>
    %c0_49 = arith.constant 0 : index
    %c0_50 = arith.constant 0 : index
    %126 = vector.load %arg9[%c0_49, %c0_50] : memref<2x32xf32, #tpu.memory_space<vmem>>, vector<2x32xf32>
    %127 = arith.truncf %126 : vector<2x32xf32> to vector<2x32xbf16>
    %c0_51 = arith.constant 0 : index
    %c0_52 = arith.constant 0 : index
    %128 = vector.load %arg3[%c0_51, %c0_52] : memref<32x128xbf16, #tpu.memory_space<vmem>>, vector<32x128xbf16>
    %cst_53 = arith.constant dense<0.000000e+00> : vector<2x128xf32>
    %129 = tpu.matmul %127, %128, %cst_53 {dimension_numbers = #tpu.dot_dimension_numbers<[1], [0], [0], [1], [0, 0, 1, 1], [], []>} : vector<2x32xbf16>, vector<32x128xbf16>, vector<2x128xf32> -> vector<2x128xf32>
    %130 = arith.addf %125, %129 : vector<2x128xf32>
    %c0_54 = arith.constant 0 : index
    %c0_55 = arith.constant 0 : index
    %131 = vector.load %arg9[%c0_54, %c0_55] : memref<2x32xf32, #tpu.memory_space<vmem>>, vector<2x32xf32>
    %c0_56 = arith.constant 0 : index
    %c0_57 = arith.constant 0 : index
    %132 = vector.load %arg10[%c0_56, %c0_57] : memref<2x32xf32, #tpu.memory_space<vmem>>, vector<2x32xf32>
    %133 = vector.broadcast %121 : i32 to vector<2x1xi32>
    %134 = arith.cmpi slt, %133, %3 : vector<2x1xi32>
    %135 = vector.extract_strided_slice %130 {offsets = [0, 0], sizes = [2, 32], strides = [1, 1]} : vector<2x128xf32> to vector<2x32xf32>
    %136 = arith.negf %135 : vector<2x32xf32>
    %137 = math.exp %136 : vector<2x32xf32>
    %cst_58 = arith.constant 1.000000e+00 : f32
    %138 = vector.broadcast %cst_58 : f32 to vector<2x32xf32>
    %139 = arith.addf %138, %137 : vector<2x32xf32>
    %140 = arith.divf %138, %139 : vector<2x32xf32>
    %141 = vector.extract_strided_slice %130 {offsets = [0, 32], sizes = [2, 32], strides = [1, 1]} : vector<2x128xf32> to vector<2x32xf32>
    %142 = arith.negf %141 : vector<2x32xf32>
    %143 = math.exp %142 : vector<2x32xf32>
    %cst_59 = arith.constant 1.000000e+00 : f32
    %144 = vector.broadcast %cst_59 : f32 to vector<2x32xf32>
    %145 = arith.addf %144, %143 : vector<2x32xf32>
    %146 = arith.divf %144, %145 : vector<2x32xf32>
    %147 = vector.extract_strided_slice %130 {offsets = [0, 64], sizes = [2, 32], strides = [1, 1]} : vector<2x128xf32> to vector<2x32xf32>
    %148 = math.tanh %147 : vector<2x32xf32>
    %149 = vector.extract_strided_slice %130 {offsets = [0, 96], sizes = [2, 32], strides = [1, 1]} : vector<2x128xf32> to vector<2x32xf32>
    %150 = arith.negf %149 : vector<2x32xf32>
    %151 = math.exp %150 : vector<2x32xf32>
    %cst_60 = arith.constant 1.000000e+00 : f32
    %152 = vector.broadcast %cst_60 : f32 to vector<2x32xf32>
    %153 = arith.addf %152, %151 : vector<2x32xf32>
    %154 = arith.divf %152, %153 : vector<2x32xf32>
    %155 = arith.mulf %146, %132 : vector<2x32xf32>
    %156 = arith.mulf %140, %148 : vector<2x32xf32>
    %157 = arith.addf %155, %156 : vector<2x32xf32>
    %158 = math.tanh %157 : vector<2x32xf32>
    %159 = arith.mulf %154, %158 : vector<2x32xf32>
    %160 = vector.shape_cast %134 : vector<2x1xi1> to vector<2x1xi1>
    %161 = vector.broadcast %160 : vector<2x1xi1> to vector<2x32xi1>
    %162 = arith.select %161, %159, %131 : vector<2x32xi1>, vector<2x32xf32>
    %163 = vector.shape_cast %134 : vector<2x1xi1> to vector<2x1xi1>
    %164 = vector.broadcast %163 : vector<2x1xi1> to vector<2x32xi1>
    %165 = arith.select %164, %157, %132 : vector<2x32xi1>, vector<2x32xf32>
    %cst_61 = arith.constant 0.000000e+00 : f32
    %166 = vector.shape_cast %134 : vector<2x1xi1> to vector<2x1xi1>
    %167 = vector.broadcast %166 : vector<2x1xi1> to vector<2x32xi1>
    %168 = vector.broadcast %cst_61 : f32 to vector<2x32xf32>
    %169 = arith.select %167, %159, %168 : vector<2x32xi1>, vector<2x32xf32>
    %c0_62 = arith.constant 0 : index
    %c0_63 = arith.constant 0 : index
    %170 = vector.load %arg9[%c0_62, %c0_63] : memref<2x32xf32, #tpu.memory_space<vmem>>, vector<2x32xf32>
    tpu.vector_store %arg9[%c0_62, %c0_63], %162 {strides = array<i32>} : memref<2x32xf32, #tpu.memory_space<vmem>>, vector<2x32xf32>,
    %c0_64 = arith.constant 0 : index
    %c0_65 = arith.constant 0 : index
    %171 = vector.load %arg10[%c0_64, %c0_65] : memref<2x32xf32, #tpu.memory_space<vmem>>, vector<2x32xf32>
    tpu.vector_store %arg10[%c0_64, %c0_65], %165 {strides = array<i32>} : memref<2x32xf32, #tpu.memory_space<vmem>>, vector<2x32xf32>,
    %172 = arith.truncf %169 : vector<2x32xf32> to vector<2x32xbf16>
    %173 = arith.index_cast %c1_i32 : i32 to index
    %c0_66 = arith.constant 0 : index
    %c0_67 = arith.constant 0 : index
    %174 = vector.load %arg7[%173, %c0_66, %c0_67] : memref<8x2x32xbf16, #tpu.memory_space<vmem>>, vector<1x2x32xbf16>
    %175 = vector.shape_cast %174 : vector<1x2x32xbf16> to vector<2x32xbf16>
    %176 = vector.shape_cast %172 : vector<2x32xbf16> to vector<1x2x32xbf16>
    tpu.vector_store %arg7[%173, %c0_66, %c0_67], %176 {strides = array<i32>} : memref<8x2x32xbf16, #tpu.memory_space<vmem>>, vector<1x2x32xbf16>,
    %c7_i32_68 = arith.constant 7 : i32
    %177 = arith.subi %c7_i32_68, %c1_i32 : i32
    %c0_i32_69 = arith.constant 0 : i32
    %178 = arith.subi %c0_i32_69, %arg0 : i32
    %c8_i32_70 = arith.constant 8 : i32
    %179 = arith.muli %178, %c8_i32_70 : i32
    %180 = arith.addi %179, %177 : i32
    %181 = arith.index_cast %177 : i32 to index
    %c0_71 = arith.constant 0 : index
    %c0_72 = arith.constant 0 : index
    %182 = vector.load %arg2[%181, %c0_71, %c0_72] : memref<8x2x128xbf16, #tpu.memory_space<vmem>>, vector<1x2x128xbf16>
    %183 = vector.shape_cast %182 : vector<1x2x128xbf16> to vector<2x128xbf16>
    %184 = arith.extf %183 : vector<2x128xbf16> to vector<2x128xf32>
    %c0_73 = arith.constant 0 : index
    %c0_74 = arith.constant 0 : index
    %185 = vector.load %arg11[%c0_73, %c0_74] : memref<2x32xf32, #tpu.memory_space<vmem>>, vector<2x32xf32>
    %186 = arith.truncf %185 : vector<2x32xf32> to vector<2x32xbf16>
    %c0_75 = arith.constant 0 : index
    %c0_76 = arith.constant 0 : index
    %187 = vector.load %arg4[%c0_75, %c0_76] : memref<32x128xbf16, #tpu.memory_space<vmem>>, vector<32x128xbf16>
    %cst_77 = arith.constant dense<0.000000e+00> : vector<2x128xf32>
    %188 = tpu.matmul %186, %187, %cst_77 {dimension_numbers = #tpu.dot_dimension_numbers<[1], [0], [0], [1], [0, 0, 1, 1], [], []>} : vector<2x32xbf16>, vector<32x128xbf16>, vector<2x128xf32> -> vector<2x128xf32>
    %189 = arith.addf %184, %188 : vector<2x128xf32>
    %c0_78 = arith.constant 0 : index
    %c0_79 = arith.constant 0 : index
    %190 = vector.load %arg11[%c0_78, %c0_79] : memref<2x32xf32, #tpu.memory_space<vmem>>, vector<2x32xf32>
    %c0_80 = arith.constant 0 : index
    %c0_81 = arith.constant 0 : index
    %191 = vector.load %arg12[%c0_80, %c0_81] : memref<2x32xf32, #tpu.memory_space<vmem>>, vector<2x32xf32>
    %192 = vector.broadcast %180 : i32 to vector<2x1xi32>
    %193 = arith.cmpi slt, %192, %3 : vector<2x1xi32>
    %194 = vector.extract_strided_slice %189 {offsets = [0, 0], sizes = [2, 32], strides = [1, 1]} : vector<2x128xf32> to vector<2x32xf32>
    %195 = arith.negf %194 : vector<2x32xf32>
    %196 = math.exp %195 : vector<2x32xf32>
    %cst_82 = arith.constant 1.000000e+00 : f32
    %197 = vector.broadcast %cst_82 : f32 to vector<2x32xf32>
    %198 = arith.addf %197, %196 : vector<2x32xf32>
    %199 = arith.divf %197, %198 : vector<2x32xf32>
    %200 = vector.extract_strided_slice %189 {offsets = [0, 32], sizes = [2, 32], strides = [1, 1]} : vector<2x128xf32> to vector<2x32xf32>
    %201 = arith.negf %200 : vector<2x32xf32>
    %202 = math.exp %201 : vector<2x32xf32>
    %cst_83 = arith.constant 1.000000e+00 : f32
    %203 = vector.broadcast %cst_83 : f32 to vector<2x32xf32>
    %204 = arith.addf %203, %202 : vector<2x32xf32>
    %205 = arith.divf %203, %204 : vector<2x32xf32>
    %206 = vector.extract_strided_slice %189 {offsets = [0, 64], sizes = [2, 32], strides = [1, 1]} : vector<2x128xf32> to vector<2x32xf32>
    %207 = math.tanh %206 : vector<2x32xf32>
    %208 = vector.extract_strided_slice %189 {offsets = [0, 96], sizes = [2, 32], strides = [1, 1]} : vector<2x128xf32> to vector<2x32xf32>
    %209 = arith.negf %208 : vector<2x32xf32>
    %210 = math.exp %209 : vector<2x32xf32>
    %cst_84 = arith.constant 1.000000e+00 : f32
    %211 = vector.broadcast %cst_84 : f32 to vector<2x32xf32>
    %212 = arith.addf %211, %210 : vector<2x32xf32>
    %213 = arith.divf %211, %212 : vector<2x32xf32>
    %214 = arith.mulf %205, %191 : vector<2x32xf32>
    %215 = arith.mulf %199, %207 : vector<2x32xf32>
    %216 = arith.addf %214, %215 : vector<2x32xf32>
    %217 = math.tanh %216 : vector<2x32xf32>
    %218 = arith.mulf %213, %217 : vector<2x32xf32>
    %219 = vector.shape_cast %193 : vector<2x1xi1> to vector<2x1xi1>
    %220 = vector.broadcast %219 : vector<2x1xi1> to vector<2x32xi1>
    %221 = arith.select %220, %218, %190 : vector<2x32xi1>, vector<2x32xf32>
    %222 = vector.shape_cast %193 : vector<2x1xi1> to vector<2x1xi1>
    %223 = vector.broadcast %222 : vector<2x1xi1> to vector<2x32xi1>
    %224 = arith.select %223, %216, %191 : vector<2x32xi1>, vector<2x32xf32>
    %cst_85 = arith.constant 0.000000e+00 : f32
    %225 = vector.shape_cast %193 : vector<2x1xi1> to vector<2x1xi1>
    %226 = vector.broadcast %225 : vector<2x1xi1> to vector<2x32xi1>
    %227 = vector.broadcast %cst_85 : f32 to vector<2x32xf32>
    %228 = arith.select %226, %218, %227 : vector<2x32xi1>, vector<2x32xf32>
    %c0_86 = arith.constant 0 : index
    %c0_87 = arith.constant 0 : index
    %229 = vector.load %arg11[%c0_86, %c0_87] : memref<2x32xf32, #tpu.memory_space<vmem>>, vector<2x32xf32>
    tpu.vector_store %arg11[%c0_86, %c0_87], %221 {strides = array<i32>} : memref<2x32xf32, #tpu.memory_space<vmem>>, vector<2x32xf32>,
    %c0_88 = arith.constant 0 : index
    %c0_89 = arith.constant 0 : index
    %230 = vector.load %arg12[%c0_88, %c0_89] : memref<2x32xf32, #tpu.memory_space<vmem>>, vector<2x32xf32>
    tpu.vector_store %arg12[%c0_88, %c0_89], %224 {strides = array<i32>} : memref<2x32xf32, #tpu.memory_space<vmem>>, vector<2x32xf32>,
    %231 = arith.truncf %228 : vector<2x32xf32> to vector<2x32xbf16>
    %232 = arith.index_cast %177 : i32 to index
    %c0_90 = arith.constant 0 : index
    %c0_91 = arith.constant 0 : index
    %233 = vector.load %arg8[%232, %c0_90, %c0_91] : memref<8x2x32xbf16, #tpu.memory_space<vmem>>, vector<1x2x32xbf16>
    %234 = vector.shape_cast %233 : vector<1x2x32xbf16> to vector<2x32xbf16>
    %235 = vector.shape_cast %231 : vector<2x32xbf16> to vector<1x2x32xbf16>
    tpu.vector_store %arg8[%232, %c0_90, %c0_91], %235 {strides = array<i32>} : memref<8x2x32xbf16, #tpu.memory_space<vmem>>, vector<1x2x32xbf16>,
    %c2_i32 = arith.constant 2 : i32
    %c8_i32_92 = arith.constant 8 : i32
    %236 = arith.muli %arg0, %c8_i32_92 : i32
    %237 = arith.addi %236, %c2_i32 : i32
    %238 = arith.index_cast %c2_i32 : i32 to index
    %c0_93 = arith.constant 0 : index
    %c0_94 = arith.constant 0 : index
    %239 = vector.load %arg1[%238, %c0_93, %c0_94] : memref<8x2x128xbf16, #tpu.memory_space<vmem>>, vector<1x2x128xbf16>
    %240 = vector.shape_cast %239 : vector<1x2x128xbf16> to vector<2x128xbf16>
    %241 = arith.extf %240 : vector<2x128xbf16> to vector<2x128xf32>
    %c0_95 = arith.constant 0 : index
    %c0_96 = arith.constant 0 : index
    %242 = vector.load %arg9[%c0_95, %c0_96] : memref<2x32xf32, #tpu.memory_space<vmem>>, vector<2x32xf32>
    %243 = arith.truncf %242 : vector<2x32xf32> to vector<2x32xbf16>
    %c0_97 = arith.constant 0 : index
    %c0_98 = arith.constant 0 : index
    %244 = vector.load %arg3[%c0_97, %c0_98] : memref<32x128xbf16, #tpu.memory_space<vmem>>, vector<32x128xbf16>
    %cst_99 = arith.constant dense<0.000000e+00> : vector<2x128xf32>
    %245 = tpu.matmul %243, %244, %cst_99 {dimension_numbers = #tpu.dot_dimension_numbers<[1], [0], [0], [1], [0, 0, 1, 1], [], []>} : vector<2x32xbf16>, vector<32x128xbf16>, vector<2x128xf32> -> vector<2x128xf32>
    %246 = arith.addf %241, %245 : vector<2x128xf32>
    %c0_100 = arith.constant 0 : index
    %c0_101 = arith.constant 0 : index
    %247 = vector.load %arg9[%c0_100, %c0_101] : memref<2x32xf32, #tpu.memory_space<vmem>>, vector<2x32xf32>
    %c0_102 = arith.constant 0 : index
    %c0_103 = arith.constant 0 : index
    %248 = vector.load %arg10[%c0_102, %c0_103] : memref<2x32xf32, #tpu.memory_space<vmem>>, vector<2x32xf32>
    %249 = vector.broadcast %237 : i32 to vector<2x1xi32>
    %250 = arith.cmpi slt, %249, %3 : vector<2x1xi32>
    %251 = vector.extract_strided_slice %246 {offsets = [0, 0], sizes = [2, 32], strides = [1, 1]} : vector<2x128xf32> to vector<2x32xf32>
    %252 = arith.negf %251 : vector<2x32xf32>
    %253 = math.exp %252 : vector<2x32xf32>
    %cst_104 = arith.constant 1.000000e+00 : f32
    %254 = vector.broadcast %cst_104 : f32 to vector<2x32xf32>
    %255 = arith.addf %254, %253 : vector<2x32xf32>
    %256 = arith.divf %254, %255 : vector<2x32xf32>
    %257 = vector.extract_strided_slice %246 {offsets = [0, 32], sizes = [2, 32], strides = [1, 1]} : vector<2x128xf32> to vector<2x32xf32>
    %258 = arith.negf %257 : vector<2x32xf32>
    %259 = math.exp %258 : vector<2x32xf32>
    %cst_105 = arith.constant 1.000000e+00 : f32
    %260 = vector.broadcast %cst_105 : f32 to vector<2x32xf32>
    %261 = arith.addf %260, %259 : vector<2x32xf32>
    %262 = arith.divf %260, %261 : vector<2x32xf32>
    %263 = vector.extract_strided_slice %246 {offsets = [0, 64], sizes = [2, 32], strides = [1, 1]} : vector<2x128xf32> to vector<2x32xf32>
    %264 = math.tanh %263 : vector<2x32xf32>
    %265 = vector.extract_strided_slice %246 {offsets = [0, 96], sizes = [2, 32], strides = [1, 1]} : vector<2x128xf32> to vector<2x32xf32>
    %266 = arith.negf %265 : vector<2x32xf32>
    %267 = math.exp %266 : vector<2x32xf32>
    %cst_106 = arith.constant 1.000000e+00 : f32
    %268 = vector.broadcast %cst_106 : f32 to vector<2x32xf32>
    %269 = arith.addf %268, %267 : vector<2x32xf32>
    %270 = arith.divf %268, %269 : vector<2x32xf32>
    %271 = arith.mulf %262, %248 : vector<2x32xf32>
    %272 = arith.mulf %256, %264 : vector<2x32xf32>
    %273 = arith.addf %271, %272 : vector<2x32xf32>
    %274 = math.tanh %273 : vector<2x32xf32>
    %275 = arith.mulf %270, %274 : vector<2x32xf32>
    %276 = vector.shape_cast %250 : vector<2x1xi1> to vector<2x1xi1>
    %277 = vector.broadcast %276 : vector<2x1xi1> to vector<2x32xi1>
    %278 = arith.select %277, %275, %247 : vector<2x32xi1>, vector<2x32xf32>
    %279 = vector.shape_cast %250 : vector<2x1xi1> to vector<2x1xi1>
    %280 = vector.broadcast %279 : vector<2x1xi1> to vector<2x32xi1>
    %281 = arith.select %280, %273, %248 : vector<2x32xi1>, vector<2x32xf32>
    %cst_107 = arith.constant 0.000000e+00 : f32
    %282 = vector.shape_cast %250 : vector<2x1xi1> to vector<2x1xi1>
    %283 = vector.broadcast %282 : vector<2x1xi1> to vector<2x32xi1>
    %284 = vector.broadcast %cst_107 : f32 to vector<2x32xf32>
    %285 = arith.select %283, %275, %284 : vector<2x32xi1>, vector<2x32xf32>
    %c0_108 = arith.constant 0 : index
    %c0_109 = arith.constant 0 : index
    %286 = vector.load %arg9[%c0_108, %c0_109] : memref<2x32xf32, #tpu.memory_space<vmem>>, vector<2x32xf32>
    tpu.vector_store %arg9[%c0_108, %c0_109], %278 {strides = array<i32>} : memref<2x32xf32, #tpu.memory_space<vmem>>, vector<2x32xf32>,
    %c0_110 = arith.constant 0 : index
    %c0_111 = arith.constant 0 : index
    %287 = vector.load %arg10[%c0_110, %c0_111] : memref<2x32xf32, #tpu.memory_space<vmem>>, vector<2x32xf32>
    tpu.vector_store %arg10[%c0_110, %c0_111], %281 {strides = array<i32>} : memref<2x32xf32, #tpu.memory_space<vmem>>, vector<2x32xf32>,
    %288 = arith.truncf %285 : vector<2x32xf32> to vector<2x32xbf16>
    %289 = arith.index_cast %c2_i32 : i32 to index
    %c0_112 = arith.constant 0 : index
    %c0_113 = arith.constant 0 : index
    %290 = vector.load %arg7[%289, %c0_112, %c0_113] : memref<8x2x32xbf16, #tpu.memory_space<vmem>>, vector<1x2x32xbf16>
    %291 = vector.shape_cast %290 : vector<1x2x32xbf16> to vector<2x32xbf16>
    %292 = vector.shape_cast %288 : vector<2x32xbf16> to vector<1x2x32xbf16>
    tpu.vector_store %arg7[%289, %c0_112, %c0_113], %292 {strides = array<i32>} : memref<8x2x32xbf16, #tpu.memory_space<vmem>>, vector<1x2x32xbf16>,
    %c7_i32_114 = arith.constant 7 : i32
    %293 = arith.subi %c7_i32_114, %c2_i32 : i32
    %c0_i32_115 = arith.constant 0 : i32
    %294 = arith.subi %c0_i32_115, %arg0 : i32
    %c8_i32_116 = arith.constant 8 : i32
    %295 = arith.muli %294, %c8_i32_116 : i32
    %296 = arith.addi %295, %293 : i32
    %297 = arith.index_cast %293 : i32 to index
    %c0_117 = arith.constant 0 : index
    %c0_118 = arith.constant 0 : index
    %298 = vector.load %arg2[%297, %c0_117, %c0_118] : memref<8x2x128xbf16, #tpu.memory_space<vmem>>, vector<1x2x128xbf16>
    %299 = vector.shape_cast %298 : vector<1x2x128xbf16> to vector<2x128xbf16>
    %300 = arith.extf %299 : vector<2x128xbf16> to vector<2x128xf32>
    %c0_119 = arith.constant 0 : index
    %c0_120 = arith.constant 0 : index
    %301 = vector.load %arg11[%c0_119, %c0_120] : memref<2x32xf32, #tpu.memory_space<vmem>>, vector<2x32xf32>
    %302 = arith.truncf %301 : vector<2x32xf32> to vector<2x32xbf16>
    %c0_121 = arith.constant 0 : index
    %c0_122 = arith.constant 0 : index
    %303 = vector.load %arg4[%c0_121, %c0_122] : memref<32x128xbf16, #tpu.memory_space<vmem>>, vector<32x128xbf16>
    %cst_123 = arith.constant dense<0.000000e+00> : vector<2x128xf32>
    %304 = tpu.matmul %302, %303, %cst_123 {dimension_numbers = #tpu.dot_dimension_numbers<[1], [0], [0], [1], [0, 0, 1, 1], [], []>} : vector<2x32xbf16>, vector<32x128xbf16>, vector<2x128xf32> -> vector<2x128xf32>
    %305 = arith.addf %300, %304 : vector<2x128xf32>
    %c0_124 = arith.constant 0 : index
    %c0_125 = arith.constant 0 : index
    %306 = vector.load %arg11[%c0_124, %c0_125] : memref<2x32xf32, #tpu.memory_space<vmem>>, vector<2x32xf32>
    %c0_126 = arith.constant 0 : index
    %c0_127 = arith.constant 0 : index
    %307 = vector.load %arg12[%c0_126, %c0_127] : memref<2x32xf32, #tpu.memory_space<vmem>>, vector<2x32xf32>
    %308 = vector.broadcast %296 : i32 to vector<2x1xi32>
    %309 = arith.cmpi slt, %308, %3 : vector<2x1xi32>
    %310 = vector.extract_strided_slice %305 {offsets = [0, 0], sizes = [2, 32], strides = [1, 1]} : vector<2x128xf32> to vector<2x32xf32>
    %311 = arith.negf %310 : vector<2x32xf32>
    %312 = math.exp %311 : vector<2x32xf32>
    %cst_128 = arith.constant 1.000000e+00 : f32
    %313 = vector.broadcast %cst_128 : f32 to vector<2x32xf32>
    %314 = arith.addf %313, %312 : vector<2x32xf32>
    %315 = arith.divf %313, %314 : vector<2x32xf32>
    %316 = vector.extract_strided_slice %305 {offsets = [0, 32], sizes = [2, 32], strides = [1, 1]} : vector<2x128xf32> to vector<2x32xf32>
    %317 = arith.negf %316 : vector<2x32xf32>
    %318 = math.exp %317 : vector<2x32xf32>
    %cst_129 = arith.constant 1.000000e+00 : f32
    %319 = vector.broadcast %cst_129 : f32 to vector<2x32xf32>
    %320 = arith.addf %319, %318 : vector<2x32xf32>
    %321 = arith.divf %319, %320 : vector<2x32xf32>
    %322 = vector.extract_strided_slice %305 {offsets = [0, 64], sizes = [2, 32], strides = [1, 1]} : vector<2x128xf32> to vector<2x32xf32>
    %323 = math.tanh %322 : vector<2x32xf32>
    %324 = vector.extract_strided_slice %305 {offsets = [0, 96], sizes = [2, 32], strides = [1, 1]} : vector<2x128xf32> to vector<2x32xf32>
    %325 = arith.negf %324 : vector<2x32xf32>
    %326 = math.exp %325 : vector<2x32xf32>
    %cst_130 = arith.constant 1.000000e+00 : f32
    %327 = vector.broadcast %cst_130 : f32 to vector<2x32xf32>
    %328 = arith.addf %327, %326 : vector<2x32xf32>
    %329 = arith.divf %327, %328 : vector<2x32xf32>
    %330 = arith.mulf %321, %307 : vector<2x32xf32>
    %331 = arith.mulf %315, %323 : vector<2x32xf32>
    %332 = arith.addf %330, %331 : vector<2x32xf32>
    %333 = math.tanh %332 : vector<2x32xf32>
    %334 = arith.mulf %329, %333 : vector<2x32xf32>
    %335 = vector.shape_cast %309 : vector<2x1xi1> to vector<2x1xi1>
    %336 = vector.broadcast %335 : vector<2x1xi1> to vector<2x32xi1>
    %337 = arith.select %336, %334, %306 : vector<2x32xi1>, vector<2x32xf32>
    %338 = vector.shape_cast %309 : vector<2x1xi1> to vector<2x1xi1>
    %339 = vector.broadcast %338 : vector<2x1xi1> to vector<2x32xi1>
    %340 = arith.select %339, %332, %307 : vector<2x32xi1>, vector<2x32xf32>
    %cst_131 = arith.constant 0.000000e+00 : f32
    %341 = vector.shape_cast %309 : vector<2x1xi1> to vector<2x1xi1>
    %342 = vector.broadcast %341 : vector<2x1xi1> to vector<2x32xi1>
    %343 = vector.broadcast %cst_131 : f32 to vector<2x32xf32>
    %344 = arith.select %342, %334, %343 : vector<2x32xi1>, vector<2x32xf32>
    %c0_132 = arith.constant 0 : index
    %c0_133 = arith.constant 0 : index
    %345 = vector.load %arg11[%c0_132, %c0_133] : memref<2x32xf32, #tpu.memory_space<vmem>>, vector<2x32xf32>
    tpu.vector_store %arg11[%c0_132, %c0_133], %337 {strides = array<i32>} : memref<2x32xf32, #tpu.memory_space<vmem>>, vector<2x32xf32>,
    %c0_134 = arith.constant 0 : index
    %c0_135 = arith.constant 0 : index
    %346 = vector.load %arg12[%c0_134, %c0_135] : memref<2x32xf32, #tpu.memory_space<vmem>>, vector<2x32xf32>
    tpu.vector_store %arg12[%c0_134, %c0_135], %340 {strides = array<i32>} : memref<2x32xf32, #tpu.memory_space<vmem>>, vector<2x32xf32>,
    %347 = arith.truncf %344 : vector<2x32xf32> to vector<2x32xbf16>
    %348 = arith.index_cast %293 : i32 to index
    %c0_136 = arith.constant 0 : index
    %c0_137 = arith.constant 0 : index
    %349 = vector.load %arg8[%348, %c0_136, %c0_137] : memref<8x2x32xbf16, #tpu.memory_space<vmem>>, vector<1x2x32xbf16>
    %350 = vector.shape_cast %349 : vector<1x2x32xbf16> to vector<2x32xbf16>
    %351 = vector.shape_cast %347 : vector<2x32xbf16> to vector<1x2x32xbf16>
    tpu.vector_store %arg8[%348, %c0_136, %c0_137], %351 {strides = array<i32>} : memref<8x2x32xbf16, #tpu.memory_space<vmem>>, vector<1x2x32xbf16>,
    %c3_i32 = arith.constant 3 : i32
    %c8_i32_138 = arith.constant 8 : i32
    %352 = arith.muli %arg0, %c8_i32_138 : i32
    %353 = arith.addi %352, %c3_i32 : i32
    %354 = arith.index_cast %c3_i32 : i32 to index
    %c0_139 = arith.constant 0 : index
    %c0_140 = arith.constant 0 : index
    %355 = vector.load %arg1[%354, %c0_139, %c0_140] : memref<8x2x128xbf16, #tpu.memory_space<vmem>>, vector<1x2x128xbf16>
    %356 = vector.shape_cast %355 : vector<1x2x128xbf16> to vector<2x128xbf16>
    %357 = arith.extf %356 : vector<2x128xbf16> to vector<2x128xf32>
    %c0_141 = arith.constant 0 : index
    %c0_142 = arith.constant 0 : index
    %358 = vector.load %arg9[%c0_141, %c0_142] : memref<2x32xf32, #tpu.memory_space<vmem>>, vector<2x32xf32>
    %359 = arith.truncf %358 : vector<2x32xf32> to vector<2x32xbf16>
    %c0_143 = arith.constant 0 : index
    %c0_144 = arith.constant 0 : index
    %360 = vector.load %arg3[%c0_143, %c0_144] : memref<32x128xbf16, #tpu.memory_space<vmem>>, vector<32x128xbf16>
    %cst_145 = arith.constant dense<0.000000e+00> : vector<2x128xf32>
    %361 = tpu.matmul %359, %360, %cst_145 {dimension_numbers = #tpu.dot_dimension_numbers<[1], [0], [0], [1], [0, 0, 1, 1], [], []>} : vector<2x32xbf16>, vector<32x128xbf16>, vector<2x128xf32> -> vector<2x128xf32>
    %362 = arith.addf %357, %361 : vector<2x128xf32>
    %c0_146 = arith.constant 0 : index
    %c0_147 = arith.constant 0 : index
    %363 = vector.load %arg9[%c0_146, %c0_147] : memref<2x32xf32, #tpu.memory_space<vmem>>, vector<2x32xf32>
    %c0_148 = arith.constant 0 : index
    %c0_149 = arith.constant 0 : index
    %364 = vector.load %arg10[%c0_148, %c0_149] : memref<2x32xf32, #tpu.memory_space<vmem>>, vector<2x32xf32>
    %365 = vector.broadcast %353 : i32 to vector<2x1xi32>
    %366 = arith.cmpi slt, %365, %3 : vector<2x1xi32>
    %367 = vector.extract_strided_slice %362 {offsets = [0, 0], sizes = [2, 32], strides = [1, 1]} : vector<2x128xf32> to vector<2x32xf32>
    %368 = arith.negf %367 : vector<2x32xf32>
    %369 = math.exp %368 : vector<2x32xf32>
    %cst_150 = arith.constant 1.000000e+00 : f32
    %370 = vector.broadcast %cst_150 : f32 to vector<2x32xf32>
    %371 = arith.addf %370, %369 : vector<2x32xf32>
    %372 = arith.divf %370, %371 : vector<2x32xf32>
    %373 = vector.extract_strided_slice %362 {offsets = [0, 32], sizes = [2, 32], strides = [1, 1]} : vector<2x128xf32> to vector<2x32xf32>
    %374 = arith.negf %373 : vector<2x32xf32>
    %375 = math.exp %374 : vector<2x32xf32>
    %cst_151 = arith.constant 1.000000e+00 : f32
    %376 = vector.broadcast %cst_151 : f32 to vector<2x32xf32>
    %377 = arith.addf %376, %375 : vector<2x32xf32>
    %378 = arith.divf %376, %377 : vector<2x32xf32>
    %379 = vector.extract_strided_slice %362 {offsets = [0, 64], sizes = [2, 32], strides = [1, 1]} : vector<2x128xf32> to vector<2x32xf32>
    %380 = math.tanh %379 : vector<2x32xf32>
    %381 = vector.extract_strided_slice %362 {offsets = [0, 96], sizes = [2, 32], strides = [1, 1]} : vector<2x128xf32> to vector<2x32xf32>
    %382 = arith.negf %381 : vector<2x32xf32>
    %383 = math.exp %382 : vector<2x32xf32>
    %cst_152 = arith.constant 1.000000e+00 : f32
    %384 = vector.broadcast %cst_152 : f32 to vector<2x32xf32>
    %385 = arith.addf %384, %383 : vector<2x32xf32>
    %386 = arith.divf %384, %385 : vector<2x32xf32>
    %387 = arith.mulf %378, %364 : vector<2x32xf32>
    %388 = arith.mulf %372, %380 : vector<2x32xf32>
    %389 = arith.addf %387, %388 : vector<2x32xf32>
    %390 = math.tanh %389 : vector<2x32xf32>
    %391 = arith.mulf %386, %390 : vector<2x32xf32>
    %392 = vector.shape_cast %366 : vector<2x1xi1> to vector<2x1xi1>
    %393 = vector.broadcast %392 : vector<2x1xi1> to vector<2x32xi1>
    %394 = arith.select %393, %391, %363 : vector<2x32xi1>, vector<2x32xf32>
    %395 = vector.shape_cast %366 : vector<2x1xi1> to vector<2x1xi1>
    %396 = vector.broadcast %395 : vector<2x1xi1> to vector<2x32xi1>
    %397 = arith.select %396, %389, %364 : vector<2x32xi1>, vector<2x32xf32>
    %cst_153 = arith.constant 0.000000e+00 : f32
    %398 = vector.shape_cast %366 : vector<2x1xi1> to vector<2x1xi1>
    %399 = vector.broadcast %398 : vector<2x1xi1> to vector<2x32xi1>
    %400 = vector.broadcast %cst_153 : f32 to vector<2x32xf32>
    %401 = arith.select %399, %391, %400 : vector<2x32xi1>, vector<2x32xf32>
    %c0_154 = arith.constant 0 : index
    %c0_155 = arith.constant 0 : index
    %402 = vector.load %arg9[%c0_154, %c0_155] : memref<2x32xf32, #tpu.memory_space<vmem>>, vector<2x32xf32>
    tpu.vector_store %arg9[%c0_154, %c0_155], %394 {strides = array<i32>} : memref<2x32xf32, #tpu.memory_space<vmem>>, vector<2x32xf32>,
    %c0_156 = arith.constant 0 : index
    %c0_157 = arith.constant 0 : index
    %403 = vector.load %arg10[%c0_156, %c0_157] : memref<2x32xf32, #tpu.memory_space<vmem>>, vector<2x32xf32>
    tpu.vector_store %arg10[%c0_156, %c0_157], %397 {strides = array<i32>} : memref<2x32xf32, #tpu.memory_space<vmem>>, vector<2x32xf32>,
    %404 = arith.truncf %401 : vector<2x32xf32> to vector<2x32xbf16>
    %405 = arith.index_cast %c3_i32 : i32 to index
    %c0_158 = arith.constant 0 : index
    %c0_159 = arith.constant 0 : index
    %406 = vector.load %arg7[%405, %c0_158, %c0_159] : memref<8x2x32xbf16, #tpu.memory_space<vmem>>, vector<1x2x32xbf16>
    %407 = vector.shape_cast %406 : vector<1x2x32xbf16> to vector<2x32xbf16>
    %408 = vector.shape_cast %404 : vector<2x32xbf16> to vector<1x2x32xbf16>
    tpu.vector_store %arg7[%405, %c0_158, %c0_159], %408 {strides = array<i32>} : memref<8x2x32xbf16, #tpu.memory_space<vmem>>, vector<1x2x32xbf16>,
    %c7_i32_160 = arith.constant 7 : i32
    %409 = arith.subi %c7_i32_160, %c3_i32 : i32
    %c0_i32_161 = arith.constant 0 : i32
    %410 = arith.subi %c0_i32_161, %arg0 : i32
    %c8_i32_162 = arith.constant 8 : i32
    %411 = arith.muli %410, %c8_i32_162 : i32
    %412 = arith.addi %411, %409 : i32
    %413 = arith.index_cast %409 : i32 to index
    %c0_163 = arith.constant 0 : index
    %c0_164 = arith.constant 0 : index
    %414 = vector.load %arg2[%413, %c0_163, %c0_164] : memref<8x2x128xbf16, #tpu.memory_space<vmem>>, vector<1x2x128xbf16>
    %415 = vector.shape_cast %414 : vector<1x2x128xbf16> to vector<2x128xbf16>
    %416 = arith.extf %415 : vector<2x128xbf16> to vector<2x128xf32>
    %c0_165 = arith.constant 0 : index
    %c0_166 = arith.constant 0 : index
    %417 = vector.load %arg11[%c0_165, %c0_166] : memref<2x32xf32, #tpu.memory_space<vmem>>, vector<2x32xf32>
    %418 = arith.truncf %417 : vector<2x32xf32> to vector<2x32xbf16>
    %c0_167 = arith.constant 0 : index
    %c0_168 = arith.constant 0 : index
    %419 = vector.load %arg4[%c0_167, %c0_168] : memref<32x128xbf16, #tpu.memory_space<vmem>>, vector<32x128xbf16>
    %cst_169 = arith.constant dense<0.000000e+00> : vector<2x128xf32>
    %420 = tpu.matmul %418, %419, %cst_169 {dimension_numbers = #tpu.dot_dimension_numbers<[1], [0], [0], [1], [0, 0, 1, 1], [], []>} : vector<2x32xbf16>, vector<32x128xbf16>, vector<2x128xf32> -> vector<2x128xf32>
    %421 = arith.addf %416, %420 : vector<2x128xf32>
    %c0_170 = arith.constant 0 : index
    %c0_171 = arith.constant 0 : index
    %422 = vector.load %arg11[%c0_170, %c0_171] : memref<2x32xf32, #tpu.memory_space<vmem>>, vector<2x32xf32>
    %c0_172 = arith.constant 0 : index
    %c0_173 = arith.constant 0 : index
    %423 = vector.load %arg12[%c0_172, %c0_173] : memref<2x32xf32, #tpu.memory_space<vmem>>, vector<2x32xf32>
    %424 = vector.broadcast %412 : i32 to vector<2x1xi32>
    %425 = arith.cmpi slt, %424, %3 : vector<2x1xi32>
    %426 = vector.extract_strided_slice %421 {offsets = [0, 0], sizes = [2, 32], strides = [1, 1]} : vector<2x128xf32> to vector<2x32xf32>
    %427 = arith.negf %426 : vector<2x32xf32>
    %428 = math.exp %427 : vector<2x32xf32>
    %cst_174 = arith.constant 1.000000e+00 : f32
    %429 = vector.broadcast %cst_174 : f32 to vector<2x32xf32>
    %430 = arith.addf %429, %428 : vector<2x32xf32>
    %431 = arith.divf %429, %430 : vector<2x32xf32>
    %432 = vector.extract_strided_slice %421 {offsets = [0, 32], sizes = [2, 32], strides = [1, 1]} : vector<2x128xf32> to vector<2x32xf32>
    %433 = arith.negf %432 : vector<2x32xf32>
    %434 = math.exp %433 : vector<2x32xf32>
    %cst_175 = arith.constant 1.000000e+00 : f32
    %435 = vector.broadcast %cst_175 : f32 to vector<2x32xf32>
    %436 = arith.addf %435, %434 : vector<2x32xf32>
    %437 = arith.divf %435, %436 : vector<2x32xf32>
    %438 = vector.extract_strided_slice %421 {offsets = [0, 64], sizes = [2, 32], strides = [1, 1]} : vector<2x128xf32> to vector<2x32xf32>
    %439 = math.tanh %438 : vector<2x32xf32>
    %440 = vector.extract_strided_slice %421 {offsets = [0, 96], sizes = [2, 32], strides = [1, 1]} : vector<2x128xf32> to vector<2x32xf32>
    %441 = arith.negf %440 : vector<2x32xf32>
    %442 = math.exp %441 : vector<2x32xf32>
    %cst_176 = arith.constant 1.000000e+00 : f32
    %443 = vector.broadcast %cst_176 : f32 to vector<2x32xf32>
    %444 = arith.addf %443, %442 : vector<2x32xf32>
    %445 = arith.divf %443, %444 : vector<2x32xf32>
    %446 = arith.mulf %437, %423 : vector<2x32xf32>
    %447 = arith.mulf %431, %439 : vector<2x32xf32>
    %448 = arith.addf %446, %447 : vector<2x32xf32>
    %449 = math.tanh %448 : vector<2x32xf32>
    %450 = arith.mulf %445, %449 : vector<2x32xf32>
    %451 = vector.shape_cast %425 : vector<2x1xi1> to vector<2x1xi1>
    %452 = vector.broadcast %451 : vector<2x1xi1> to vector<2x32xi1>
    %453 = arith.select %452, %450, %422 : vector<2x32xi1>, vector<2x32xf32>
    %454 = vector.shape_cast %425 : vector<2x1xi1> to vector<2x1xi1>
    %455 = vector.broadcast %454 : vector<2x1xi1> to vector<2x32xi1>
    %456 = arith.select %455, %448, %423 : vector<2x32xi1>, vector<2x32xf32>
    %cst_177 = arith.constant 0.000000e+00 : f32
    %457 = vector.shape_cast %425 : vector<2x1xi1> to vector<2x1xi1>
    %458 = vector.broadcast %457 : vector<2x1xi1> to vector<2x32xi1>
    %459 = vector.broadcast %cst_177 : f32 to vector<2x32xf32>
    %460 = arith.select %458, %450, %459 : vector<2x32xi1>, vector<2x32xf32>
    %c0_178 = arith.constant 0 : index
    %c0_179 = arith.constant 0 : index
    %461 = vector.load %arg11[%c0_178, %c0_179] : memref<2x32xf32, #tpu.memory_space<vmem>>, vector<2x32xf32>
    tpu.vector_store %arg11[%c0_178, %c0_179], %453 {strides = array<i32>} : memref<2x32xf32, #tpu.memory_space<vmem>>, vector<2x32xf32>,
    %c0_180 = arith.constant 0 : index
    %c0_181 = arith.constant 0 : index
    %462 = vector.load %arg12[%c0_180, %c0_181] : memref<2x32xf32, #tpu.memory_space<vmem>>, vector<2x32xf32>
    tpu.vector_store %arg12[%c0_180, %c0_181], %456 {strides = array<i32>} : memref<2x32xf32, #tpu.memory_space<vmem>>, vector<2x32xf32>,
    %463 = arith.truncf %460 : vector<2x32xf32> to vector<2x32xbf16>
    %464 = arith.index_cast %409 : i32 to index
    %c0_182 = arith.constant 0 : index
    %c0_183 = arith.constant 0 : index
    %465 = vector.load %arg8[%464, %c0_182, %c0_183] : memref<8x2x32xbf16, #tpu.memory_space<vmem>>, vector<1x2x32xbf16>
    %466 = vector.shape_cast %465 : vector<1x2x32xbf16> to vector<2x32xbf16>
    %467 = vector.shape_cast %463 : vector<2x32xbf16> to vector<1x2x32xbf16>
    tpu.vector_store %arg8[%464, %c0_182, %c0_183], %467 {strides = array<i32>} : memref<8x2x32xbf16, #tpu.memory_space<vmem>>, vector<1x2x32xbf16>,
    %c4_i32 = arith.constant 4 : i32
    %c8_i32_184 = arith.constant 8 : i32
    %468 = arith.muli %arg0, %c8_i32_184 : i32
    %469 = arith.addi %468, %c4_i32 : i32
    %470 = arith.index_cast %c4_i32 : i32 to index
    %c0_185 = arith.constant 0 : index
    %c0_186 = arith.constant 0 : index
    %471 = vector.load %arg1[%470, %c0_185, %c0_186] : memref<8x2x128xbf16, #tpu.memory_space<vmem>>, vector<1x2x128xbf16>
    %472 = vector.shape_cast %471 : vector<1x2x128xbf16> to vector<2x128xbf16>
    %473 = arith.extf %472 : vector<2x128xbf16> to vector<2x128xf32>
    %c0_187 = arith.constant 0 : index
    %c0_188 = arith.constant 0 : index
    %474 = vector.load %arg9[%c0_187, %c0_188] : memref<2x32xf32, #tpu.memory_space<vmem>>, vector<2x32xf32>
    %475 = arith.truncf %474 : vector<2x32xf32> to vector<2x32xbf16>
    %c0_189 = arith.constant 0 : index
    %c0_190 = arith.constant 0 : index
    %476 = vector.load %arg3[%c0_189, %c0_190] : memref<32x128xbf16, #tpu.memory_space<vmem>>, vector<32x128xbf16>
    %cst_191 = arith.constant dense<0.000000e+00> : vector<2x128xf32>
    %477 = tpu.matmul %475, %476, %cst_191 {dimension_numbers = #tpu.dot_dimension_numbers<[1], [0], [0], [1], [0, 0, 1, 1], [], []>} : vector<2x32xbf16>, vector<32x128xbf16>, vector<2x128xf32> -> vector<2x128xf32>
    %478 = arith.addf %473, %477 : vector<2x128xf32>
    %c0_192 = arith.constant 0 : index
    %c0_193 = arith.constant 0 : index
    %479 = vector.load %arg9[%c0_192, %c0_193] : memref<2x32xf32, #tpu.memory_space<vmem>>, vector<2x32xf32>
    %c0_194 = arith.constant 0 : index
    %c0_195 = arith.constant 0 : index
    %480 = vector.load %arg10[%c0_194, %c0_195] : memref<2x32xf32, #tpu.memory_space<vmem>>, vector<2x32xf32>
    %481 = vector.broadcast %469 : i32 to vector<2x1xi32>
    %482 = arith.cmpi slt, %481, %3 : vector<2x1xi32>
    %483 = vector.extract_strided_slice %478 {offsets = [0, 0], sizes = [2, 32], strides = [1, 1]} : vector<2x128xf32> to vector<2x32xf32>
    %484 = arith.negf %483 : vector<2x32xf32>
    %485 = math.exp %484 : vector<2x32xf32>
    %cst_196 = arith.constant 1.000000e+00 : f32
    %486 = vector.broadcast %cst_196 : f32 to vector<2x32xf32>
    %487 = arith.addf %486, %485 : vector<2x32xf32>
    %488 = arith.divf %486, %487 : vector<2x32xf32>
    %489 = vector.extract_strided_slice %478 {offsets = [0, 32], sizes = [2, 32], strides = [1, 1]} : vector<2x128xf32> to vector<2x32xf32>
    %490 = arith.negf %489 : vector<2x32xf32>
    %491 = math.exp %490 : vector<2x32xf32>
    %cst_197 = arith.constant 1.000000e+00 : f32
    %492 = vector.broadcast %cst_197 : f32 to vector<2x32xf32>
    %493 = arith.addf %492, %491 : vector<2x32xf32>
    %494 = arith.divf %492, %493 : vector<2x32xf32>
    %495 = vector.extract_strided_slice %478 {offsets = [0, 64], sizes = [2, 32], strides = [1, 1]} : vector<2x128xf32> to vector<2x32xf32>
    %496 = math.tanh %495 : vector<2x32xf32>
    %497 = vector.extract_strided_slice %478 {offsets = [0, 96], sizes = [2, 32], strides = [1, 1]} : vector<2x128xf32> to vector<2x32xf32>
    %498 = arith.negf %497 : vector<2x32xf32>
    %499 = math.exp %498 : vector<2x32xf32>
    %cst_198 = arith.constant 1.000000e+00 : f32
    %500 = vector.broadcast %cst_198 : f32 to vector<2x32xf32>
    %501 = arith.addf %500, %499 : vector<2x32xf32>
    %502 = arith.divf %500, %501 : vector<2x32xf32>
    %503 = arith.mulf %494, %480 : vector<2x32xf32>
    %504 = arith.mulf %488, %496 : vector<2x32xf32>
    %505 = arith.addf %503, %504 : vector<2x32xf32>
    %506 = math.tanh %505 : vector<2x32xf32>
    %507 = arith.mulf %502, %506 : vector<2x32xf32>
    %508 = vector.shape_cast %482 : vector<2x1xi1> to vector<2x1xi1>
    %509 = vector.broadcast %508 : vector<2x1xi1> to vector<2x32xi1>
    %510 = arith.select %509, %507, %479 : vector<2x32xi1>, vector<2x32xf32>
    %511 = vector.shape_cast %482 : vector<2x1xi1> to vector<2x1xi1>
    %512 = vector.broadcast %511 : vector<2x1xi1> to vector<2x32xi1>
    %513 = arith.select %512, %505, %480 : vector<2x32xi1>, vector<2x32xf32>
    %cst_199 = arith.constant 0.000000e+00 : f32
    %514 = vector.shape_cast %482 : vector<2x1xi1> to vector<2x1xi1>
    %515 = vector.broadcast %514 : vector<2x1xi1> to vector<2x32xi1>
    %516 = vector.broadcast %cst_199 : f32 to vector<2x32xf32>
    %517 = arith.select %515, %507, %516 : vector<2x32xi1>, vector<2x32xf32>
    %c0_200 = arith.constant 0 : index
    %c0_201 = arith.constant 0 : index
    %518 = vector.load %arg9[%c0_200, %c0_201] : memref<2x32xf32, #tpu.memory_space<vmem>>, vector<2x32xf32>
    tpu.vector_store %arg9[%c0_200, %c0_201], %510 {strides = array<i32>} : memref<2x32xf32, #tpu.memory_space<vmem>>, vector<2x32xf32>,
    %c0_202 = arith.constant 0 : index
    %c0_203 = arith.constant 0 : index
    %519 = vector.load %arg10[%c0_202, %c0_203] : memref<2x32xf32, #tpu.memory_space<vmem>>, vector<2x32xf32>
    tpu.vector_store %arg10[%c0_202, %c0_203], %513 {strides = array<i32>} : memref<2x32xf32, #tpu.memory_space<vmem>>, vector<2x32xf32>,
    %520 = arith.truncf %517 : vector<2x32xf32> to vector<2x32xbf16>
    %521 = arith.index_cast %c4_i32 : i32 to index
    %c0_204 = arith.constant 0 : index
    %c0_205 = arith.constant 0 : index
    %522 = vector.load %arg7[%521, %c0_204, %c0_205] : memref<8x2x32xbf16, #tpu.memory_space<vmem>>, vector<1x2x32xbf16>
    %523 = vector.shape_cast %522 : vector<1x2x32xbf16> to vector<2x32xbf16>
    %524 = vector.shape_cast %520 : vector<2x32xbf16> to vector<1x2x32xbf16>
    tpu.vector_store %arg7[%521, %c0_204, %c0_205], %524 {strides = array<i32>} : memref<8x2x32xbf16, #tpu.memory_space<vmem>>, vector<1x2x32xbf16>,
    %c7_i32_206 = arith.constant 7 : i32
    %525 = arith.subi %c7_i32_206, %c4_i32 : i32
    %c0_i32_207 = arith.constant 0 : i32
    %526 = arith.subi %c0_i32_207, %arg0 : i32
    %c8_i32_208 = arith.constant 8 : i32
    %527 = arith.muli %526, %c8_i32_208 : i32
    %528 = arith.addi %527, %525 : i32
    %529 = arith.index_cast %525 : i32 to index
    %c0_209 = arith.constant 0 : index
    %c0_210 = arith.constant 0 : index
    %530 = vector.load %arg2[%529, %c0_209, %c0_210] : memref<8x2x128xbf16, #tpu.memory_space<vmem>>, vector<1x2x128xbf16>
    %531 = vector.shape_cast %530 : vector<1x2x128xbf16> to vector<2x128xbf16>
    %532 = arith.extf %531 : vector<2x128xbf16> to vector<2x128xf32>
    %c0_211 = arith.constant 0 : index
    %c0_212 = arith.constant 0 : index
    %533 = vector.load %arg11[%c0_211, %c0_212] : memref<2x32xf32, #tpu.memory_space<vmem>>, vector<2x32xf32>
    %534 = arith.truncf %533 : vector<2x32xf32> to vector<2x32xbf16>
    %c0_213 = arith.constant 0 : index
    %c0_214 = arith.constant 0 : index
    %535 = vector.load %arg4[%c0_213, %c0_214] : memref<32x128xbf16, #tpu.memory_space<vmem>>, vector<32x128xbf16>
    %cst_215 = arith.constant dense<0.000000e+00> : vector<2x128xf32>
    %536 = tpu.matmul %534, %535, %cst_215 {dimension_numbers = #tpu.dot_dimension_numbers<[1], [0], [0], [1], [0, 0, 1, 1], [], []>} : vector<2x32xbf16>, vector<32x128xbf16>, vector<2x128xf32> -> vector<2x128xf32>
    %537 = arith.addf %532, %536 : vector<2x128xf32>
    %c0_216 = arith.constant 0 : index
    %c0_217 = arith.constant 0 : index
    %538 = vector.load %arg11[%c0_216, %c0_217] : memref<2x32xf32, #tpu.memory_space<vmem>>, vector<2x32xf32>
    %c0_218 = arith.constant 0 : index
    %c0_219 = arith.constant 0 : index
    %539 = vector.load %arg12[%c0_218, %c0_219] : memref<2x32xf32, #tpu.memory_space<vmem>>, vector<2x32xf32>
    %540 = vector.broadcast %528 : i32 to vector<2x1xi32>
    %541 = arith.cmpi slt, %540, %3 : vector<2x1xi32>
    %542 = vector.extract_strided_slice %537 {offsets = [0, 0], sizes = [2, 32], strides = [1, 1]} : vector<2x128xf32> to vector<2x32xf32>
    %543 = arith.negf %542 : vector<2x32xf32>
    %544 = math.exp %543 : vector<2x32xf32>
    %cst_220 = arith.constant 1.000000e+00 : f32
    %545 = vector.broadcast %cst_220 : f32 to vector<2x32xf32>
    %546 = arith.addf %545, %544 : vector<2x32xf32>
    %547 = arith.divf %545, %546 : vector<2x32xf32>
    %548 = vector.extract_strided_slice %537 {offsets = [0, 32], sizes = [2, 32], strides = [1, 1]} : vector<2x128xf32> to vector<2x32xf32>
    %549 = arith.negf %548 : vector<2x32xf32>
    %550 = math.exp %549 : vector<2x32xf32>
    %cst_221 = arith.constant 1.000000e+00 : f32
    %551 = vector.broadcast %cst_221 : f32 to vector<2x32xf32>
    %552 = arith.addf %551, %550 : vector<2x32xf32>
    %553 = arith.divf %551, %552 : vector<2x32xf32>
    %554 = vector.extract_strided_slice %537 {offsets = [0, 64], sizes = [2, 32], strides = [1, 1]} : vector<2x128xf32> to vector<2x32xf32>
    %555 = math.tanh %554 : vector<2x32xf32>
    %556 = vector.extract_strided_slice %537 {offsets = [0, 96], sizes = [2, 32], strides = [1, 1]} : vector<2x128xf32> to vector<2x32xf32>
    %557 = arith.negf %556 : vector<2x32xf32>
    %558 = math.exp %557 : vector<2x32xf32>
    %cst_222 = arith.constant 1.000000e+00 : f32
    %559 = vector.broadcast %cst_222 : f32 to vector<2x32xf32>
    %560 = arith.addf %559, %558 : vector<2x32xf32>
    %561 = arith.divf %559, %560 : vector<2x32xf32>
    %562 = arith.mulf %553, %539 : vector<2x32xf32>
    %563 = arith.mulf %547, %555 : vector<2x32xf32>
    %564 = arith.addf %562, %563 : vector<2x32xf32>
    %565 = math.tanh %564 : vector<2x32xf32>
    %566 = arith.mulf %561, %565 : vector<2x32xf32>
    %567 = vector.shape_cast %541 : vector<2x1xi1> to vector<2x1xi1>
    %568 = vector.broadcast %567 : vector<2x1xi1> to vector<2x32xi1>
    %569 = arith.select %568, %566, %538 : vector<2x32xi1>, vector<2x32xf32>
    %570 = vector.shape_cast %541 : vector<2x1xi1> to vector<2x1xi1>
    %571 = vector.broadcast %570 : vector<2x1xi1> to vector<2x32xi1>
    %572 = arith.select %571, %564, %539 : vector<2x32xi1>, vector<2x32xf32>
    %cst_223 = arith.constant 0.000000e+00 : f32
    %573 = vector.shape_cast %541 : vector<2x1xi1> to vector<2x1xi1>
    %574 = vector.broadcast %573 : vector<2x1xi1> to vector<2x32xi1>
    %575 = vector.broadcast %cst_223 : f32 to vector<2x32xf32>
    %576 = arith.select %574, %566, %575 : vector<2x32xi1>, vector<2x32xf32>
    %c0_224 = arith.constant 0 : index
    %c0_225 = arith.constant 0 : index
    %577 = vector.load %arg11[%c0_224, %c0_225] : memref<2x32xf32, #tpu.memory_space<vmem>>, vector<2x32xf32>
    tpu.vector_store %arg11[%c0_224, %c0_225], %569 {strides = array<i32>} : memref<2x32xf32, #tpu.memory_space<vmem>>, vector<2x32xf32>,
    %c0_226 = arith.constant 0 : index
    %c0_227 = arith.constant 0 : index
    %578 = vector.load %arg12[%c0_226, %c0_227] : memref<2x32xf32, #tpu.memory_space<vmem>>, vector<2x32xf32>
    tpu.vector_store %arg12[%c0_226, %c0_227], %572 {strides = array<i32>} : memref<2x32xf32, #tpu.memory_space<vmem>>, vector<2x32xf32>,
    %579 = arith.truncf %576 : vector<2x32xf32> to vector<2x32xbf16>
    %580 = arith.index_cast %525 : i32 to index
    %c0_228 = arith.constant 0 : index
    %c0_229 = arith.constant 0 : index
    %581 = vector.load %arg8[%580, %c0_228, %c0_229] : memref<8x2x32xbf16, #tpu.memory_space<vmem>>, vector<1x2x32xbf16>
    %582 = vector.shape_cast %581 : vector<1x2x32xbf16> to vector<2x32xbf16>
    %583 = vector.shape_cast %579 : vector<2x32xbf16> to vector<1x2x32xbf16>
    tpu.vector_store %arg8[%580, %c0_228, %c0_229], %583 {strides = array<i32>} : memref<8x2x32xbf16, #tpu.memory_space<vmem>>, vector<1x2x32xbf16>,
    %c5_i32 = arith.constant 5 : i32
    %c8_i32_230 = arith.constant 8 : i32
    %584 = arith.muli %arg0, %c8_i32_230 : i32
    %585 = arith.addi %584, %c5_i32 : i32
    %586 = arith.index_cast %c5_i32 : i32 to index
    %c0_231 = arith.constant 0 : index
    %c0_232 = arith.constant 0 : index
    %587 = vector.load %arg1[%586, %c0_231, %c0_232] : memref<8x2x128xbf16, #tpu.memory_space<vmem>>, vector<1x2x128xbf16>
    %588 = vector.shape_cast %587 : vector<1x2x128xbf16> to vector<2x128xbf16>
    %589 = arith.extf %588 : vector<2x128xbf16> to vector<2x128xf32>
    %c0_233 = arith.constant 0 : index
    %c0_234 = arith.constant 0 : index
    %590 = vector.load %arg9[%c0_233, %c0_234] : memref<2x32xf32, #tpu.memory_space<vmem>>, vector<2x32xf32>
    %591 = arith.truncf %590 : vector<2x32xf32> to vector<2x32xbf16>
    %c0_235 = arith.constant 0 : index
    %c0_236 = arith.constant 0 : index
    %592 = vector.load %arg3[%c0_235, %c0_236] : memref<32x128xbf16, #tpu.memory_space<vmem>>, vector<32x128xbf16>
    %cst_237 = arith.constant dense<0.000000e+00> : vector<2x128xf32>
    %593 = tpu.matmul %591, %592, %cst_237 {dimension_numbers = #tpu.dot_dimension_numbers<[1], [0], [0], [1], [0, 0, 1, 1], [], []>} : vector<2x32xbf16>, vector<32x128xbf16>, vector<2x128xf32> -> vector<2x128xf32>
    %594 = arith.addf %589, %593 : vector<2x128xf32>
    %c0_238 = arith.constant 0 : index
    %c0_239 = arith.constant 0 : index
    %595 = vector.load %arg9[%c0_238, %c0_239] : memref<2x32xf32, #tpu.memory_space<vmem>>, vector<2x32xf32>
    %c0_240 = arith.constant 0 : index
    %c0_241 = arith.constant 0 : index
    %596 = vector.load %arg10[%c0_240, %c0_241] : memref<2x32xf32, #tpu.memory_space<vmem>>, vector<2x32xf32>
    %597 = vector.broadcast %585 : i32 to vector<2x1xi32>
    %598 = arith.cmpi slt, %597, %3 : vector<2x1xi32>
    %599 = vector.extract_strided_slice %594 {offsets = [0, 0], sizes = [2, 32], strides = [1, 1]} : vector<2x128xf32> to vector<2x32xf32>
    %600 = arith.negf %599 : vector<2x32xf32>
    %601 = math.exp %600 : vector<2x32xf32>
    %cst_242 = arith.constant 1.000000e+00 : f32
    %602 = vector.broadcast %cst_242 : f32 to vector<2x32xf32>
    %603 = arith.addf %602, %601 : vector<2x32xf32>
    %604 = arith.divf %602, %603 : vector<2x32xf32>
    %605 = vector.extract_strided_slice %594 {offsets = [0, 32], sizes = [2, 32], strides = [1, 1]} : vector<2x128xf32> to vector<2x32xf32>
    %606 = arith.negf %605 : vector<2x32xf32>
    %607 = math.exp %606 : vector<2x32xf32>
    %cst_243 = arith.constant 1.000000e+00 : f32
    %608 = vector.broadcast %cst_243 : f32 to vector<2x32xf32>
    %609 = arith.addf %608, %607 : vector<2x32xf32>
    %610 = arith.divf %608, %609 : vector<2x32xf32>
    %611 = vector.extract_strided_slice %594 {offsets = [0, 64], sizes = [2, 32], strides = [1, 1]} : vector<2x128xf32> to vector<2x32xf32>
    %612 = math.tanh %611 : vector<2x32xf32>
    %613 = vector.extract_strided_slice %594 {offsets = [0, 96], sizes = [2, 32], strides = [1, 1]} : vector<2x128xf32> to vector<2x32xf32>
    %614 = arith.negf %613 : vector<2x32xf32>
    %615 = math.exp %614 : vector<2x32xf32>
    %cst_244 = arith.constant 1.000000e+00 : f32
    %616 = vector.broadcast %cst_244 : f32 to vector<2x32xf32>
    %617 = arith.addf %616, %615 : vector<2x32xf32>
    %618 = arith.divf %616, %617 : vector<2x32xf32>
    %619 = arith.mulf %610, %596 : vector<2x32xf32>
    %620 = arith.mulf %604, %612 : vector<2x32xf32>
    %621 = arith.addf %619, %620 : vector<2x32xf32>
    %622 = math.tanh %621 : vector<2x32xf32>
    %623 = arith.mulf %618, %622 : vector<2x32xf32>
    %624 = vector.shape_cast %598 : vector<2x1xi1> to vector<2x1xi1>
    %625 = vector.broadcast %624 : vector<2x1xi1> to vector<2x32xi1>
    %626 = arith.select %625, %623, %595 : vector<2x32xi1>, vector<2x32xf32>
    %627 = vector.shape_cast %598 : vector<2x1xi1> to vector<2x1xi1>
    %628 = vector.broadcast %627 : vector<2x1xi1> to vector<2x32xi1>
    %629 = arith.select %628, %621, %596 : vector<2x32xi1>, vector<2x32xf32>
    %cst_245 = arith.constant 0.000000e+00 : f32
    %630 = vector.shape_cast %598 : vector<2x1xi1> to vector<2x1xi1>
    %631 = vector.broadcast %630 : vector<2x1xi1> to vector<2x32xi1>
    %632 = vector.broadcast %cst_245 : f32 to vector<2x32xf32>
    %633 = arith.select %631, %623, %632 : vector<2x32xi1>, vector<2x32xf32>
    %c0_246 = arith.constant 0 : index
    %c0_247 = arith.constant 0 : index
    %634 = vector.load %arg9[%c0_246, %c0_247] : memref<2x32xf32, #tpu.memory_space<vmem>>, vector<2x32xf32>
    tpu.vector_store %arg9[%c0_246, %c0_247], %626 {strides = array<i32>} : memref<2x32xf32, #tpu.memory_space<vmem>>, vector<2x32xf32>,
    %c0_248 = arith.constant 0 : index
    %c0_249 = arith.constant 0 : index
    %635 = vector.load %arg10[%c0_248, %c0_249] : memref<2x32xf32, #tpu.memory_space<vmem>>, vector<2x32xf32>
    tpu.vector_store %arg10[%c0_248, %c0_249], %629 {strides = array<i32>} : memref<2x32xf32, #tpu.memory_space<vmem>>, vector<2x32xf32>,
    %636 = arith.truncf %633 : vector<2x32xf32> to vector<2x32xbf16>
    %637 = arith.index_cast %c5_i32 : i32 to index
    %c0_250 = arith.constant 0 : index
    %c0_251 = arith.constant 0 : index
    %638 = vector.load %arg7[%637, %c0_250, %c0_251] : memref<8x2x32xbf16, #tpu.memory_space<vmem>>, vector<1x2x32xbf16>
    %639 = vector.shape_cast %638 : vector<1x2x32xbf16> to vector<2x32xbf16>
    %640 = vector.shape_cast %636 : vector<2x32xbf16> to vector<1x2x32xbf16>
    tpu.vector_store %arg7[%637, %c0_250, %c0_251], %640 {strides = array<i32>} : memref<8x2x32xbf16, #tpu.memory_space<vmem>>, vector<1x2x32xbf16>,
    %c7_i32_252 = arith.constant 7 : i32
    %641 = arith.subi %c7_i32_252, %c5_i32 : i32
    %c0_i32_253 = arith.constant 0 : i32
    %642 = arith.subi %c0_i32_253, %arg0 : i32
    %c8_i32_254 = arith.constant 8 : i32
    %643 = arith.muli %642, %c8_i32_254 : i32
    %644 = arith.addi %643, %641 : i32
    %645 = arith.index_cast %641 : i32 to index
    %c0_255 = arith.constant 0 : index
    %c0_256 = arith.constant 0 : index
    %646 = vector.load %arg2[%645, %c0_255, %c0_256] : memref<8x2x128xbf16, #tpu.memory_space<vmem>>, vector<1x2x128xbf16>
    %647 = vector.shape_cast %646 : vector<1x2x128xbf16> to vector<2x128xbf16>
    %648 = arith.extf %647 : vector<2x128xbf16> to vector<2x128xf32>
    %c0_257 = arith.constant 0 : index
    %c0_258 = arith.constant 0 : index
    %649 = vector.load %arg11[%c0_257, %c0_258] : memref<2x32xf32, #tpu.memory_space<vmem>>, vector<2x32xf32>
    %650 = arith.truncf %649 : vector<2x32xf32> to vector<2x32xbf16>
    %c0_259 = arith.constant 0 : index
    %c0_260 = arith.constant 0 : index
    %651 = vector.load %arg4[%c0_259, %c0_260] : memref<32x128xbf16, #tpu.memory_space<vmem>>, vector<32x128xbf16>
    %cst_261 = arith.constant dense<0.000000e+00> : vector<2x128xf32>
    %652 = tpu.matmul %650, %651, %cst_261 {dimension_numbers = #tpu.dot_dimension_numbers<[1], [0], [0], [1], [0, 0, 1, 1], [], []>} : vector<2x32xbf16>, vector<32x128xbf16>, vector<2x128xf32> -> vector<2x128xf32>
    %653 = arith.addf %648, %652 : vector<2x128xf32>
    %c0_262 = arith.constant 0 : index
    %c0_263 = arith.constant 0 : index
    %654 = vector.load %arg11[%c0_262, %c0_263] : memref<2x32xf32, #tpu.memory_space<vmem>>, vector<2x32xf32>
    %c0_264 = arith.constant 0 : index
    %c0_265 = arith.constant 0 : index
    %655 = vector.load %arg12[%c0_264, %c0_265] : memref<2x32xf32, #tpu.memory_space<vmem>>, vector<2x32xf32>
    %656 = vector.broadcast %644 : i32 to vector<2x1xi32>
    %657 = arith.cmpi slt, %656, %3 : vector<2x1xi32>
    %658 = vector.extract_strided_slice %653 {offsets = [0, 0], sizes = [2, 32], strides = [1, 1]} : vector<2x128xf32> to vector<2x32xf32>
    %659 = arith.negf %658 : vector<2x32xf32>
    %660 = math.exp %659 : vector<2x32xf32>
    %cst_266 = arith.constant 1.000000e+00 : f32
    %661 = vector.broadcast %cst_266 : f32 to vector<2x32xf32>
    %662 = arith.addf %661, %660 : vector<2x32xf32>
    %663 = arith.divf %661, %662 : vector<2x32xf32>
    %664 = vector.extract_strided_slice %653 {offsets = [0, 32], sizes = [2, 32], strides = [1, 1]} : vector<2x128xf32> to vector<2x32xf32>
    %665 = arith.negf %664 : vector<2x32xf32>
    %666 = math.exp %665 : vector<2x32xf32>
    %cst_267 = arith.constant 1.000000e+00 : f32
    %667 = vector.broadcast %cst_267 : f32 to vector<2x32xf32>
    %668 = arith.addf %667, %666 : vector<2x32xf32>
    %669 = arith.divf %667, %668 : vector<2x32xf32>
    %670 = vector.extract_strided_slice %653 {offsets = [0, 64], sizes = [2, 32], strides = [1, 1]} : vector<2x128xf32> to vector<2x32xf32>
    %671 = math.tanh %670 : vector<2x32xf32>
    %672 = vector.extract_strided_slice %653 {offsets = [0, 96], sizes = [2, 32], strides = [1, 1]} : vector<2x128xf32> to vector<2x32xf32>
    %673 = arith.negf %672 : vector<2x32xf32>
    %674 = math.exp %673 : vector<2x32xf32>
    %cst_268 = arith.constant 1.000000e+00 : f32
    %675 = vector.broadcast %cst_268 : f32 to vector<2x32xf32>
    %676 = arith.addf %675, %674 : vector<2x32xf32>
    %677 = arith.divf %675, %676 : vector<2x32xf32>
    %678 = arith.mulf %669, %655 : vector<2x32xf32>
    %679 = arith.mulf %663, %671 : vector<2x32xf32>
    %680 = arith.addf %678, %679 : vector<2x32xf32>
    %681 = math.tanh %680 : vector<2x32xf32>
    %682 = arith.mulf %677, %681 : vector<2x32xf32>
    %683 = vector.shape_cast %657 : vector<2x1xi1> to vector<2x1xi1>
    %684 = vector.broadcast %683 : vector<2x1xi1> to vector<2x32xi1>
    %685 = arith.select %684, %682, %654 : vector<2x32xi1>, vector<2x32xf32>
    %686 = vector.shape_cast %657 : vector<2x1xi1> to vector<2x1xi1>
    %687 = vector.broadcast %686 : vector<2x1xi1> to vector<2x32xi1>
    %688 = arith.select %687, %680, %655 : vector<2x32xi1>, vector<2x32xf32>
    %cst_269 = arith.constant 0.000000e+00 : f32
    %689 = vector.shape_cast %657 : vector<2x1xi1> to vector<2x1xi1>
    %690 = vector.broadcast %689 : vector<2x1xi1> to vector<2x32xi1>
    %691 = vector.broadcast %cst_269 : f32 to vector<2x32xf32>
    %692 = arith.select %690, %682, %691 : vector<2x32xi1>, vector<2x32xf32>
    %c0_270 = arith.constant 0 : index
    %c0_271 = arith.constant 0 : index
    %693 = vector.load %arg11[%c0_270, %c0_271] : memref<2x32xf32, #tpu.memory_space<vmem>>, vector<2x32xf32>
    tpu.vector_store %arg11[%c0_270, %c0_271], %685 {strides = array<i32>} : memref<2x32xf32, #tpu.memory_space<vmem>>, vector<2x32xf32>,
    %c0_272 = arith.constant 0 : index
    %c0_273 = arith.constant 0 : index
    %694 = vector.load %arg12[%c0_272, %c0_273] : memref<2x32xf32, #tpu.memory_space<vmem>>, vector<2x32xf32>
    tpu.vector_store %arg12[%c0_272, %c0_273], %688 {strides = array<i32>} : memref<2x32xf32, #tpu.memory_space<vmem>>, vector<2x32xf32>,
    %695 = arith.truncf %692 : vector<2x32xf32> to vector<2x32xbf16>
    %696 = arith.index_cast %641 : i32 to index
    %c0_274 = arith.constant 0 : index
    %c0_275 = arith.constant 0 : index
    %697 = vector.load %arg8[%696, %c0_274, %c0_275] : memref<8x2x32xbf16, #tpu.memory_space<vmem>>, vector<1x2x32xbf16>
    %698 = vector.shape_cast %697 : vector<1x2x32xbf16> to vector<2x32xbf16>
    %699 = vector.shape_cast %695 : vector<2x32xbf16> to vector<1x2x32xbf16>
    tpu.vector_store %arg8[%696, %c0_274, %c0_275], %699 {strides = array<i32>} : memref<8x2x32xbf16, #tpu.memory_space<vmem>>, vector<1x2x32xbf16>,
    %c6_i32 = arith.constant 6 : i32
    %c8_i32_276 = arith.constant 8 : i32
    %700 = arith.muli %arg0, %c8_i32_276 : i32
    %701 = arith.addi %700, %c6_i32 : i32
    %702 = arith.index_cast %c6_i32 : i32 to index
    %c0_277 = arith.constant 0 : index
    %c0_278 = arith.constant 0 : index
    %703 = vector.load %arg1[%702, %c0_277, %c0_278] : memref<8x2x128xbf16, #tpu.memory_space<vmem>>, vector<1x2x128xbf16>
    %704 = vector.shape_cast %703 : vector<1x2x128xbf16> to vector<2x128xbf16>
    %705 = arith.extf %704 : vector<2x128xbf16> to vector<2x128xf32>
    %c0_279 = arith.constant 0 : index
    %c0_280 = arith.constant 0 : index
    %706 = vector.load %arg9[%c0_279, %c0_280] : memref<2x32xf32, #tpu.memory_space<vmem>>, vector<2x32xf32>
    %707 = arith.truncf %706 : vector<2x32xf32> to vector<2x32xbf16>
    %c0_281 = arith.constant 0 : index
    %c0_282 = arith.constant 0 : index
    %708 = vector.load %arg3[%c0_281, %c0_282] : memref<32x128xbf16, #tpu.memory_space<vmem>>, vector<32x128xbf16>
    %cst_283 = arith.constant dense<0.000000e+00> : vector<2x128xf32>
    %709 = tpu.matmul %707, %708, %cst_283 {dimension_numbers = #tpu.dot_dimension_numbers<[1], [0], [0], [1], [0, 0, 1, 1], [], []>} : vector<2x32xbf16>, vector<32x128xbf16>, vector<2x128xf32> -> vector<2x128xf32>
    %710 = arith.addf %705, %709 : vector<2x128xf32>
    %c0_284 = arith.constant 0 : index
    %c0_285 = arith.constant 0 : index
    %711 = vector.load %arg9[%c0_284, %c0_285] : memref<2x32xf32, #tpu.memory_space<vmem>>, vector<2x32xf32>
    %c0_286 = arith.constant 0 : index
    %c0_287 = arith.constant 0 : index
    %712 = vector.load %arg10[%c0_286, %c0_287] : memref<2x32xf32, #tpu.memory_space<vmem>>, vector<2x32xf32>
    %713 = vector.broadcast %701 : i32 to vector<2x1xi32>
    %714 = arith.cmpi slt, %713, %3 : vector<2x1xi32>
    %715 = vector.extract_strided_slice %710 {offsets = [0, 0], sizes = [2, 32], strides = [1, 1]} : vector<2x128xf32> to vector<2x32xf32>
    %716 = arith.negf %715 : vector<2x32xf32>
    %717 = math.exp %716 : vector<2x32xf32>
    %cst_288 = arith.constant 1.000000e+00 : f32
    %718 = vector.broadcast %cst_288 : f32 to vector<2x32xf32>
    %719 = arith.addf %718, %717 : vector<2x32xf32>
    %720 = arith.divf %718, %719 : vector<2x32xf32>
    %721 = vector.extract_strided_slice %710 {offsets = [0, 32], sizes = [2, 32], strides = [1, 1]} : vector<2x128xf32> to vector<2x32xf32>
    %722 = arith.negf %721 : vector<2x32xf32>
    %723 = math.exp %722 : vector<2x32xf32>
    %cst_289 = arith.constant 1.000000e+00 : f32
    %724 = vector.broadcast %cst_289 : f32 to vector<2x32xf32>
    %725 = arith.addf %724, %723 : vector<2x32xf32>
    %726 = arith.divf %724, %725 : vector<2x32xf32>
    %727 = vector.extract_strided_slice %710 {offsets = [0, 64], sizes = [2, 32], strides = [1, 1]} : vector<2x128xf32> to vector<2x32xf32>
    %728 = math.tanh %727 : vector<2x32xf32>
    %729 = vector.extract_strided_slice %710 {offsets = [0, 96], sizes = [2, 32], strides = [1, 1]} : vector<2x128xf32> to vector<2x32xf32>
    %730 = arith.negf %729 : vector<2x32xf32>
    %731 = math.exp %730 : vector<2x32xf32>
    %cst_290 = arith.constant 1.000000e+00 : f32
    %732 = vector.broadcast %cst_290 : f32 to vector<2x32xf32>
    %733 = arith.addf %732, %731 : vector<2x32xf32>
    %734 = arith.divf %732, %733 : vector<2x32xf32>
    %735 = arith.mulf %726, %712 : vector<2x32xf32>
    %736 = arith.mulf %720, %728 : vector<2x32xf32>
    %737 = arith.addf %735, %736 : vector<2x32xf32>
    %738 = math.tanh %737 : vector<2x32xf32>
    %739 = arith.mulf %734, %738 : vector<2x32xf32>
    %740 = vector.shape_cast %714 : vector<2x1xi1> to vector<2x1xi1>
    %741 = vector.broadcast %740 : vector<2x1xi1> to vector<2x32xi1>
    %742 = arith.select %741, %739, %711 : vector<2x32xi1>, vector<2x32xf32>
    %743 = vector.shape_cast %714 : vector<2x1xi1> to vector<2x1xi1>
    %744 = vector.broadcast %743 : vector<2x1xi1> to vector<2x32xi1>
    %745 = arith.select %744, %737, %712 : vector<2x32xi1>, vector<2x32xf32>
    %cst_291 = arith.constant 0.000000e+00 : f32
    %746 = vector.shape_cast %714 : vector<2x1xi1> to vector<2x1xi1>
    %747 = vector.broadcast %746 : vector<2x1xi1> to vector<2x32xi1>
    %748 = vector.broadcast %cst_291 : f32 to vector<2x32xf32>
    %749 = arith.select %747, %739, %748 : vector<2x32xi1>, vector<2x32xf32>
    %c0_292 = arith.constant 0 : index
    %c0_293 = arith.constant 0 : index
    %750 = vector.load %arg9[%c0_292, %c0_293] : memref<2x32xf32, #tpu.memory_space<vmem>>, vector<2x32xf32>
    tpu.vector_store %arg9[%c0_292, %c0_293], %742 {strides = array<i32>} : memref<2x32xf32, #tpu.memory_space<vmem>>, vector<2x32xf32>,
    %c0_294 = arith.constant 0 : index
    %c0_295 = arith.constant 0 : index
    %751 = vector.load %arg10[%c0_294, %c0_295] : memref<2x32xf32, #tpu.memory_space<vmem>>, vector<2x32xf32>
    tpu.vector_store %arg10[%c0_294, %c0_295], %745 {strides = array<i32>} : memref<2x32xf32, #tpu.memory_space<vmem>>, vector<2x32xf32>,
    %752 = arith.truncf %749 : vector<2x32xf32> to vector<2x32xbf16>
    %753 = arith.index_cast %c6_i32 : i32 to index
    %c0_296 = arith.constant 0 : index
    %c0_297 = arith.constant 0 : index
    %754 = vector.load %arg7[%753, %c0_296, %c0_297] : memref<8x2x32xbf16, #tpu.memory_space<vmem>>, vector<1x2x32xbf16>
    %755 = vector.shape_cast %754 : vector<1x2x32xbf16> to vector<2x32xbf16>
    %756 = vector.shape_cast %752 : vector<2x32xbf16> to vector<1x2x32xbf16>
    tpu.vector_store %arg7[%753, %c0_296, %c0_297], %756 {strides = array<i32>} : memref<8x2x32xbf16, #tpu.memory_space<vmem>>, vector<1x2x32xbf16>,
    %c7_i32_298 = arith.constant 7 : i32
    %757 = arith.subi %c7_i32_298, %c6_i32 : i32
    %c0_i32_299 = arith.constant 0 : i32
    %758 = arith.subi %c0_i32_299, %arg0 : i32
    %c8_i32_300 = arith.constant 8 : i32
    %759 = arith.muli %758, %c8_i32_300 : i32
    %760 = arith.addi %759, %757 : i32
    %761 = arith.index_cast %757 : i32 to index
    %c0_301 = arith.constant 0 : index
    %c0_302 = arith.constant 0 : index
    %762 = vector.load %arg2[%761, %c0_301, %c0_302] : memref<8x2x128xbf16, #tpu.memory_space<vmem>>, vector<1x2x128xbf16>
    %763 = vector.shape_cast %762 : vector<1x2x128xbf16> to vector<2x128xbf16>
    %764 = arith.extf %763 : vector<2x128xbf16> to vector<2x128xf32>
    %c0_303 = arith.constant 0 : index
    %c0_304 = arith.constant 0 : index
    %765 = vector.load %arg11[%c0_303, %c0_304] : memref<2x32xf32, #tpu.memory_space<vmem>>, vector<2x32xf32>
    %766 = arith.truncf %765 : vector<2x32xf32> to vector<2x32xbf16>
    %c0_305 = arith.constant 0 : index
    %c0_306 = arith.constant 0 : index
    %767 = vector.load %arg4[%c0_305, %c0_306] : memref<32x128xbf16, #tpu.memory_space<vmem>>, vector<32x128xbf16>
    %cst_307 = arith.constant dense<0.000000e+00> : vector<2x128xf32>
    %768 = tpu.matmul %766, %767, %cst_307 {dimension_numbers = #tpu.dot_dimension_numbers<[1], [0], [0], [1], [0, 0, 1, 1], [], []>} : vector<2x32xbf16>, vector<32x128xbf16>, vector<2x128xf32> -> vector<2x128xf32>
    %769 = arith.addf %764, %768 : vector<2x128xf32>
    %c0_308 = arith.constant 0 : index
    %c0_309 = arith.constant 0 : index
    %770 = vector.load %arg11[%c0_308, %c0_309] : memref<2x32xf32, #tpu.memory_space<vmem>>, vector<2x32xf32>
    %c0_310 = arith.constant 0 : index
    %c0_311 = arith.constant 0 : index
    %771 = vector.load %arg12[%c0_310, %c0_311] : memref<2x32xf32, #tpu.memory_space<vmem>>, vector<2x32xf32>
    %772 = vector.broadcast %760 : i32 to vector<2x1xi32>
    %773 = arith.cmpi slt, %772, %3 : vector<2x1xi32>
    %774 = vector.extract_strided_slice %769 {offsets = [0, 0], sizes = [2, 32], strides = [1, 1]} : vector<2x128xf32> to vector<2x32xf32>
    %775 = arith.negf %774 : vector<2x32xf32>
    %776 = math.exp %775 : vector<2x32xf32>
    %cst_312 = arith.constant 1.000000e+00 : f32
    %777 = vector.broadcast %cst_312 : f32 to vector<2x32xf32>
    %778 = arith.addf %777, %776 : vector<2x32xf32>
    %779 = arith.divf %777, %778 : vector<2x32xf32>
    %780 = vector.extract_strided_slice %769 {offsets = [0, 32], sizes = [2, 32], strides = [1, 1]} : vector<2x128xf32> to vector<2x32xf32>
    %781 = arith.negf %780 : vector<2x32xf32>
    %782 = math.exp %781 : vector<2x32xf32>
    %cst_313 = arith.constant 1.000000e+00 : f32
    %783 = vector.broadcast %cst_313 : f32 to vector<2x32xf32>
    %784 = arith.addf %783, %782 : vector<2x32xf32>
    %785 = arith.divf %783, %784 : vector<2x32xf32>
    %786 = vector.extract_strided_slice %769 {offsets = [0, 64], sizes = [2, 32], strides = [1, 1]} : vector<2x128xf32> to vector<2x32xf32>
    %787 = math.tanh %786 : vector<2x32xf32>
    %788 = vector.extract_strided_slice %769 {offsets = [0, 96], sizes = [2, 32], strides = [1, 1]} : vector<2x128xf32> to vector<2x32xf32>
    %789 = arith.negf %788 : vector<2x32xf32>
    %790 = math.exp %789 : vector<2x32xf32>
    %cst_314 = arith.constant 1.000000e+00 : f32
    %791 = vector.broadcast %cst_314 : f32 to vector<2x32xf32>
    %792 = arith.addf %791, %790 : vector<2x32xf32>
    %793 = arith.divf %791, %792 : vector<2x32xf32>
    %794 = arith.mulf %785, %771 : vector<2x32xf32>
    %795 = arith.mulf %779, %787 : vector<2x32xf32>
    %796 = arith.addf %794, %795 : vector<2x32xf32>
    %797 = math.tanh %796 : vector<2x32xf32>
    %798 = arith.mulf %793, %797 : vector<2x32xf32>
    %799 = vector.shape_cast %773 : vector<2x1xi1> to vector<2x1xi1>
    %800 = vector.broadcast %799 : vector<2x1xi1> to vector<2x32xi1>
    %801 = arith.select %800, %798, %770 : vector<2x32xi1>, vector<2x32xf32>
    %802 = vector.shape_cast %773 : vector<2x1xi1> to vector<2x1xi1>
    %803 = vector.broadcast %802 : vector<2x1xi1> to vector<2x32xi1>
    %804 = arith.select %803, %796, %771 : vector<2x32xi1>, vector<2x32xf32>
    %cst_315 = arith.constant 0.000000e+00 : f32
    %805 = vector.shape_cast %773 : vector<2x1xi1> to vector<2x1xi1>
    %806 = vector.broadcast %805 : vector<2x1xi1> to vector<2x32xi1>
    %807 = vector.broadcast %cst_315 : f32 to vector<2x32xf32>
    %808 = arith.select %806, %798, %807 : vector<2x32xi1>, vector<2x32xf32>
    %c0_316 = arith.constant 0 : index
    %c0_317 = arith.constant 0 : index
    %809 = vector.load %arg11[%c0_316, %c0_317] : memref<2x32xf32, #tpu.memory_space<vmem>>, vector<2x32xf32>
    tpu.vector_store %arg11[%c0_316, %c0_317], %801 {strides = array<i32>} : memref<2x32xf32, #tpu.memory_space<vmem>>, vector<2x32xf32>,
    %c0_318 = arith.constant 0 : index
    %c0_319 = arith.constant 0 : index
    %810 = vector.load %arg12[%c0_318, %c0_319] : memref<2x32xf32, #tpu.memory_space<vmem>>, vector<2x32xf32>
    tpu.vector_store %arg12[%c0_318, %c0_319], %804 {strides = array<i32>} : memref<2x32xf32, #tpu.memory_space<vmem>>, vector<2x32xf32>,
    %811 = arith.truncf %808 : vector<2x32xf32> to vector<2x32xbf16>
    %812 = arith.index_cast %757 : i32 to index
    %c0_320 = arith.constant 0 : index
    %c0_321 = arith.constant 0 : index
    %813 = vector.load %arg8[%812, %c0_320, %c0_321] : memref<8x2x32xbf16, #tpu.memory_space<vmem>>, vector<1x2x32xbf16>
    %814 = vector.shape_cast %813 : vector<1x2x32xbf16> to vector<2x32xbf16>
    %815 = vector.shape_cast %811 : vector<2x32xbf16> to vector<1x2x32xbf16>
    tpu.vector_store %arg8[%812, %c0_320, %c0_321], %815 {strides = array<i32>} : memref<8x2x32xbf16, #tpu.memory_space<vmem>>, vector<1x2x32xbf16>,
    %c7_i32_322 = arith.constant 7 : i32
    %c8_i32_323 = arith.constant 8 : i32
    %816 = arith.muli %arg0, %c8_i32_323 : i32
    %817 = arith.addi %816, %c7_i32_322 : i32
    %818 = arith.index_cast %c7_i32_322 : i32 to index
    %c0_324 = arith.constant 0 : index
    %c0_325 = arith.constant 0 : index
    %819 = vector.load %arg1[%818, %c0_324, %c0_325] : memref<8x2x128xbf16, #tpu.memory_space<vmem>>, vector<1x2x128xbf16>
    %820 = vector.shape_cast %819 : vector<1x2x128xbf16> to vector<2x128xbf16>
    %821 = arith.extf %820 : vector<2x128xbf16> to vector<2x128xf32>
    %c0_326 = arith.constant 0 : index
    %c0_327 = arith.constant 0 : index
    %822 = vector.load %arg9[%c0_326, %c0_327] : memref<2x32xf32, #tpu.memory_space<vmem>>, vector<2x32xf32>
    %823 = arith.truncf %822 : vector<2x32xf32> to vector<2x32xbf16>
    %c0_328 = arith.constant 0 : index
    %c0_329 = arith.constant 0 : index
    %824 = vector.load %arg3[%c0_328, %c0_329] : memref<32x128xbf16, #tpu.memory_space<vmem>>, vector<32x128xbf16>
    %cst_330 = arith.constant dense<0.000000e+00> : vector<2x128xf32>
    %825 = tpu.matmul %823, %824, %cst_330 {dimension_numbers = #tpu.dot_dimension_numbers<[1], [0], [0], [1], [0, 0, 1, 1], [], []>} : vector<2x32xbf16>, vector<32x128xbf16>, vector<2x128xf32> -> vector<2x128xf32>
    %826 = arith.addf %821, %825 : vector<2x128xf32>
    %c0_331 = arith.constant 0 : index
    %c0_332 = arith.constant 0 : index
    %827 = vector.load %arg9[%c0_331, %c0_332] : memref<2x32xf32, #tpu.memory_space<vmem>>, vector<2x32xf32>
    %c0_333 = arith.constant 0 : index
    %c0_334 = arith.constant 0 : index
    %828 = vector.load %arg10[%c0_333, %c0_334] : memref<2x32xf32, #tpu.memory_space<vmem>>, vector<2x32xf32>
    %829 = vector.broadcast %817 : i32 to vector<2x1xi32>
    %830 = arith.cmpi slt, %829, %3 : vector<2x1xi32>
    %831 = vector.extract_strided_slice %826 {offsets = [0, 0], sizes = [2, 32], strides = [1, 1]} : vector<2x128xf32> to vector<2x32xf32>
    %832 = arith.negf %831 : vector<2x32xf32>
    %833 = math.exp %832 : vector<2x32xf32>
    %cst_335 = arith.constant 1.000000e+00 : f32
    %834 = vector.broadcast %cst_335 : f32 to vector<2x32xf32>
    %835 = arith.addf %834, %833 : vector<2x32xf32>
    %836 = arith.divf %834, %835 : vector<2x32xf32>
    %837 = vector.extract_strided_slice %826 {offsets = [0, 32], sizes = [2, 32], strides = [1, 1]} : vector<2x128xf32> to vector<2x32xf32>
    %838 = arith.negf %837 : vector<2x32xf32>
    %839 = math.exp %838 : vector<2x32xf32>
    %cst_336 = arith.constant 1.000000e+00 : f32
    %840 = vector.broadcast %cst_336 : f32 to vector<2x32xf32>
    %841 = arith.addf %840, %839 : vector<2x32xf32>
    %842 = arith.divf %840, %841 : vector<2x32xf32>
    %843 = vector.extract_strided_slice %826 {offsets = [0, 64], sizes = [2, 32], strides = [1, 1]} : vector<2x128xf32> to vector<2x32xf32>
    %844 = math.tanh %843 : vector<2x32xf32>
    %845 = vector.extract_strided_slice %826 {offsets = [0, 96], sizes = [2, 32], strides = [1, 1]} : vector<2x128xf32> to vector<2x32xf32>
    %846 = arith.negf %845 : vector<2x32xf32>
    %847 = math.exp %846 : vector<2x32xf32>
    %cst_337 = arith.constant 1.000000e+00 : f32
    %848 = vector.broadcast %cst_337 : f32 to vector<2x32xf32>
    %849 = arith.addf %848, %847 : vector<2x32xf32>
    %850 = arith.divf %848, %849 : vector<2x32xf32>
    %851 = arith.mulf %842, %828 : vector<2x32xf32>
    %852 = arith.mulf %836, %844 : vector<2x32xf32>
    %853 = arith.addf %851, %852 : vector<2x32xf32>
    %854 = math.tanh %853 : vector<2x32xf32>
    %855 = arith.mulf %850, %854 : vector<2x32xf32>
    %856 = vector.shape_cast %830 : vector<2x1xi1> to vector<2x1xi1>
    %857 = vector.broadcast %856 : vector<2x1xi1> to vector<2x32xi1>
    %858 = arith.select %857, %855, %827 : vector<2x32xi1>, vector<2x32xf32>
    %859 = vector.shape_cast %830 : vector<2x1xi1> to vector<2x1xi1>
    %860 = vector.broadcast %859 : vector<2x1xi1> to vector<2x32xi1>
    %861 = arith.select %860, %853, %828 : vector<2x32xi1>, vector<2x32xf32>
    %cst_338 = arith.constant 0.000000e+00 : f32
    %862 = vector.shape_cast %830 : vector<2x1xi1> to vector<2x1xi1>
    %863 = vector.broadcast %862 : vector<2x1xi1> to vector<2x32xi1>
    %864 = vector.broadcast %cst_338 : f32 to vector<2x32xf32>
    %865 = arith.select %863, %855, %864 : vector<2x32xi1>, vector<2x32xf32>
    %c0_339 = arith.constant 0 : index
    %c0_340 = arith.constant 0 : index
    %866 = vector.load %arg9[%c0_339, %c0_340] : memref<2x32xf32, #tpu.memory_space<vmem>>, vector<2x32xf32>
    tpu.vector_store %arg9[%c0_339, %c0_340], %858 {strides = array<i32>} : memref<2x32xf32, #tpu.memory_space<vmem>>, vector<2x32xf32>,
    %c0_341 = arith.constant 0 : index
    %c0_342 = arith.constant 0 : index
    %867 = vector.load %arg10[%c0_341, %c0_342] : memref<2x32xf32, #tpu.memory_space<vmem>>, vector<2x32xf32>
    tpu.vector_store %arg10[%c0_341, %c0_342], %861 {strides = array<i32>} : memref<2x32xf32, #tpu.memory_space<vmem>>, vector<2x32xf32>,
    %868 = arith.truncf %865 : vector<2x32xf32> to vector<2x32xbf16>
    %869 = arith.index_cast %c7_i32_322 : i32 to index
    %c0_343 = arith.constant 0 : index
    %c0_344 = arith.constant 0 : index
    %870 = vector.load %arg7[%869, %c0_343, %c0_344] : memref<8x2x32xbf16, #tpu.memory_space<vmem>>, vector<1x2x32xbf16>
    %871 = vector.shape_cast %870 : vector<1x2x32xbf16> to vector<2x32xbf16>
    %872 = vector.shape_cast %868 : vector<2x32xbf16> to vector<1x2x32xbf16>
    tpu.vector_store %arg7[%869, %c0_343, %c0_344], %872 {strides = array<i32>} : memref<8x2x32xbf16, #tpu.memory_space<vmem>>, vector<1x2x32xbf16>,
    %c7_i32_345 = arith.constant 7 : i32
    %873 = arith.subi %c7_i32_345, %c7_i32_322 : i32
    %c0_i32_346 = arith.constant 0 : i32
    %874 = arith.subi %c0_i32_346, %arg0 : i32
    %c8_i32_347 = arith.constant 8 : i32
    %875 = arith.muli %874, %c8_i32_347 : i32
    %876 = arith.addi %875, %873 : i32
    %877 = arith.index_cast %873 : i32 to index
    %c0_348 = arith.constant 0 : index
    %c0_349 = arith.constant 0 : index
    %878 = vector.load %arg2[%877, %c0_348, %c0_349] : memref<8x2x128xbf16, #tpu.memory_space<vmem>>, vector<1x2x128xbf16>
    %879 = vector.shape_cast %878 : vector<1x2x128xbf16> to vector<2x128xbf16>
    %880 = arith.extf %879 : vector<2x128xbf16> to vector<2x128xf32>
    %c0_350 = arith.constant 0 : index
    %c0_351 = arith.constant 0 : index
    %881 = vector.load %arg11[%c0_350, %c0_351] : memref<2x32xf32, #tpu.memory_space<vmem>>, vector<2x32xf32>
    %882 = arith.truncf %881 : vector<2x32xf32> to vector<2x32xbf16>
    %c0_352 = arith.constant 0 : index
    %c0_353 = arith.constant 0 : index
    %883 = vector.load %arg4[%c0_352, %c0_353] : memref<32x128xbf16, #tpu.memory_space<vmem>>, vector<32x128xbf16>
    %cst_354 = arith.constant dense<0.000000e+00> : vector<2x128xf32>
    %884 = tpu.matmul %882, %883, %cst_354 {dimension_numbers = #tpu.dot_dimension_numbers<[1], [0], [0], [1], [0, 0, 1, 1], [], []>} : vector<2x32xbf16>, vector<32x128xbf16>, vector<2x128xf32> -> vector<2x128xf32>
    %885 = arith.addf %880, %884 : vector<2x128xf32>
    %c0_355 = arith.constant 0 : index
    %c0_356 = arith.constant 0 : index
    %886 = vector.load %arg11[%c0_355, %c0_356] : memref<2x32xf32, #tpu.memory_space<vmem>>, vector<2x32xf32>
    %c0_357 = arith.constant 0 : index
    %c0_358 = arith.constant 0 : index
    %887 = vector.load %arg12[%c0_357, %c0_358] : memref<2x32xf32, #tpu.memory_space<vmem>>, vector<2x32xf32>
    %888 = vector.broadcast %876 : i32 to vector<2x1xi32>
    %889 = arith.cmpi slt, %888, %3 : vector<2x1xi32>
    %890 = vector.extract_strided_slice %885 {offsets = [0, 0], sizes = [2, 32], strides = [1, 1]} : vector<2x128xf32> to vector<2x32xf32>
    %891 = arith.negf %890 : vector<2x32xf32>
    %892 = math.exp %891 : vector<2x32xf32>
    %cst_359 = arith.constant 1.000000e+00 : f32
    %893 = vector.broadcast %cst_359 : f32 to vector<2x32xf32>
    %894 = arith.addf %893, %892 : vector<2x32xf32>
    %895 = arith.divf %893, %894 : vector<2x32xf32>
    %896 = vector.extract_strided_slice %885 {offsets = [0, 32], sizes = [2, 32], strides = [1, 1]} : vector<2x128xf32> to vector<2x32xf32>
    %897 = arith.negf %896 : vector<2x32xf32>
    %898 = math.exp %897 : vector<2x32xf32>
    %cst_360 = arith.constant 1.000000e+00 : f32
    %899 = vector.broadcast %cst_360 : f32 to vector<2x32xf32>
    %900 = arith.addf %899, %898 : vector<2x32xf32>
    %901 = arith.divf %899, %900 : vector<2x32xf32>
    %902 = vector.extract_strided_slice %885 {offsets = [0, 64], sizes = [2, 32], strides = [1, 1]} : vector<2x128xf32> to vector<2x32xf32>
    %903 = math.tanh %902 : vector<2x32xf32>
    %904 = vector.extract_strided_slice %885 {offsets = [0, 96], sizes = [2, 32], strides = [1, 1]} : vector<2x128xf32> to vector<2x32xf32>
    %905 = arith.negf %904 : vector<2x32xf32>
    %906 = math.exp %905 : vector<2x32xf32>
    %cst_361 = arith.constant 1.000000e+00 : f32
    %907 = vector.broadcast %cst_361 : f32 to vector<2x32xf32>
    %908 = arith.addf %907, %906 : vector<2x32xf32>
    %909 = arith.divf %907, %908 : vector<2x32xf32>
    %910 = arith.mulf %901, %887 : vector<2x32xf32>
    %911 = arith.mulf %895, %903 : vector<2x32xf32>
    %912 = arith.addf %910, %911 : vector<2x32xf32>
    %913 = math.tanh %912 : vector<2x32xf32>
    %914 = arith.mulf %909, %913 : vector<2x32xf32>
    %915 = vector.shape_cast %889 : vector<2x1xi1> to vector<2x1xi1>
    %916 = vector.broadcast %915 : vector<2x1xi1> to vector<2x32xi1>
    %917 = arith.select %916, %914, %886 : vector<2x32xi1>, vector<2x32xf32>
    %918 = vector.shape_cast %889 : vector<2x1xi1> to vector<2x1xi1>
    %919 = vector.broadcast %918 : vector<2x1xi1> to vector<2x32xi1>
    %920 = arith.select %919, %912, %887 : vector<2x32xi1>, vector<2x32xf32>
    %cst_362 = arith.constant 0.000000e+00 : f32
    %921 = vector.shape_cast %889 : vector<2x1xi1> to vector<2x1xi1>
    %922 = vector.broadcast %921 : vector<2x1xi1> to vector<2x32xi1>
    %923 = vector.broadcast %cst_362 : f32 to vector<2x32xf32>
    %924 = arith.select %922, %914, %923 : vector<2x32xi1>, vector<2x32xf32>
    %c0_363 = arith.constant 0 : index
    %c0_364 = arith.constant 0 : index
    %925 = vector.load %arg11[%c0_363, %c0_364] : memref<2x32xf32, #tpu.memory_space<vmem>>, vector<2x32xf32>
    tpu.vector_store %arg11[%c0_363, %c0_364], %917 {strides = array<i32>} : memref<2x32xf32, #tpu.memory_space<vmem>>, vector<2x32xf32>,
    %c0_365 = arith.constant 0 : index
    %c0_366 = arith.constant 0 : index
    %926 = vector.load %arg12[%c0_365, %c0_366] : memref<2x32xf32, #tpu.memory_space<vmem>>, vector<2x32xf32>
    tpu.vector_store %arg12[%c0_365, %c0_366], %920 {strides = array<i32>} : memref<2x32xf32, #tpu.memory_space<vmem>>, vector<2x32xf32>,
    %927 = arith.truncf %924 : vector<2x32xf32> to vector<2x32xbf16>
    %928 = arith.index_cast %873 : i32 to index
    %c0_367 = arith.constant 0 : index
    %c0_368 = arith.constant 0 : index
    %929 = vector.load %arg8[%928, %c0_367, %c0_368] : memref<8x2x32xbf16, #tpu.memory_space<vmem>>, vector<1x2x32xbf16>
    %930 = vector.shape_cast %929 : vector<1x2x32xbf16> to vector<2x32xbf16>
    %931 = vector.shape_cast %927 : vector<2x32xbf16> to vector<1x2x32xbf16>
    tpu.vector_store %arg8[%928, %c0_367, %c0_368], %931 {strides = array<i32>} : memref<8x2x32xbf16, #tpu.memory_space<vmem>>, vector<1x2x32xbf16>,
    %c8_i32_369 = arith.constant 8 : i32
    return
  }
  func.func @transform_0(%arg0: i32) -> (i32, i32, i32) {
    %c0_i32 = arith.constant 0 : i32
    %c0_i32_0 = arith.constant 0 : i32
    %c0_i32_1 = arith.constant 0 : i32
    return %arg0, %c0_i32, %c0_i32_0 : i32, i32, i32
  }
  func.func @transform_1(%arg0: i32) -> (i32, i32, i32) {
    %c0_i32 = arith.constant 0 : i32
    %0 = arith.subi %c0_i32, %arg0 : i32
    %c0_i32_0 = arith.constant 0 : i32
    %c1_i32 = arith.constant 1 : i32
    %c0_i32_1 = arith.constant 0 : i32
    return %0, %c0_i32_0, %c1_i32 : i32, i32, i32
  }
  func.func @transform_2(%arg0: i32) -> (i32, i32) {
    %c0_i32 = arith.constant 0 : i32
    %c0_i32_0 = arith.constant 0 : i32
    %c0_i32_1 = arith.constant 0 : i32
    return %c0_i32, %c0_i32_0 : i32, i32
  }
  func.func @transform_3(%arg0: i32) -> (i32, i32) {
    %c0_i32 = arith.constant 0 : i32
    %c0_i32_0 = arith.constant 0 : i32
    %c0_i32_1 = arith.constant 0 : i32
    return %c0_i32, %c0_i32_0 : i32, i32
  }
  func.func @transform_4(%arg0: i32) -> (i32, i32) {
    %c0_i32 = arith.constant 0 : i32
    %c0_i32_0 = arith.constant 0 : i32
    %c0_i32_1 = arith.constant 0 : i32
    return %c0_i32, %c0_i32_0 : i32, i32
  }
  func.func @transform_5(%arg0: i32) -> (i32, i32) {
    %c0_i32 = arith.constant 0 : i32
    %c0_i32_0 = arith.constant 0 : i32
    %c0_i32_1 = arith.constant 0 : i32
    return %c0_i32, %c0_i32_0 : i32, i32
  }
  func.func @transform_6(%arg0: i32) -> (i32, i32, i32) {
    %c0_i32 = arith.constant 0 : i32
    %c0_i32_0 = arith.constant 0 : i32
    %c0_i32_1 = arith.constant 0 : i32
    return %arg0, %c0_i32, %c0_i32_0 : i32, i32, i32
  }
  func.func @transform_7(%arg0: i32) -> (i32, i32, i32) {
    %c0_i32 = arith.constant 0 : i32
    %0 = arith.subi %c0_i32, %arg0 : i32
    %c0_i32_0 = arith.constant 0 : i32
    %c0_i32_1 = arith.constant 0 : i32
    %c0_i32_2 = arith.constant 0 : i32
    return %0, %c0_i32_0, %c0_i32_1 : i32, i32, i32
  }
}

module attributes {stable_mosaic.version = 11 : i64} {
  func.func @_meta_kernel(%arg0: i32, %arg1: memref<8x2x32xbf16, #tpu.memory_space<vmem>>, %arg2: memref<8x2x32xbf16, #tpu.memory_space<vmem>>, %arg3: memref<2x1xi32, #tpu.memory_space<vmem>>, %arg4: memref<2x32xf32, #tpu.memory_space<vmem>>, %arg5: memref<2x32xf32, #tpu.memory_space<vmem>>, %arg6: memref<2x2x32xf32, #tpu.memory_space<vmem>>, %arg7: memref<2x32xf32, #tpu.memory_space<vmem>>, %arg8: memref<2x32xf32, #tpu.memory_space<vmem>>) attributes {dimension_semantics = [#tpu.dimension_semantics<arbitrary>], iteration_bounds = array<i64: 1>, scalar_prefetch = 0 : i64, scratch_operands = 2 : i64, tpu.core_type = #tpu.core_type<tc>, window_params = [{transform_indices = @transform_0, window_bounds = array<i64: 8, 2, 32>}, {transform_indices = @transform_1, window_bounds = array<i64: 8, 2, 32>}, {pipeline_mode = #tpu.pipeline_mode<synchronous>, transform_indices = @transform_2, window_bounds = array<i64: 2, 1>}, {pipeline_mode = #tpu.pipeline_mode<synchronous>, transform_indices = @transform_3, window_bounds = array<i64: 2, 32>}, {pipeline_mode = #tpu.pipeline_mode<synchronous>, transform_indices = @transform_4, window_bounds = array<i64: 2, 32>}, {pipeline_mode = #tpu.pipeline_mode<synchronous>, transform_indices = @transform_5, window_bounds = array<i64: 2, 2, 32>}]} {
    %c0_i32 = arith.constant 0 : i32
    %0 = arith.cmpi eq, %arg0, %c0_i32 : i32
    %1 = arith.extui %0 : i1 to i32
    %c0_i32_0 = arith.constant 0 : i32
    %2 = arith.cmpi ne, %1, %c0_i32_0 : i32
    scf.if %2 {
      %cst_17 = arith.constant 0.000000e+00 : f32
      %18 = vector.broadcast %cst_17 : f32 to vector<2x32xf32>
      %c0_18 = arith.constant 0 : index
      %c0_19 = arith.constant 0 : index
      %19 = vector.load %arg7[%c0_18, %c0_19] : memref<2x32xf32, #tpu.memory_space<vmem>>, vector<2x32xf32>
      tpu.vector_store %arg7[%c0_18, %c0_19], %18 {strides = array<i32>} : memref<2x32xf32, #tpu.memory_space<vmem>>, vector<2x32xf32>,
      %cst_20 = arith.constant 0.000000e+00 : f32
      %20 = vector.broadcast %cst_20 : f32 to vector<2x32xf32>
      %c0_21 = arith.constant 0 : index
      %c0_22 = arith.constant 0 : index
      %21 = vector.load %arg8[%c0_21, %c0_22] : memref<2x32xf32, #tpu.memory_space<vmem>>, vector<2x32xf32>
      tpu.vector_store %arg8[%c0_21, %c0_22], %20 {strides = array<i32>} : memref<2x32xf32, #tpu.memory_space<vmem>>, vector<2x32xf32>,
    } else {
    }
    %c0 = arith.constant 0 : index
    %c0_1 = arith.constant 0 : index
    %3 = vector.load %arg7[%c0, %c0_1] : memref<2x32xf32, #tpu.memory_space<vmem>>, vector<2x32xf32>
    %c0_2 = arith.constant 0 : index
    %c0_3 = arith.constant 0 : index
    %c0_4 = arith.constant 0 : index
    %4 = vector.load %arg1[%c0_2, %c0_3, %c0_4] : memref<8x2x32xbf16, #tpu.memory_space<vmem>>, vector<8x2x32xbf16>
    %5 = arith.extf %4 : vector<8x2x32xbf16> to vector<8x2x32xf32>
    %cst = arith.constant dense<0.000000e+00> : vector<2x32xf32>
    %6 = vector.multi_reduction <add>, %5, %cst [0] : vector<8x2x32xf32> to vector<2x32xf32>
    %7 = arith.addf %3, %6 : vector<2x32xf32>
    %c0_5 = arith.constant 0 : index
    %c0_6 = arith.constant 0 : index
    %8 = vector.load %arg7[%c0_5, %c0_6] : memref<2x32xf32, #tpu.memory_space<vmem>>, vector<2x32xf32>
    tpu.vector_store %arg7[%c0_5, %c0_6], %7 {strides = array<i32>} : memref<2x32xf32, #tpu.memory_space<vmem>>, vector<2x32xf32>,
    %c0_7 = arith.constant 0 : index
    %c0_8 = arith.constant 0 : index
    %9 = vector.load %arg8[%c0_7, %c0_8] : memref<2x32xf32, #tpu.memory_space<vmem>>, vector<2x32xf32>
    %c0_9 = arith.constant 0 : index
    %c0_10 = arith.constant 0 : index
    %c0_11 = arith.constant 0 : index
    %10 = vector.load %arg2[%c0_9, %c0_10, %c0_11] : memref<8x2x32xbf16, #tpu.memory_space<vmem>>, vector<8x2x32xbf16>
    %11 = arith.extf %10 : vector<8x2x32xbf16> to vector<8x2x32xf32>
    %cst_12 = arith.constant dense<0.000000e+00> : vector<2x32xf32>
    %12 = vector.multi_reduction <add>, %11, %cst_12 [0] : vector<8x2x32xf32> to vector<2x32xf32>
    %13 = arith.addf %9, %12 : vector<2x32xf32>
    %c0_13 = arith.constant 0 : index
    %c0_14 = arith.constant 0 : index
    %14 = vector.load %arg8[%c0_13, %c0_14] : memref<2x32xf32, #tpu.memory_space<vmem>>, vector<2x32xf32>
    tpu.vector_store %arg8[%c0_13, %c0_14], %13 {strides = array<i32>} : memref<2x32xf32, #tpu.memory_space<vmem>>, vector<2x32xf32>,
    %c0_i32_15 = arith.constant 0 : i32
    %15 = arith.cmpi eq, %arg0, %c0_i32_15 : i32
    %16 = arith.extui %15 : i1 to i32
    %c0_i32_16 = arith.constant 0 : i32
    %17 = arith.cmpi ne, %16, %c0_i32_16 : i32
    scf.if %17 {
      %c0_17 = arith.constant 0 : index
      %c0_18 = arith.constant 0 : index
      %18 = vector.load %arg3[%c0_17, %c0_18] : memref<2x1xi32, #tpu.memory_space<vmem>>, vector<2x1xi32>
      %c1_i32 = arith.constant 1 : i32
      %19 = vector.broadcast %c1_i32 : i32 to vector<2x1xi32>
      %20 = arith.maxsi %18, %19 : vector<2x1xi32>
      %21 = arith.sitofp %20 : vector<2x1xi32> to vector<2x1xf32>
      %c0_19 = arith.constant 0 : index
      %c0_20 = arith.constant 0 : index
      %22 = vector.load %arg4[%c0_19, %c0_20] : memref<2x32xf32, #tpu.memory_space<vmem>>, vector<2x32xf32>
      %c0_21 = arith.constant 0 : index
      %c0_22 = arith.constant 0 : index
      %23 = vector.load %arg7[%c0_21, %c0_22] : memref<2x32xf32, #tpu.memory_space<vmem>>, vector<2x32xf32>
      %24 = vector.broadcast %21 : vector<2x1xf32> to vector<2x32xf32>
      %25 = arith.divf %23, %24 : vector<2x32xf32>
      %26 = arith.addf %22, %25 : vector<2x32xf32>
      %cst_23 = arith.constant 5.000000e-01 : f32
      %27 = vector.broadcast %cst_23 : f32 to vector<2x32xf32>
      %28 = arith.mulf %27, %26 : vector<2x32xf32>
      %c0_24 = arith.constant 0 : index
      %c0_25 = arith.constant 0 : index
      %c0_26 = arith.constant 0 : index
      %29 = vector.load %arg6[%c0_24, %c0_25, %c0_26] : memref<2x2x32xf32, #tpu.memory_space<vmem>>, vector<2x1x32xf32>
      %30 = vector.shape_cast %29 : vector<2x1x32xf32> to vector<2x32xf32>
      %31 = vector.shape_cast %28 : vector<2x32xf32> to vector<2x1x32xf32>
      tpu.vector_store %arg6[%c0_24, %c0_25, %c0_26], %31 {strides = array<i32>} : memref<2x2x32xf32, #tpu.memory_space<vmem>>, vector<2x1x32xf32>,
      %c0_27 = arith.constant 0 : index
      %c0_28 = arith.constant 0 : index
      %32 = vector.load %arg5[%c0_27, %c0_28] : memref<2x32xf32, #tpu.memory_space<vmem>>, vector<2x32xf32>
      %c0_29 = arith.constant 0 : index
      %c0_30 = arith.constant 0 : index
      %33 = vector.load %arg8[%c0_29, %c0_30] : memref<2x32xf32, #tpu.memory_space<vmem>>, vector<2x32xf32>
      %34 = vector.broadcast %21 : vector<2x1xf32> to vector<2x32xf32>
      %35 = arith.divf %33, %34 : vector<2x32xf32>
      %36 = arith.addf %32, %35 : vector<2x32xf32>
      %cst_31 = arith.constant 5.000000e-01 : f32
      %37 = vector.broadcast %cst_31 : f32 to vector<2x32xf32>
      %38 = arith.mulf %37, %36 : vector<2x32xf32>
      %c0_32 = arith.constant 0 : index
      %c1 = arith.constant 1 : index
      %c0_33 = arith.constant 0 : index
      %39 = vector.load %arg6[%c0_32, %c1, %c0_33] : memref<2x2x32xf32, #tpu.memory_space<vmem>>, vector<2x1x32xf32>
      %40 = vector.shape_cast %39 : vector<2x1x32xf32> to vector<2x32xf32>
      %41 = vector.shape_cast %38 : vector<2x32xf32> to vector<2x1x32xf32>
      tpu.vector_store %arg6[%c0_32, %c1, %c0_33], %41 {strides = array<i32>} : memref<2x2x32xf32, #tpu.memory_space<vmem>>, vector<2x1x32xf32>,
    } else {
    }
    return
  }
  func.func @transform_0(%arg0: i32) -> (i32, i32, i32) {
    %c0_i32 = arith.constant 0 : i32
    %c0_i32_0 = arith.constant 0 : i32
    %c0_i32_1 = arith.constant 0 : i32
    return %arg0, %c0_i32, %c0_i32_0 : i32, i32, i32
  }
  func.func @transform_1(%arg0: i32) -> (i32, i32, i32) {
    %c0_i32 = arith.constant 0 : i32
    %c0_i32_0 = arith.constant 0 : i32
    %c0_i32_1 = arith.constant 0 : i32
    return %arg0, %c0_i32, %c0_i32_0 : i32, i32, i32
  }
  func.func @transform_2(%arg0: i32) -> (i32, i32) {
    %c0_i32 = arith.constant 0 : i32
    %c0_i32_0 = arith.constant 0 : i32
    %c0_i32_1 = arith.constant 0 : i32
    return %c0_i32, %c0_i32_0 : i32, i32
  }
  func.func @transform_3(%arg0: i32) -> (i32, i32) {
    %c0_i32 = arith.constant 0 : i32
    %c0_i32_0 = arith.constant 0 : i32
    %c0_i32_1 = arith.constant 0 : i32
    return %c0_i32, %c0_i32_0 : i32, i32
  }
  func.func @transform_4(%arg0: i32) -> (i32, i32) {
    %c0_i32 = arith.constant 0 : i32
    %c0_i32_0 = arith.constant 0 : i32
    %c0_i32_1 = arith.constant 0 : i32
    return %c0_i32, %c0_i32_0 : i32, i32
  }
  func.func @transform_5(%arg0: i32) -> (i32, i32, i32) {
    %c0_i32 = arith.constant 0 : i32
    %c0_i32_0 = arith.constant 0 : i32
    %c0_i32_1 = arith.constant 0 : i32
    %c0_i32_2 = arith.constant 0 : i32
    return %c0_i32, %c0_i32_0, %c0_i32_1 : i32, i32, i32
  }
}

module attributes {stable_mosaic.version = 11 : i64} {
  func.func @_pack_kernel(%arg0: i32, %arg1: memref<8x2x32xbf16, #tpu.memory_space<vmem>>, %arg2: memref<8x2x32xbf16, #tpu.memory_space<vmem>>, %arg3: memref<2x8x64xf32, #tpu.memory_space<vmem>>) attributes {dimension_semantics = [#tpu.dimension_semantics<parallel>], iteration_bounds = array<i64: 1>, scalar_prefetch = 0 : i64, scratch_operands = 0 : i64, tpu.core_type = #tpu.core_type<tc>, window_params = [{transform_indices = @transform_0, window_bounds = array<i64: 8, 2, 32>}, {transform_indices = @transform_1, window_bounds = array<i64: 8, 2, 32>}, {transform_indices = @transform_2, window_bounds = array<i64: 2, 8, 64>}]} {
    %c0 = arith.constant 0 : index
    %c0_0 = arith.constant 0 : index
    %c0_1 = arith.constant 0 : index
    %0 = vector.load %arg1[%c0, %c0_0, %c0_1] : memref<8x2x32xbf16, #tpu.memory_space<vmem>>, vector<1x2x32xbf16>
    %1 = vector.shape_cast %0 : vector<1x2x32xbf16> to vector<2x32xbf16>
    %2 = arith.extf %1 : vector<2x32xbf16> to vector<2x32xf32>
    %c0_2 = arith.constant 0 : index
    %c0_3 = arith.constant 0 : index
    %c0_4 = arith.constant 0 : index
    %3 = vector.load %arg3[%c0_2, %c0_3, %c0_4] : memref<2x8x64xf32, #tpu.memory_space<vmem>>, vector<2x1x32xf32>
    %4 = vector.shape_cast %3 : vector<2x1x32xf32> to vector<2x32xf32>
    %5 = vector.shape_cast %2 : vector<2x32xf32> to vector<2x1x32xf32>
    tpu.vector_store %arg3[%c0_2, %c0_3, %c0_4], %5 {strides = array<i32>} : memref<2x8x64xf32, #tpu.memory_space<vmem>>, vector<2x1x32xf32>,
    %c0_5 = arith.constant 0 : index
    %c0_6 = arith.constant 0 : index
    %c0_7 = arith.constant 0 : index
    %6 = vector.load %arg2[%c0_5, %c0_6, %c0_7] : memref<8x2x32xbf16, #tpu.memory_space<vmem>>, vector<1x2x32xbf16>
    %7 = vector.shape_cast %6 : vector<1x2x32xbf16> to vector<2x32xbf16>
    %8 = arith.extf %7 : vector<2x32xbf16> to vector<2x32xf32>
    %c0_8 = arith.constant 0 : index
    %c0_9 = arith.constant 0 : index
    %c32 = arith.constant 32 : index
    %9 = vector.load %arg3[%c0_8, %c0_9, %c32] : memref<2x8x64xf32, #tpu.memory_space<vmem>>, vector<2x1x32xf32>
    %10 = vector.shape_cast %9 : vector<2x1x32xf32> to vector<2x32xf32>
    %11 = vector.shape_cast %8 : vector<2x32xf32> to vector<2x1x32xf32>
    tpu.vector_store %arg3[%c0_8, %c0_9, %c32], %11 {strides = array<i32>} : memref<2x8x64xf32, #tpu.memory_space<vmem>>, vector<2x1x32xf32>,
    %c1 = arith.constant 1 : index
    %c0_10 = arith.constant 0 : index
    %c0_11 = arith.constant 0 : index
    %12 = vector.load %arg1[%c1, %c0_10, %c0_11] : memref<8x2x32xbf16, #tpu.memory_space<vmem>>, vector<1x2x32xbf16>
    %13 = vector.shape_cast %12 : vector<1x2x32xbf16> to vector<2x32xbf16>
    %14 = arith.extf %13 : vector<2x32xbf16> to vector<2x32xf32>
    %c0_12 = arith.constant 0 : index
    %c1_13 = arith.constant 1 : index
    %c0_14 = arith.constant 0 : index
    %15 = vector.load %arg3[%c0_12, %c1_13, %c0_14] : memref<2x8x64xf32, #tpu.memory_space<vmem>>, vector<2x1x32xf32>
    %16 = vector.shape_cast %15 : vector<2x1x32xf32> to vector<2x32xf32>
    %17 = vector.shape_cast %14 : vector<2x32xf32> to vector<2x1x32xf32>
    tpu.vector_store %arg3[%c0_12, %c1_13, %c0_14], %17 {strides = array<i32>} : memref<2x8x64xf32, #tpu.memory_space<vmem>>, vector<2x1x32xf32>,
    %c1_15 = arith.constant 1 : index
    %c0_16 = arith.constant 0 : index
    %c0_17 = arith.constant 0 : index
    %18 = vector.load %arg2[%c1_15, %c0_16, %c0_17] : memref<8x2x32xbf16, #tpu.memory_space<vmem>>, vector<1x2x32xbf16>
    %19 = vector.shape_cast %18 : vector<1x2x32xbf16> to vector<2x32xbf16>
    %20 = arith.extf %19 : vector<2x32xbf16> to vector<2x32xf32>
    %c0_18 = arith.constant 0 : index
    %c1_19 = arith.constant 1 : index
    %c32_20 = arith.constant 32 : index
    %21 = vector.load %arg3[%c0_18, %c1_19, %c32_20] : memref<2x8x64xf32, #tpu.memory_space<vmem>>, vector<2x1x32xf32>
    %22 = vector.shape_cast %21 : vector<2x1x32xf32> to vector<2x32xf32>
    %23 = vector.shape_cast %20 : vector<2x32xf32> to vector<2x1x32xf32>
    tpu.vector_store %arg3[%c0_18, %c1_19, %c32_20], %23 {strides = array<i32>} : memref<2x8x64xf32, #tpu.memory_space<vmem>>, vector<2x1x32xf32>,
    %c2 = arith.constant 2 : index
    %c0_21 = arith.constant 0 : index
    %c0_22 = arith.constant 0 : index
    %24 = vector.load %arg1[%c2, %c0_21, %c0_22] : memref<8x2x32xbf16, #tpu.memory_space<vmem>>, vector<1x2x32xbf16>
    %25 = vector.shape_cast %24 : vector<1x2x32xbf16> to vector<2x32xbf16>
    %26 = arith.extf %25 : vector<2x32xbf16> to vector<2x32xf32>
    %c0_23 = arith.constant 0 : index
    %c2_24 = arith.constant 2 : index
    %c0_25 = arith.constant 0 : index
    %27 = vector.load %arg3[%c0_23, %c2_24, %c0_25] : memref<2x8x64xf32, #tpu.memory_space<vmem>>, vector<2x1x32xf32>
    %28 = vector.shape_cast %27 : vector<2x1x32xf32> to vector<2x32xf32>
    %29 = vector.shape_cast %26 : vector<2x32xf32> to vector<2x1x32xf32>
    tpu.vector_store %arg3[%c0_23, %c2_24, %c0_25], %29 {strides = array<i32>} : memref<2x8x64xf32, #tpu.memory_space<vmem>>, vector<2x1x32xf32>,
    %c2_26 = arith.constant 2 : index
    %c0_27 = arith.constant 0 : index
    %c0_28 = arith.constant 0 : index
    %30 = vector.load %arg2[%c2_26, %c0_27, %c0_28] : memref<8x2x32xbf16, #tpu.memory_space<vmem>>, vector<1x2x32xbf16>
    %31 = vector.shape_cast %30 : vector<1x2x32xbf16> to vector<2x32xbf16>
    %32 = arith.extf %31 : vector<2x32xbf16> to vector<2x32xf32>
    %c0_29 = arith.constant 0 : index
    %c2_30 = arith.constant 2 : index
    %c32_31 = arith.constant 32 : index
    %33 = vector.load %arg3[%c0_29, %c2_30, %c32_31] : memref<2x8x64xf32, #tpu.memory_space<vmem>>, vector<2x1x32xf32>
    %34 = vector.shape_cast %33 : vector<2x1x32xf32> to vector<2x32xf32>
    %35 = vector.shape_cast %32 : vector<2x32xf32> to vector<2x1x32xf32>
    tpu.vector_store %arg3[%c0_29, %c2_30, %c32_31], %35 {strides = array<i32>} : memref<2x8x64xf32, #tpu.memory_space<vmem>>, vector<2x1x32xf32>,
    %c3 = arith.constant 3 : index
    %c0_32 = arith.constant 0 : index
    %c0_33 = arith.constant 0 : index
    %36 = vector.load %arg1[%c3, %c0_32, %c0_33] : memref<8x2x32xbf16, #tpu.memory_space<vmem>>, vector<1x2x32xbf16>
    %37 = vector.shape_cast %36 : vector<1x2x32xbf16> to vector<2x32xbf16>
    %38 = arith.extf %37 : vector<2x32xbf16> to vector<2x32xf32>
    %c0_34 = arith.constant 0 : index
    %c3_35 = arith.constant 3 : index
    %c0_36 = arith.constant 0 : index
    %39 = vector.load %arg3[%c0_34, %c3_35, %c0_36] : memref<2x8x64xf32, #tpu.memory_space<vmem>>, vector<2x1x32xf32>
    %40 = vector.shape_cast %39 : vector<2x1x32xf32> to vector<2x32xf32>
    %41 = vector.shape_cast %38 : vector<2x32xf32> to vector<2x1x32xf32>
    tpu.vector_store %arg3[%c0_34, %c3_35, %c0_36], %41 {strides = array<i32>} : memref<2x8x64xf32, #tpu.memory_space<vmem>>, vector<2x1x32xf32>,
    %c3_37 = arith.constant 3 : index
    %c0_38 = arith.constant 0 : index
    %c0_39 = arith.constant 0 : index
    %42 = vector.load %arg2[%c3_37, %c0_38, %c0_39] : memref<8x2x32xbf16, #tpu.memory_space<vmem>>, vector<1x2x32xbf16>
    %43 = vector.shape_cast %42 : vector<1x2x32xbf16> to vector<2x32xbf16>
    %44 = arith.extf %43 : vector<2x32xbf16> to vector<2x32xf32>
    %c0_40 = arith.constant 0 : index
    %c3_41 = arith.constant 3 : index
    %c32_42 = arith.constant 32 : index
    %45 = vector.load %arg3[%c0_40, %c3_41, %c32_42] : memref<2x8x64xf32, #tpu.memory_space<vmem>>, vector<2x1x32xf32>
    %46 = vector.shape_cast %45 : vector<2x1x32xf32> to vector<2x32xf32>
    %47 = vector.shape_cast %44 : vector<2x32xf32> to vector<2x1x32xf32>
    tpu.vector_store %arg3[%c0_40, %c3_41, %c32_42], %47 {strides = array<i32>} : memref<2x8x64xf32, #tpu.memory_space<vmem>>, vector<2x1x32xf32>,
    %c4 = arith.constant 4 : index
    %c0_43 = arith.constant 0 : index
    %c0_44 = arith.constant 0 : index
    %48 = vector.load %arg1[%c4, %c0_43, %c0_44] : memref<8x2x32xbf16, #tpu.memory_space<vmem>>, vector<1x2x32xbf16>
    %49 = vector.shape_cast %48 : vector<1x2x32xbf16> to vector<2x32xbf16>
    %50 = arith.extf %49 : vector<2x32xbf16> to vector<2x32xf32>
    %c0_45 = arith.constant 0 : index
    %c4_46 = arith.constant 4 : index
    %c0_47 = arith.constant 0 : index
    %51 = vector.load %arg3[%c0_45, %c4_46, %c0_47] : memref<2x8x64xf32, #tpu.memory_space<vmem>>, vector<2x1x32xf32>
    %52 = vector.shape_cast %51 : vector<2x1x32xf32> to vector<2x32xf32>
    %53 = vector.shape_cast %50 : vector<2x32xf32> to vector<2x1x32xf32>
    tpu.vector_store %arg3[%c0_45, %c4_46, %c0_47], %53 {strides = array<i32>} : memref<2x8x64xf32, #tpu.memory_space<vmem>>, vector<2x1x32xf32>,
    %c4_48 = arith.constant 4 : index
    %c0_49 = arith.constant 0 : index
    %c0_50 = arith.constant 0 : index
    %54 = vector.load %arg2[%c4_48, %c0_49, %c0_50] : memref<8x2x32xbf16, #tpu.memory_space<vmem>>, vector<1x2x32xbf16>
    %55 = vector.shape_cast %54 : vector<1x2x32xbf16> to vector<2x32xbf16>
    %56 = arith.extf %55 : vector<2x32xbf16> to vector<2x32xf32>
    %c0_51 = arith.constant 0 : index
    %c4_52 = arith.constant 4 : index
    %c32_53 = arith.constant 32 : index
    %57 = vector.load %arg3[%c0_51, %c4_52, %c32_53] : memref<2x8x64xf32, #tpu.memory_space<vmem>>, vector<2x1x32xf32>
    %58 = vector.shape_cast %57 : vector<2x1x32xf32> to vector<2x32xf32>
    %59 = vector.shape_cast %56 : vector<2x32xf32> to vector<2x1x32xf32>
    tpu.vector_store %arg3[%c0_51, %c4_52, %c32_53], %59 {strides = array<i32>} : memref<2x8x64xf32, #tpu.memory_space<vmem>>, vector<2x1x32xf32>,
    %c5 = arith.constant 5 : index
    %c0_54 = arith.constant 0 : index
    %c0_55 = arith.constant 0 : index
    %60 = vector.load %arg1[%c5, %c0_54, %c0_55] : memref<8x2x32xbf16, #tpu.memory_space<vmem>>, vector<1x2x32xbf16>
    %61 = vector.shape_cast %60 : vector<1x2x32xbf16> to vector<2x32xbf16>
    %62 = arith.extf %61 : vector<2x32xbf16> to vector<2x32xf32>
    %c0_56 = arith.constant 0 : index
    %c5_57 = arith.constant 5 : index
    %c0_58 = arith.constant 0 : index
    %63 = vector.load %arg3[%c0_56, %c5_57, %c0_58] : memref<2x8x64xf32, #tpu.memory_space<vmem>>, vector<2x1x32xf32>
    %64 = vector.shape_cast %63 : vector<2x1x32xf32> to vector<2x32xf32>
    %65 = vector.shape_cast %62 : vector<2x32xf32> to vector<2x1x32xf32>
    tpu.vector_store %arg3[%c0_56, %c5_57, %c0_58], %65 {strides = array<i32>} : memref<2x8x64xf32, #tpu.memory_space<vmem>>, vector<2x1x32xf32>,
    %c5_59 = arith.constant 5 : index
    %c0_60 = arith.constant 0 : index
    %c0_61 = arith.constant 0 : index
    %66 = vector.load %arg2[%c5_59, %c0_60, %c0_61] : memref<8x2x32xbf16, #tpu.memory_space<vmem>>, vector<1x2x32xbf16>
    %67 = vector.shape_cast %66 : vector<1x2x32xbf16> to vector<2x32xbf16>
    %68 = arith.extf %67 : vector<2x32xbf16> to vector<2x32xf32>
    %c0_62 = arith.constant 0 : index
    %c5_63 = arith.constant 5 : index
    %c32_64 = arith.constant 32 : index
    %69 = vector.load %arg3[%c0_62, %c5_63, %c32_64] : memref<2x8x64xf32, #tpu.memory_space<vmem>>, vector<2x1x32xf32>
    %70 = vector.shape_cast %69 : vector<2x1x32xf32> to vector<2x32xf32>
    %71 = vector.shape_cast %68 : vector<2x32xf32> to vector<2x1x32xf32>
    tpu.vector_store %arg3[%c0_62, %c5_63, %c32_64], %71 {strides = array<i32>} : memref<2x8x64xf32, #tpu.memory_space<vmem>>, vector<2x1x32xf32>,
    %c6 = arith.constant 6 : index
    %c0_65 = arith.constant 0 : index
    %c0_66 = arith.constant 0 : index
    %72 = vector.load %arg1[%c6, %c0_65, %c0_66] : memref<8x2x32xbf16, #tpu.memory_space<vmem>>, vector<1x2x32xbf16>
    %73 = vector.shape_cast %72 : vector<1x2x32xbf16> to vector<2x32xbf16>
    %74 = arith.extf %73 : vector<2x32xbf16> to vector<2x32xf32>
    %c0_67 = arith.constant 0 : index
    %c6_68 = arith.constant 6 : index
    %c0_69 = arith.constant 0 : index
    %75 = vector.load %arg3[%c0_67, %c6_68, %c0_69] : memref<2x8x64xf32, #tpu.memory_space<vmem>>, vector<2x1x32xf32>
    %76 = vector.shape_cast %75 : vector<2x1x32xf32> to vector<2x32xf32>
    %77 = vector.shape_cast %74 : vector<2x32xf32> to vector<2x1x32xf32>
    tpu.vector_store %arg3[%c0_67, %c6_68, %c0_69], %77 {strides = array<i32>} : memref<2x8x64xf32, #tpu.memory_space<vmem>>, vector<2x1x32xf32>,
    %c6_70 = arith.constant 6 : index
    %c0_71 = arith.constant 0 : index
    %c0_72 = arith.constant 0 : index
    %78 = vector.load %arg2[%c6_70, %c0_71, %c0_72] : memref<8x2x32xbf16, #tpu.memory_space<vmem>>, vector<1x2x32xbf16>
    %79 = vector.shape_cast %78 : vector<1x2x32xbf16> to vector<2x32xbf16>
    %80 = arith.extf %79 : vector<2x32xbf16> to vector<2x32xf32>
    %c0_73 = arith.constant 0 : index
    %c6_74 = arith.constant 6 : index
    %c32_75 = arith.constant 32 : index
    %81 = vector.load %arg3[%c0_73, %c6_74, %c32_75] : memref<2x8x64xf32, #tpu.memory_space<vmem>>, vector<2x1x32xf32>
    %82 = vector.shape_cast %81 : vector<2x1x32xf32> to vector<2x32xf32>
    %83 = vector.shape_cast %80 : vector<2x32xf32> to vector<2x1x32xf32>
    tpu.vector_store %arg3[%c0_73, %c6_74, %c32_75], %83 {strides = array<i32>} : memref<2x8x64xf32, #tpu.memory_space<vmem>>, vector<2x1x32xf32>,
    %c7 = arith.constant 7 : index
    %c0_76 = arith.constant 0 : index
    %c0_77 = arith.constant 0 : index
    %84 = vector.load %arg1[%c7, %c0_76, %c0_77] : memref<8x2x32xbf16, #tpu.memory_space<vmem>>, vector<1x2x32xbf16>
    %85 = vector.shape_cast %84 : vector<1x2x32xbf16> to vector<2x32xbf16>
    %86 = arith.extf %85 : vector<2x32xbf16> to vector<2x32xf32>
    %c0_78 = arith.constant 0 : index
    %c7_79 = arith.constant 7 : index
    %c0_80 = arith.constant 0 : index
    %87 = vector.load %arg3[%c0_78, %c7_79, %c0_80] : memref<2x8x64xf32, #tpu.memory_space<vmem>>, vector<2x1x32xf32>
    %88 = vector.shape_cast %87 : vector<2x1x32xf32> to vector<2x32xf32>
    %89 = vector.shape_cast %86 : vector<2x32xf32> to vector<2x1x32xf32>
    tpu.vector_store %arg3[%c0_78, %c7_79, %c0_80], %89 {strides = array<i32>} : memref<2x8x64xf32, #tpu.memory_space<vmem>>, vector<2x1x32xf32>,
    %c7_81 = arith.constant 7 : index
    %c0_82 = arith.constant 0 : index
    %c0_83 = arith.constant 0 : index
    %90 = vector.load %arg2[%c7_81, %c0_82, %c0_83] : memref<8x2x32xbf16, #tpu.memory_space<vmem>>, vector<1x2x32xbf16>
    %91 = vector.shape_cast %90 : vector<1x2x32xbf16> to vector<2x32xbf16>
    %92 = arith.extf %91 : vector<2x32xbf16> to vector<2x32xf32>
    %c0_84 = arith.constant 0 : index
    %c7_85 = arith.constant 7 : index
    %c32_86 = arith.constant 32 : index
    %93 = vector.load %arg3[%c0_84, %c7_85, %c32_86] : memref<2x8x64xf32, #tpu.memory_space<vmem>>, vector<2x1x32xf32>
    %94 = vector.shape_cast %93 : vector<2x1x32xf32> to vector<2x32xf32>
    %95 = vector.shape_cast %92 : vector<2x32xf32> to vector<2x1x32xf32>
    tpu.vector_store %arg3[%c0_84, %c7_85, %c32_86], %95 {strides = array<i32>} : memref<2x8x64xf32, #tpu.memory_space<vmem>>, vector<2x1x32xf32>,
    return
  }
  func.func @transform_0(%arg0: i32) -> (i32, i32, i32) {
    %c0_i32 = arith.constant 0 : i32
    %c0_i32_0 = arith.constant 0 : i32
    %c0_i32_1 = arith.constant 0 : i32
    return %arg0, %c0_i32, %c0_i32_0 : i32, i32, i32
  }
  func.func @transform_1(%arg0: i32) -> (i32, i32, i32) {
    %c0_i32 = arith.constant 0 : i32
    %c0_i32_0 = arith.constant 0 : i32
    %c0_i32_1 = arith.constant 0 : i32
    return %arg0, %c0_i32, %c0_i32_0 : i32, i32, i32
  }
  func.func @transform_2(%arg0: i32) -> (i32, i32, i32) {
    %c0_i32 = arith.constant 0 : i32
    %c0_i32_0 = arith.constant 0 : i32
    %c0_i32_1 = arith.constant 0 : i32
    return %c0_i32, %arg0, %c0_i32_0 : i32, i32, i32
  }
}

</mosaic_0001>

<bundles_post_ra>
// kernel: lstm_word_attention_forward.7
= control target key start
LH: loop header
LB: loop body
LE: loop exit
PB: predicated region body
PF: predicated region fallthrough
CT: control target
= control target key end

     0   :  { %vm19_vm0 = vcmask 261120   ;;  %v109_v0 = vmov 0.0   ;;  %vm110_vm1 = vmmov 0   ;;  %vm31_vm2 = vcmask 130048   ;;  %s146_s1 = inlined_call_operand.vmem [shape: bf16[16,32], index: 1, kind: input, shape index: {}]   ;;  %s147_s0 = inlined_call_operand.vmem [shape: bf16[8,16], index: 0, kind: input, shape index: {}]   ;;  %s148_s2 = inlined_call_operand.vmem [shape: f32[1,32], index: 2, kind: input, shape index: {}]   ;;  %s149_s3 = inlined_call_operand.vmem [shape: f32[8,32], index: 3, kind: output, shape index: {}]  }
   0x1   :  { %20 = vst.msk [vmem:[#allocation2] sm:$0xff] %vm19_vm0, %v109_v0  ;;  %100 = vmatprep.subr.bf16.mxu0 %v109_v0  ;;  %v108_v1 = vld [vmem:[%s146_s1] sm:$0xff]   ;;  %102 = vmatprep.mubr.msk.bf16.mxu0 %vm110_vm1, %v109_v0 }
   0x2   :  { %101 = vmatpush3.bf16.msra.mxu0 %v108_v1  ;;  %v22_v2 = vld [vmem:[%s147_s0] sm:$0xf] }
   0x3   :  { %v97_v9 = vld [vmem:[%s148_s2] ss:$0 sm:$0xff] }
   0x5   :  { %103 = vmatmul.mubr.msk.bf16.vlgmr.msra.gmra.mxu0 %vm31_vm2, %v22_v2 }
   0x8   :  { %v21_v3 = vld [vmem:[#allocation2] sm:$0xff] }
  0xc5   :  { %v69_v4 = vpop.f32.mrf.mxu0 }
  0xc6   :  { %v75_v5 = vadd.f32 %v69_v4, %v21_v3 }
  0xc7   :  { %v104_v6 = vpop.f32.mrf.mxu0 }
  0xc8   :  { %77 = vst.msk [vmem:[#allocation2] sm:$0xff] %vm19_vm0, %v75_v5 }
  0xc9   :  { %v72_v7 = vpop.f32.mrf.mxu0 }
  0xcb   :  { %v105_v8 = vpop.f32.mrf.mxu0 }
  0xcf   :  { %v81_v10 = vld [vmem:[#allocation2] sm:$0xff] }
  0xd0   :  { %v89_v11 = vadd.f32 %v97_v9, %v81_v10 }
  0xd2   :  { %90 = vst.msk [vmem:[%s149_s3] sm:$0xff] %vm19_vm0, %v89_v11 }

// kernel: lstm_word_attention_forward.8
= control target key start
LH: loop header
LB: loop body
LE: loop exit
PB: predicated region body
PF: predicated region fallthrough
CT: control target
= control target key end

     0   :  { %v155_v1 = vmov 0   ;;  %vm46_vm0 = vcmask 130048   ;;  %v110_v4 = vlaneseq  ;;  %s194_s1 = inlined_call_operand.vmem [shape: bf16[16,256], index: 1, kind: input, shape index: {}]   ;;  %s195_s0 = inlined_call_operand.vmem [shape: bf16[16,16], index: 0, kind: input, shape index: {}]   ;;  %s196_s2 = inlined_call_operand.vmem [shape: f32[1,256], index: 2, kind: input, shape index: {}]   ;;  %s197_s3 = inlined_call_operand.vmem [shape: bf16[16,256], index: 3, kind: output, shape index: {}]  }
   0x1   :  { %v151_v0 = vld [vmem:[%s194_s1 + $0x4] ss:$8 sps:$4 sm:$0xff]   ;;  %82 = vmatprep.mubr.bf16.mxu0 %v155_v1  ;;  %v153_v2 = vld [vmem:[%s194_s1] ss:$8 sps:$4 sm:$0xff]  }
   0x2   :  { %64 = vmatprep.subr.bf16.mxu0 %v151_v0  ;;  %v154_v3 = vld [vmem:[%s195_s0] sm:$0xff]   ;;  %v111_v5 = vshrl.u32 %v110_v4, 7 }
   0x3   :  { %65 = vmatpush1.bf16.msra.mxu0 %v153_v2  ;;  %v108_v8 = vld [vmem:[%s196_s2] sm:$0x3] }
   0x4   :  { %v112_v6 = vsub.s32 0, %v111_v5  ;;  %v116_v7 = vsub.s32 1, %v111_v5 }
   0x6   :  { %145 = vmatmul.mubr.msk.bf16.vlgmr.msra.gmra.mxu0 %vm46_vm0, %v154_v3  ;;  %v113_v9 = vrot.slane %v108_v8, %v112_v6  ;;  %v117_v10 = vrot.slane %v108_v8, %v116_v7 }
  0xc6   :  { %v84_v11 = vpop.f32.mrf.mxu0 }
  0xc7   :  { %v120_v13 = vadd.f32 %v113_v9, %v84_v11 }
  0xc8   :  { %v86_v12 = vpop.f32.mrf.mxu0 }
  0xc9   :  { %v121_v14 = vadd.f32 %v117_v10, %v86_v12 }
  0xca   :  { %v88_v15 = vpop.f32.mrf.mxu0 }
  0xcb   :  { %v148_v16 = vpack.c.bf16 %v121_v14, %v120_v13  ;;  %v122_v18 = vadd.f32 %v113_v9, %v88_v15 }
  0xcc   :  { %v90_v17 = vpop.f32.mrf.mxu0 }
  0xcd   :  { %136 = vst [vmem:[%s197_s3] sm:$0xff] %v148_v16  ;;  %v123_v19 = vadd.f32 %v117_v10, %v90_v17 }
  0xcf   :  { %v149_v20 = vpack.c.bf16 %v123_v19, %v122_v18 }
  0xd1   :  { %137 = vst [vmem:[%s197_s3 + $0x8] sm:$0xff] %v149_v20 }

// kernel: lstm_word_attention_forward.10
= control target key start
LH: loop header
LB: loop body
LE: loop exit
PB: predicated region body
PF: predicated region fallthrough
CT: control target
= control target key end

     0   :  { %v241_v1 = vmov 0   ;;  %vm58_vm0 = vcmask 261120   ;;  %v178_v11 = vlaneseq  ;;  %s311_s3 = inlined_call_operand.vmem [shape: bf16[32,256], index: 3, kind: input, shape index: {}]   ;;  %s312_s2 = inlined_call_operand.vmem [shape: bf16[32,256], index: 2, kind: input, shape index: {}]   ;;  %s313_s1 = inlined_call_operand.vmem [shape: bf16[16,32], index: 1, kind: input, shape index: {}]   ;;  %s314_s0 = inlined_call_operand.vmem [shape: bf16[16,32], index: 0, kind: input, shape index: {}]   ;;  %s315_s4 = inlined_call_operand.vmem [shape: f32[1,256], index: 4, kind: input, shape index: {}]   ;;  %s316_s5 = inlined_call_operand.vmem [shape: bf16[16,256], index: 5, kind: output, shape index: {}]  }
   0x1   :  { %v227_v0 = vld [vmem:[%s311_s3 + $0x14] ss:$8 sps:$4 sm:$0xff]   ;;  %94 = vmatprep.mubr.bf16.mxu0 %v241_v1  ;;  %165 = vmatprep.mubr.bf16.mxu1 %v241_v1  ;;  %v231_v3 = vld [vmem:[%s311_s3 + $0x10] ss:$8 sps:$4 sm:$0xff]   ;;  %v233_v5 = vld [vmem:[%s311_s3 + $0x4] ss:$8 sps:$4 sm:$0xff]  }
   0x2   :  { %v229_v2 = vld [vmem:[%s312_s2 + $0x14] ss:$8 sps:$4 sm:$0xff]   ;;  %74 = vmatprep.subr.bf16.mxu0 %v227_v0  ;;  %v232_v4 = vld [vmem:[%s312_s2 + $0x10] ss:$8 sps:$4 sm:$0xff]   ;;  %v235_v6 = vld [vmem:[%s312_s2 + $0x4] ss:$8 sps:$4 sm:$0xff]  }
   0x3   :  { %145 = vmatprep.subr.bf16.mxu1 %v229_v2  ;;  %75 = vmatpush1.bf16.msra.mxu0 %v231_v3  ;;  %v237_v7 = vld [vmem:[%s311_s3] ss:$8 sps:$4 sm:$0xff]   ;;  %v179_v12 = vshrl.u32 %v178_v11, 7 }
   0x4   :  { %146 = vmatpush1.bf16.msra.mxu1 %v232_v4  ;;  %76 = vmatprep.subr.bf16.mxu0 %v233_v5  ;;  %v238_v8 = vld [vmem:[%s312_s2] ss:$8 sps:$4 sm:$0xff]  }
   0x5   :  { %147 = vmatprep.subr.bf16.mxu1 %v235_v6  ;;  %v239_v9 = vld [vmem:[%s313_s1] sm:$0xff]   ;;  %v180_v13 = vsub.s32 0, %v179_v12  ;;  %v184_v14 = vsub.s32 1, %v179_v12 }
   0x6   :  { %v240_v10 = vld [vmem:[%s314_s0] sm:$0xff]  }
   0x7   :  { %77 = vmatpush1.bf16.msra.mxu0 %v237_v7  ;;  %v176_v15 = vld [vmem:[%s315_s4] sm:$0x3] }
   0x8   :  { %148 = vmatpush1.bf16.msra.mxu1 %v238_v8  ;;  %v181_v19 = vrot.slane %v176_v15, %v180_v13  ;;  %v185_v20 = vrot.slane %v176_v15, %v184_v14 }
   0xa   :  { %215 = vmatmul.mubr.msk.bf16.vlgmr.msra.gmra.mxu0 %vm58_vm0, %v239_v9 }
   0xb   :  { %221 = vmatmul.mubr.msk.bf16.vlgmr.msra.gmra.mxu1 %vm58_vm0, %v240_v10 }
  0xca   :  { %v96_v16 = vpop.f32.mrf.mxu0 }
  0xcb   :  { %v167_v17 = vpop.f32.mrf.mxu1 }
  0xcc   :  { %v168_v18 = vadd.f32 %v167_v17, %v96_v16  ;;  %v98_v21 = vpop.f32.mrf.mxu0 }
  0xcd   :  { %v169_v22 = vpop.f32.mrf.mxu1 }
  0xce   :  { %v170_v23 = vadd.f32 %v169_v22, %v98_v21  ;;  %v100_v24 = vpop.f32.mrf.mxu0  ;;  %v188_v26 = vadd.f32 %v181_v19, %v168_v18 }
  0xcf   :  { %v171_v25 = vpop.f32.mrf.mxu1 }
  0xd0   :  { %v189_v27 = vadd.f32 %v185_v20, %v170_v23  ;;  %v172_v28 = vadd.f32 %v171_v25, %v100_v24  ;;  %v102_v29 = vpop.f32.mrf.mxu0 }
  0xd1   :  { %v173_v30 = vpop.f32.mrf.mxu1 }
  0xd2   :  { %v224_v31 = vpack.c.bf16 %v189_v27, %v188_v26  ;;  %v174_v32 = vadd.f32 %v173_v30, %v102_v29  ;;  %v190_v33 = vadd.f32 %v181_v19, %v172_v28 }
  0xd4   :  { %204 = vst [vmem:[%s316_s5] sm:$0xff] %v224_v31  ;;  %v191_v34 = vadd.f32 %v185_v20, %v174_v32 }
  0xd6   :  { %v225_v35 = vpack.c.bf16 %v191_v34, %v190_v33 }
  0xd8   :  { %205 = vst [vmem:[%s316_s5 + $0x8] sm:$0xff] %v225_v35 }

// kernel: lstm_word_attention_forward.13
= control target key start
LH: loop header
LB: loop body
LE: loop exit
PB: predicated region body
PF: predicated region fallthrough
CT: control target
= control target key end

     0   :  { %vm24_vm0 = vcmask 254976   ;;  %v184_v0 = vmov 0   ;;  %v185_v2 = vmov 0.0   ;;  %vm139_vm2 = vcmask 253952   ;;  %s306_s2 = inlined_call_operand.vmem [shape: s32[2,1], index: 2, kind: input, shape index: {}]   ;;  %s307_s0 = inlined_call_operand.vmem [shape: bf16[8,2,32], index: 0, kind: input, shape index: {}]   ;;  %s308_s1 = inlined_call_operand.vmem [shape: bf16[8,2,32], index: 1, kind: input, shape index: {}]   ;;  %s309_s3 = inlined_call_operand.vmem [shape: f32[2,32], index: 3, kind: input, shape index: {}]   ;;  %s310_s4 = inlined_call_operand.vmem [shape: f32[2,32], index: 4, kind: input, shape index: {}]   ;;  %s311_s5 = inlined_call_operand.vmem [shape: f32[2,2,32], index: 5, kind: output, shape index: {}]  }
   0x1   :  { %181 = vset.pattern.permute.xlu0 %v184_v0  ;;  %v99_v1 = vld [vmem:[%s306_s2] sm:$0x3]  ;;  %25 = vst.msk [vmem:[#allocation2] sm:$0x3] %vm24_vm0, %v185_v2  ;;  %26 = vst.msk [vmem:[#allocation3] sm:$0x3] %vm24_vm0, %v185_v2 }
   0x2   :  { %vm100_vm1 = vcmp.gt.s32.totalorder %v99_v1, 1  ;;  %v28_v3 = vld [vmem:[%s307_s0] sm:$0x1]  ;;  %v29_v5 = vld [vmem:[%s307_s0 + $0x1] sm:$0x1] }
   0x3   :  { %v101_v4 = vsel %vm100_vm1, %v99_v1, 1  ;;  %v30_v6 = vld [vmem:[%s307_s0 + $0x2] sm:$0x1]  ;;  %v36_v7 = vunpack.c.l.bf16 %v28_v3  ;;  %v31_v9 = vld [vmem:[%s307_s0 + $0x3] sm:$0x1]  ;;  %v37_v11 = vunpack.c.l.bf16 %v29_v5 }
   0x4   :  { %v102_v8 = vcvt.s32.f32 %v101_v4  ;;  %v32_v10 = vld [vmem:[%s307_s0 + $0x4] sm:$0x1]  ;;  %v38_v12 = vunpack.c.l.bf16 %v30_v6  ;;  %v33_v13 = vld [vmem:[%s307_s0 + $0x5] sm:$0x1]  ;;  %v34_v14 = vld [vmem:[%s307_s0 + $0x6] sm:$0x1]  ;;  %v39_v15 = vunpack.c.l.bf16 %v31_v9 }
   0x5   :  { %v63_v16 = vld [vmem:[%s308_s1] sm:$0x1]  ;;  %v40_v17 = vunpack.c.l.bf16 %v32_v10  ;;  %v45_v18 = vsel %vm24_vm0, %v36_v7, 0.0  ;;  %v46_v19 = vsel %vm24_vm0, %v37_v11, 0.0  ;;  %v64_v20 = vld [vmem:[%s308_s1 + $0x1] sm:$0x1]  ;;  %v41_v26 = vunpack.c.l.bf16 %v33_v13 }
   0x6   :  { %107 = vperm.xlu0 %181, %v102_v8   ;;  %v65_v21 = vld [vmem:[%s308_s1 + $0x2] sm:$0x1]  ;;  %v47_v22 = vadd.f32 %v46_v19, %v45_v18  ;;  %v48_v23 = vsel %vm24_vm0, %v38_v12, 0.0  ;;  %v66_v24 = vld [vmem:[%s308_s1 + $0x3] sm:$0x1]  ;;  %v50_v27 = vsel %vm24_vm0, %v39_v15, 0.0  ;;  %v71_v28 = vunpack.c.l.bf16 %v63_v16 }
   0x7   :  { %v35_v25 = vld [vmem:[%s307_s0 + $0x7] sm:$0x1]  ;;  %v72_v29 = vunpack.c.l.bf16 %v64_v20  ;;  %v42_v30 = vunpack.c.l.bf16 %v34_v14  ;;  %v67_v32 = vld [vmem:[%s308_s1 + $0x4] sm:$0x1]  ;;  %v68_v33 = vld [vmem:[%s308_s1 + $0x5] sm:$0x1]  ;;  %v73_v34 = vunpack.c.l.bf16 %v65_v21  ;;  %v74_v35 = vunpack.c.l.bf16 %v66_v24 }
   0x8   :  { %v49_v31 = vadd.f32 %v48_v23, %v47_v22  ;;  %v52_v36 = vsel %vm24_vm0, %v40_v17, 0.0  ;;  %v75_v37 = vunpack.c.l.bf16 %v67_v32  ;;  %v79_v38 = vsel %vm24_vm0, %v71_v28, 0.0  ;;  %v69_v42 = vld [vmem:[%s308_s1 + $0x6] sm:$0x1]  ;;  %v70_v49 = vld [vmem:[%s308_s1 + $0x7] sm:$0x1] }
   0x9   :  { %v80_v39 = vsel %vm24_vm0, %v72_v29, 0.0  ;;  %v43_v40 = vunpack.c.l.bf16 %v35_v25  ;;  %v54_v44 = vsel %vm24_vm0, %v41_v26, 0.0  ;;  %v76_v45 = vunpack.c.l.bf16 %v68_v33  ;;  %v27_v61 = vld [vmem:[#allocation2] sm:$0x3]  ;;  %v62_v4 = vld [vmem:[#allocation3] sm:$0x3] }
   0xa   :  { %v51_v41 = vadd.f32 %v50_v27, %v49_v31  ;;  %v81_v43 = vadd.f32 %v80_v39, %v79_v38  ;;  %v82_v46 = vsel %vm24_vm0, %v73_v34, 0.0  ;;  %v84_v47 = vsel %vm24_vm0, %v74_v35, 0.0  ;;  %v103_v16 = vld [vmem:[%s309_s3] sm:$0x3] }
   0xb   :  { %v56_v51 = vsel %vm24_vm0, %v42_v30, 0.0  ;;  %v77_v52 = vunpack.c.l.bf16 %v69_v42  ;;  %v86_v53 = vsel %vm24_vm0, %v75_v37, 0.0  ;;  %v58_v56 = vsel %vm24_vm0, %v43_v40, 0.0  ;;  %v142_v17 = vld [vmem:[%s310_s4] sm:$0x3] }
   0xc   :  { %v53_v48 = vadd.f32 %v52_v36, %v51_v41  ;;  %v83_v50 = vadd.f32 %v82_v46, %v81_v43  ;;  %v78_v57 = vunpack.c.l.bf16 %v70_v49  ;;  %v88_v58 = vsel %vm24_vm0, %v76_v45, 0.0 }
   0xd   :  { %v90_v62 = vsel %vm24_vm0, %v77_v52, 0.0  ;;  %v186_v8 = vmov 1966171168   ;;  %v118_v10 = vlaneseq }
   0xe   :  { %v55_v54 = vadd.f32 %v54_v44, %v53_v48  ;;  %v85_v55 = vadd.f32 %v84_v47, %v83_v50  ;;  %v92_v1 = vsel %vm24_vm0, %v78_v57, 0.0  ;;  %v116_v9 = vunpack.c.l.s4 %v186_v8 }
   0xf   :  { %v119_v14 = vshrl.u32 %v118_v10, 7 }
  0x10   :  { %v57_v59 = vadd.f32 %v56_v51, %v55_v54  ;;  %v87_v60 = vadd.f32 %v86_v53, %v85_v55  ;;  %v117_v13 = vunpack.c.0.s8 %v116_v9 }
  0x12   :  { %v59_v63 = vadd.f32 %v58_v56, %v57_v59  ;;  %v89_v0 = vadd.f32 %v88_v58, %v87_v60  ;;  %v120_v20 = vsub.s32 %v117_v13, %v119_v14 }
  0x14   :  { %v60_v2 = vadd.f32 %v59_v63, %v27_v61  ;;  %v91_v3 = vadd.f32 %v90_v62, %v89_v0 }
  0x16   :  { %61 = vst.msk [vmem:[#allocation2] sm:$0x3] %vm24_vm0, %v60_v2  ;;  %v93_v5 = vadd.f32 %v92_v1, %v91_v3 }
  0x18   :  { %v94_v6 = vadd.f32 %v93_v5, %v62_v4 }
  0x1a   :  { %95 = vst.msk [vmem:[#allocation3] sm:$0x3] %vm24_vm0, %v94_v6 }
  0x1d   :  { %v104_v11 = vld [vmem:[#allocation2] sm:$0x3] }
  0x21   :  { %v143_v12 = vld [vmem:[#allocation3] sm:$0x3] }
  0x81   :  { %v108_v7 = vpop.permute.xlu0 %107 }
  0x82   :  { %182 = vrcp.f32 %v108_v7 }
  0x8f   :  { %v183_v15 = vpop.eup %182 }
  0x90   :  { %v111_v18 = vmul.f32 %v183_v15, %v104_v11  ;;  %v144_v19 = vmul.f32 %v183_v15, %v143_v12 }
  0x92   :  { %v112_v21 = vadd.f32 %v111_v18, %v103_v16  ;;  %v145_v22 = vadd.f32 %v144_v19, %v142_v17 }
  0x94   :  { %v113_v23 = vmul.f32 0.5, %v112_v21  ;;  %v146_v24 = vmul.f32 0.5, %v145_v22 }
  0x96   :  { %v121_v25 = vrot.slane %v113_v23, %v120_v20  ;;  %v154_v26 = vrot.slane %v146_v24, %v120_v20 }
  0x98   :  { %v122_v27 = vcombine.high %v121_v25, %v121_v25  ;;  %v129_v28 = vrot.slane %v121_v25, %v120_v20  ;;  %v155_v29 = vcombine.high %v154_v26, %v154_v26  ;;  %v162_v30 = vrot.slane %v154_v26, %v120_v20 }
  0x9a   :  { %v136_v31 = vrot.slane %v122_v27, %v120_v20  ;;  %140 = vst.msk [vmem:[%s311_s5] sm:$0x1] %vm139_vm2, %v129_v28  ;;  %v169_v32 = vrot.slane %v155_v29, %v120_v20  ;;  %172 = vst.msk [vmem:[%s311_s5 + $0x1] sm:$0x1] %vm139_vm2, %v162_v30 }
  0x9c   :  { %141 = vst.msk [vmem:[%s311_s5 + $0x2] sm:$0x1] %vm139_vm2, %v136_v31  ;;  %173 = vst.msk [vmem:[%s311_s5 + $0x3] sm:$0x1] %vm139_vm2, %v169_v32 }

// kernel: lstm_word_attention_forward.12
= control target key start
LH: loop header
LB: loop body
LE: loop exit
PB: predicated region body
PF: predicated region fallthrough
CT: control target
= control target key end

     0   :  { %v18_v0 = vlaneseq  ;;  %v441_v2 = vmov 1966171168   ;;  %s607_s0 = inlined_call_operand.vmem [shape: bf16[8,2,32], index: 0, kind: input, shape index: {}]   ;;  %s608_s1 = inlined_call_operand.vmem [shape: bf16[8,2,32], index: 1, kind: input, shape index: {}]   ;;  %s609_s2 = inlined_call_operand.hbm [shape: f32[2,8,64], index: 2, kind: output, shape index: {}]  }
   0x1   :  { %v383_v1 = vld [vmem:[%s608_s1 + $0x2] sm:$0x1]  ;;  %v16_v3 = vunpack.c.l.s4 %v441_v2  ;;  %v385_v4 = vld [vmem:[%s608_s1 + $0x3] sm:$0x1]  ;;  %v28_v5 = vld [vmem:[%s608_s1] sm:$0x1] }
   0x2   :  { %v381_v6 = vld [vmem:[%s608_s1 + $0x1] sm:$0x1]  ;;  %v19_v7 = vshrl.u32 %v18_v0, 7  ;;  %v118_v8 = vunpack.c.l.bf16 %v383_v1  ;;  %v387_v9 = vld [vmem:[%s608_s1 + $0x4] sm:$0x1]  ;;  %v162_v12 = vunpack.c.l.bf16 %v385_v4  ;;  %v29_v13 = vunpack.c.l.bf16 %v28_v5 }
   0x3   :  { %v389_v10 = vld [vmem:[%s608_s1 + $0x5] sm:$0x1]  ;;  %v17_v11 = vunpack.c.0.s8 %v16_v3  ;;  %v74_v14 = vunpack.c.l.bf16 %v381_v6  ;;  %v206_v15 = vunpack.c.l.bf16 %v387_v9  ;;  %v391_v19 = vld [vmem:[%s608_s1 + $0x6] sm:$0x1] }
   0x4   :  { %v250_v16 = vunpack.c.l.bf16 %v389_v10  ;;  %v481_v18 = vsub.s32 0, %v19_v7 }
   0x5   :  { %v479_v17 = vsub.s32 %v17_v11, %v19_v7 }
   0x6   :  { %7 = vsyncpa [#allocation3], 0  ;;  %v382_v24 = vld [vmem:[%s607_s0 + $0x2] sm:$0x1]  ;;  %v294_v27 = vunpack.c.l.bf16 %v391_v19  ;;  %v384_v28 = vld [vmem:[%s607_s0 + $0x3] sm:$0x1] }
   0x7   :  { %v487_v20 = vrot.slane %v118_v8, %v479_v17  ;;  %v170_v21 = vrot.slane %v162_v12, %v479_v17  ;;  %v37_v22 = vrot.slane %v29_v13, %v479_v17  ;;  %v82_v23 = vrot.slane %v74_v14, %v479_v17  ;;  %v380_v29 = vld [vmem:[%s607_s0 + $0x1] sm:$0x1]  ;;  %v393_v34 = vld [vmem:[%s608_s1 + $0x7] sm:$0x1]  ;;  %v12_v35 = vld [vmem:[%s607_s0] sm:$0x1] }
   0x8   :  { %v214_v25 = vrot.slane %v206_v15, %v479_v17  ;;  %v497_v26 = vrot.slane %v250_v16, %v479_v17  ;;  %v102_v39 = vunpack.c.l.bf16 %v382_v24  ;;  %v386_v40 = vld [vmem:[%s607_s0 + $0x4] sm:$0x1]  ;;  %v146_v43 = vunpack.c.l.bf16 %v384_v28  ;;  %v388_v45 = vld [vmem:[%s607_s0 + $0x5] sm:$0x1]  ;;  %s442_s8 = smov 32  }
   0x9   :  { %v131_v30 = vrot.slane %v487_v20, %v481_v18  ;;  %v175_v31 = vrot.slane %v170_v21, %v481_v18  ;;  %v42_v32 = vrot.slane %v37_v22, %v481_v18  ;;  %v87_v33 = vrot.slane %v82_v23, %v481_v18  ;;  %v390_v55 = vld [vmem:[%s607_s0 + $0x6] sm:$0x1]  ;;  %v392_v0 = vld [vmem:[%s607_s0 + $0x7] sm:$0x1]  ;;  %s443_s0 = smov [#allocation2]  }
   0xa   :  { %v83_v36 = vcombine.high %v82_v23, %v82_v23  ;;  %v219_v37 = vrot.slane %v214_v25, %v481_v18  ;;  %v263_v38 = vrot.slane %v497_v26, %v481_v18  ;;  %v58_v44 = vunpack.c.l.bf16 %v380_v29  ;;  %s369_s13 = sshll.u32 %s443_s0, 4  ;;  %s370_s13 = int_to_ptr.vmem [resolvable:$true] %s369_s13 }
   0xb   :  { %v404_v41 = vpack.i.bf16 %v175_v31, %v131_v30  ;;  %v399_v42 = vpack.i.bf16 %v87_v33, %v42_v32  ;;  %v171_v46 = vcombine.high %v170_v21, %v170_v21  ;;  %v338_v47 = vunpack.c.l.bf16 %v393_v34  ;;  %s419_s14 = scalar_lea.vmem %s370_s13, 256  ;;  %p424_p1 = scmp.lt.s32.totalorder %s370_s13, %s370_s13 }
   0xc   :  { %v13_v48 = vunpack.c.l.bf16 %v12_v35  ;;  %v91_v49 = vrot.slane %v83_v36, %v481_v18  ;;  %v409_v50 = vpack.i.bf16 %v263_v38, %v219_v37  ;;  %v38_v51 = vcombine.high %v37_v22, %v37_v22  ;;  %p420_p0 = scmp.ne.s32.totalorder %s370_s13, %s419_s14  ;;  %p425_p2 = scmp.lt.s32.totalorder %s419_s14, %s419_s14 }
   0xd   :  { %405 = vrot.lane.b32.xlu1 %v404_v41, %s442_s8  ;;  %400 = vrot.lane.b32.xlu0 %v399_v42, %s442_s8  ;;  %v190_v52 = vunpack.c.l.bf16 %v386_v40  ;;  %v529_v53 = vrot.slane %v294_v27, %v479_v17  ;;  %vm25_vm0 = vcmask 253952   ;;  %v234_v54 = vunpack.c.l.bf16 %v388_v45 }
   0xe   :  { %v215_v56 = vcombine.high %v214_v25, %v214_v25  ;;  %v154_v57 = vrot.slane %v146_v43, %v479_v17  ;;  %v110_v58 = vrot.slane %v102_v39, %v479_v17  ;;  %v66_v59 = vrot.slane %v58_v44, %v479_v17  ;;  %p426_p3 = por %p425_p2, %p424_p1 }
   0xf   :  { %v179_v60 = vrot.slane %v171_v46, %v481_v18  ;;  %v127_v61 = vcombine.high %v487_v20, %v487_v20  ;;  %v346_v62 = vrot.slane %v338_v47, %v479_v17  ;;  %v21_v63 = vrot.slane %v13_v48, %v479_v17 }
  0x10   :  { %v46_v1 = vrot.slane %v38_v51, %v481_v18  ;;  %158 = vst.msk [vmem:[#allocation2 + $0x3] sm:$0x1] %vm25_vm0, %v154_v57  ;;  %114 = vst.msk [vmem:[#allocation2 + $0x2] sm:$0x1] %vm25_vm0, %v110_v58  ;;  %v67_v2 = vcombine.high %v66_v59, %v66_v59  ;;  %v198_v3 = vrot.slane %v190_v52, %v479_v17  ;;  %v278_v4 = vunpack.c.l.bf16 %v390_v55  ;;  %p427_p4 = pnand %p426_p3, %p420_p0 }
  0x11   :  { %94 = vrot.lane.b32.xlu1 %v91_v49, %s442_s8  ;;  %410 = vrot.lane.b32.xlu0 %v409_v50, %s442_s8  ;;  %70 = vst.msk [vmem:[#allocation2 + $0x1] sm:$0x1] %vm25_vm0, %v66_v59  ;;  %26 = vst.msk [vmem:[#allocation2] sm:$0x1] %vm25_vm0, %v21_v63  ;;  %v242_v5 = vrot.slane %v234_v54, %v479_v17  ;;  %v155_v6 = vcombine.high %v154_v57, %v154_v57  ;;  %v322_v12 = vunpack.c.l.bf16 %v392_v0  ;;  %vm53_vm1 = vcmask 516352  }
  0x12   :  { %v22_v7 = vcombine.high %v21_v63, %v21_v63  ;;  %v111_v8 = vcombine.high %v110_v58, %v110_v58  ;;  %v223_v9 = vrot.slane %v215_v56, %v481_v18  ;;  %71 = vst.msk [vmem:[#allocation2 + $0x9] sm:$0x1] %vm25_vm0, %v67_v2  ;;  %202 = vst.msk [vmem:[#allocation2 + $0x4] sm:$0x1] %vm25_vm0, %v198_v3 }
  0x13   :  { %v199_v10 = vcombine.high %v198_v3, %v198_v3  ;;  %v286_v11 = vrot.slane %v278_v4, %v479_v17  ;;  %v135_v13 = vrot.slane %v127_v61, %v481_v18  ;;  %v307_v14 = vrot.slane %v529_v53, %v481_v18  ;;  %246 = vst.msk [vmem:[#allocation2 + $0x5] sm:$0x1] %vm25_vm0, %v242_v5 }
  0x14   :  { %v351_v15 = vrot.slane %v346_v62, %v481_v18  ;;  %159 = vst.msk [vmem:[#allocation2 + $0xb] sm:$0x1] %vm25_vm0, %v155_v6  ;;  %27 = vst.msk [vmem:[#allocation2 + $0x8] sm:$0x1] %vm25_vm0, %v22_v7  ;;  %v243_v16 = vcombine.high %v242_v5, %v242_v5  ;;  %v259_v19 = vcombine.high %v497_v26, %v497_v26 }
  0x15   :  { %115 = vst.msk [vmem:[#allocation2 + $0xa] sm:$0x1] %vm25_vm0, %v111_v8  ;;  %182 = vrot.lane.b32.xlu1 %v179_v60, %s442_s8  ;;  %49 = vrot.lane.b32.xlu0 %v46_v1, %s442_s8  ;;  %203 = vst.msk [vmem:[#allocation2 + $0xc] sm:$0x1] %vm25_vm0, %v199_v10  ;;  %v330_v20 = vrot.slane %v322_v12, %v479_v17  ;;  %v287_v21 = vcombine.high %v286_v11, %v286_v11 }
  0x16   :  { %290 = vst.msk [vmem:[#allocation2 + $0x6] sm:$0x1] %vm25_vm0, %v286_v11  ;;  %247 = vst.msk [vmem:[#allocation2 + $0xd] sm:$0x1] %vm25_vm0, %v243_v16  ;;  %v347_v23 = vcombine.high %v346_v62, %v346_v62  ;;  %v414_v24 = vpack.i.bf16 %v351_v15, %v307_v14  ;;  %v267_v25 = vrot.slane %v259_v19, %v481_v18 }
  0x17   :  { %334 = vst.msk [vmem:[#allocation2 + $0x7] sm:$0x1] %vm25_vm0, %v330_v20  ;;  %v331_v22 = vcombine.high %v330_v20, %v330_v20  ;;  %291 = vst.msk [vmem:[#allocation2 + $0xe] sm:$0x1] %vm25_vm0, %v287_v21  ;;  %v303_v26 = vcombine.high %v529_v53, %v529_v53 }
  0x18   :  { %v355_v17 = vrot.slane %v347_v23, %v481_v18 }
  0x19   :  { %226 = vrot.lane.b32.xlu1 %v223_v9, %s442_s8  ;;  %138 = vrot.lane.b32.xlu0 %v135_v13, %s442_s8  ;;  %335 = vst.msk [vmem:[#allocation2 + $0xf] sm:$0x1] %vm25_vm0, %v331_v22  ;;  %v311_v27 = vrot.slane %v303_v26, %v481_v18 }
  0x1d   :  { %415 = vrot.lane.b32.xlu1 %v414_v24, %s442_s8  ;;  %270 = vrot.lane.b32.xlu0 %v267_v25, %s442_s8 }
  0x21   :  { %358 = vrot.lane.b32.xlu1 %v355_v17, %s442_s8  ;;  %314 = vrot.lane.b32.xlu0 %v311_v27, %s442_s8 }
  0x7f   :  { %v406_v28 = vpop.permute.xlu1 %405  ;;  %v401_v29 = vpop.permute.xlu0 %400 }
  0x80   :  { %v408_v30 = vunpack.i.h.bf16 %v406_v28  ;;  %v407_v31 = vunpack.i.l.bf16 %v406_v28  ;;  %v403_v32 = vunpack.i.h.bf16 %v401_v29  ;;  %v402_v33 = vunpack.i.l.bf16 %v401_v29 }
  0x82   :  { %186 = vst.msk [vmem:[#allocation2 + $0x3] sm:$0x1] %vm53_vm1, %v408_v30  ;;  %142 = vst.msk [vmem:[#allocation2 + $0x2] sm:$0x1] %vm53_vm1, %v407_v31 }
  0x83   :  { %98 = vst.msk [vmem:[#allocation2 + $0x1] sm:$0x1] %vm53_vm1, %v403_v32  ;;  %54 = vst.msk [vmem:[#allocation2] sm:$0x1] %vm53_vm1, %v402_v33  ;;  %v95_v18 = vpop.permute.xlu1 %94  ;;  %v411_v34 = vpop.permute.xlu0 %410 }
  0x84   :  { %99 = vst.msk [vmem:[#allocation2 + $0x9] sm:$0x1] %vm53_vm1, %v95_v18  ;;  %v413_v35 = vunpack.i.h.bf16 %v411_v34  ;;  %v412_v36 = vunpack.i.l.bf16 %v411_v34 }
  0x86   :  { %274 = vst.msk [vmem:[#allocation2 + $0x5] sm:$0x1] %vm53_vm1, %v413_v35  ;;  %230 = vst.msk [vmem:[#allocation2 + $0x4] sm:$0x1] %vm53_vm1, %v412_v36 }
  0x87   :  { %v183_v37 = vpop.permute.xlu1 %182  ;;  %v50_v38 = vpop.permute.xlu0 %49 }
  0x88   :  { %187 = vst.msk [vmem:[#allocation2 + $0xb] sm:$0x1] %vm53_vm1, %v183_v37  ;;  %55 = vst.msk [vmem:[#allocation2 + $0x8] sm:$0x1] %vm53_vm1, %v50_v38 }
  0x8b   :  { %v227_v39 = vpop.permute.xlu1 %226  ;;  %v139_v40 = vpop.permute.xlu0 %138 }
  0x8c   :  { %231 = vst.msk [vmem:[#allocation2 + $0xc] sm:$0x1] %vm53_vm1, %v227_v39  ;;  %143 = vst.msk [vmem:[#allocation2 + $0xa] sm:$0x1] %vm53_vm1, %v139_v40 }
  0x8f   :  { %v416_v41 = vpop.permute.xlu1 %415  ;;  %v271_v42 = vpop.permute.xlu0 %270 }
  0x90   :  { %v418_v43 = vunpack.i.h.bf16 %v416_v41  ;;  %v417_v44 = vunpack.i.l.bf16 %v416_v41  ;;  %275 = vst.msk [vmem:[#allocation2 + $0xd] sm:$0x1] %vm53_vm1, %v271_v42 }
  0x92   :  { %362 = vst.msk [vmem:[#allocation2 + $0x7] sm:$0x1] %vm53_vm1, %v418_v43  ;;  %318 = vst.msk [vmem:[#allocation2 + $0x6] sm:$0x1] %vm53_vm1, %v417_v44 }
  0x93   :  { %v359_v45 = vpop.permute.xlu1 %358  ;;  %v315_v46 = vpop.permute.xlu0 %314 }
  0x94   :  { %363 = vst.msk [vmem:[#allocation2 + $0xf] sm:$0x1] %vm53_vm1, %v359_v45  ;;  %319 = vst.msk [vmem:[#allocation2 + $0xe] sm:$0x1] %vm53_vm1, %v315_v46 }
  0x95   :  { %430 = shalt.err (!%p427_p4)
}
  0x96   :  { %s444_s15 = smov 128   ;;  %s445_s16 = smov 8  }
  0x97   :  { %375 = dma.vmem_to_hbm [thread:$0]  %s370_s13, 256, %s609_s2, [#allocation3], %s444_s15, %s444_s15, %s445_s16  }
  0x98   :  { %439 = dma.done.wait [#allocation3], 256  }
  0x99   :  { %440 = vsyncadd [#allocation3], 4294967040 }
  0x9a   :  { %379 = vsyncpa [#allocation3], 1 }

// kernel: lstm_word_attention_forward.9
= control target key start
LH: loop header
LB: loop body
LE: loop exit
PB: predicated region body
PF: predicated region fallthrough
CT: control target
= control target key end

     0   :  { %v2907_v1 = vmov 0.0   ;;  %v281_v3 = vlaneseq  ;;  %vm2908_vm0 = vmmov 0   ;;  %vm192_vm1 = vcmask 254976   ;;  %s2911_s21 = smov 64   ;;  %s2913_s10 = smov 96   ;;  %s3635_s0 = inlined_call_operand.vmem [shape: bf16[8,2,256], index: 0, kind: input, shape index: {}, may-alias: {0,1}]   ;;  %s3636_s1 = inlined_call_operand.vmem [shape: bf16[8,2,256], index: 1, kind: input, shape index: {}, may-alias: {0,1}]   ;;  %s3637_s2 = inlined_call_operand.vmem [shape: bf16[32,128], index: 2, kind: input, shape index: {}]   ;;  %s3638_s3 = inlined_call_operand.vmem [shape: bf16[32,128], index: 3, kind: input, shape index: {}]   ;;  %s3639_s4 = inlined_call_operand.vmem [shape: f32[2,32], index: 4, kind: input, shape index: {}]   ;;  %s3640_s5 = inlined_call_operand.vmem [shape: s32[2,1], index: 5, kind: input, shape index: {}]   ;;  %s3641_s6 = inlined_call_operand.vmem [shape: bf16[8,2,32], index: 6, kind: output, shape index: {0}]   ;;  %s3642_s7 = inlined_call_operand.vmem [shape: bf16[8,2,32], index: 7, kind: output, shape index: {1}]  }
   0x1   :  { %v2747_v0 = vld [vmem:[%s3637_s2 + $0x8] sm:$0xff]   ;;  %2610 = vmatprep.subr.bf16.mxu0 %v2907_v1  ;;  %2618 = vmatprep.subr.bf16.mxu1 %v2907_v1  ;;  %v2749_v4 = vld [vmem:[%s3637_s2] sm:$0xff]   ;;  %vm222_vm2 = vcmask 261120   ;;  %v2909_v11 = vmov 1983009808   ;;  %v2912_v53 = vmov 0  }
   0x2   :  { %v2748_v2 = vld [vmem:[%s3638_s3 + $0x8] sm:$0xff]   ;;  %2611 = vmatpush3.bf16.msra.mxu0 %v2747_v0  ;;  %2614 = vmatprep.mubr.msk.bf16.mxu0 %vm2908_vm0, %v2907_v1  ;;  %v2750_v5 = vld [vmem:[%s3638_s3] sm:$0xff]   ;;  %v282_v9 = vshrl.u32 %v281_v3, 7  ;;  %v279_v12 = vunpack.c.l.s4 %v2909_v11  ;;  %vm339_vm6 = vcmask 253952  }
   0x3   :  { %2619 = vmatpush3.bf16.msra.mxu1 %v2748_v2  ;;  %2612 = vmatprep.subr.bf16.mxu0 %v2907_v1  ;;  %v191_v6 = vld [vmem:[%s3639_s4] sm:$0x3]  ;;  %v2467_v24 = vld [vmem:[%s3636_s1 + $0xf] sm:$0x1] }
   0x4   :  { %2620 = vmatprep.subr.bf16.mxu1 %v2907_v1  ;;  %2622 = vmatprep.mubr.msk.bf16.mxu1 %vm2908_vm0, %v2907_v1  ;;  %v196_v7 = vld [vmem:[%s3639_s4] sm:$0x3]  ;;  %193 = vst.msk [vmem:[#allocation2] sm:$0x3] %vm192_vm1, %v191_v6  ;;  %v280_v14 = vunpack.c.0.s8 %v279_v12  ;;  %122 = vst [vmem:[#allocation7 + $0x7] sm:$0x1] %v2467_v24 }
   0x5   :  { %v194_v8 = vld [vmem:[%s3639_s4] sm:$0x3]  ;;  %197 = vst.msk [vmem:[#allocation4] sm:$0x3] %vm192_vm1, %v196_v7  ;;  %2746 = vset.pattern.permute.xlu1 %v2912_v53  ;;  %2745 = vset.pattern.permute.xlu0 %v2912_v53 }
   0x6   :  { %195 = vst.msk [vmem:[#allocation3] sm:$0x3] %vm192_vm1, %v194_v8  ;;  %v198_v10 = vld [vmem:[%s3639_s4] sm:$0x3]  ;;  %2613 = vmatpush3.bf16.msra.mxu0 %v2749_v4  ;;  %v2995_v15 = vsub.s32 %v280_v14, %v282_v9  ;;  %s2910_s4 = smov 32   ;;  %v2751_v4 = vld [vmem:[%s3637_s2 + $0x8] sm:$0xff]  }
   0x7   :  { %199 = vst.msk [vmem:[#allocation5] sm:$0x3] %vm192_vm1, %v198_v10  ;;  %v31_v13 = vld [vmem:[%s3635_s0] sm:$0x1]  ;;  %2621 = vmatpush3.bf16.msra.mxu1 %v2750_v5  ;;  %2626 = vmatprep.subr.bf16.mxu0 %v2907_v1  ;;  %v2752_v5 = vld [vmem:[%s3638_s3 + $0x8] sm:$0xff]  }
   0x8   :  { %32 = vst [vmem:[#allocation6] sm:$0x1] %v31_v13  ;;  %2634 = vmatprep.subr.bf16.mxu1 %v2907_v1  ;;  %v3033_v62 = vld [vmem:[%s3640_s5] sm:$0x3] }
   0x9   :  { %vm2471_vm3 = vcmp.gt.s32.totalorder %v3033_v62, 0  ;;  %vm2476_vm4 = vcmp.gt.s32.totalorder %v3033_v62, 7  ;;  %v2753_v6 = vld [vmem:[%s3637_s2] sm:$0xff]   ;;  %vm2482_vm8 = vcmp.gt.s32.totalorder %v3033_v62, 1  ;;  %vm2488_vm9 = vcmp.gt.s32.totalorder %v3033_v62, 6 }
   0xa   :  { %v3038_v0 = vsel %vm2471_vm3, 1, %v2912_v53  ;;  %v3044_v3 = vsel %vm2476_vm4, 1, %v2912_v53  ;;  %v2754_v9 = vld [vmem:[%s3638_s3] sm:$0xff]   ;;  %vm2494_vm12 = vcmp.gt.s32.totalorder %v3033_v62, 2  ;;  %vm2500_vm13 = vcmp.gt.s32.totalorder %v3033_v62, 5 }
   0xb   :  { %v2997_v16 = vld [vmem:[#allocation2] sm:$0x3]  ;;  %v345_v26 = vld [vmem:[#allocation7 + $0x7] sm:$0x1]  ;;  %vm2506_vm3 = vcmp.gt.s32.totalorder %v3033_v62, 3  ;;  %vm2512_vm4 = vcmp.gt.s32.totalorder %v3033_v62, 4 }
   0xc   :  { %v2999_v17 = vld [vmem:[#allocation4] sm:$0x3]  ;;  %v205_v19 = vpack.c.bf16 %v2997_v16, %v2997_v16  ;;  %v346_v28 = vunpack.c.l.bf16 %v345_v26  ;;  %v2764_v62 = vld [vmem:[%s3638_s3 + $0x8] sm:$0xff]  }
   0xd   :  { %v3001_v18 = vld [vmem:[#allocation3] sm:$0x3]  ;;  %v348_v20 = vpack.c.bf16 %v2999_v17, %v2999_v17 }
   0xe   :  { %v284_v21 = vrot.slane %v3001_v18, %v2995_v15  ;;  %v3009_v22 = vld [vmem:[#allocation5] sm:$0x3]  ;;  %2615 = vmatmul.mubr.msk.bf16.vlgmr.msra.gmra.mxu0 %vm222_vm2, %v205_v19  ;;  %v33_v19 = vld [vmem:[%s3635_s0 + $0x2] sm:$0x1] }
   0xf   :  { %2623 = vmatmul.mubr.msk.bf16.vlgmr.msra.gmra.mxu1 %vm222_vm2, %v348_v20  ;;  %v426_v23 = vrot.slane %v3009_v22, %v2995_v15  ;;  %2630 = vmatprep.mubr.msk.bf16.mxu0 %vm2908_vm0, %v2907_v1  ;;  %v202_v25 = vld [vmem:[#allocation6] sm:$0x1]  ;;  %34 = vst [vmem:[#allocation6 + $0x1] sm:$0x1] %v33_v19 }
  0x10   :  { %285 = vrot.lane.b32.xlu1 %v284_v21, %s2910_s4  ;;  %2638 = vmatprep.mubr.msk.bf16.mxu1 %vm2908_vm0, %v2907_v1  ;;  %v203_v27 = vunpack.c.l.bf16 %v202_v25 }
  0x11   :  { %2627 = vmatpush3.bf16.msra.mxu0 %v2751_v4  ;;  %2635 = vmatpush3.bf16.msra.mxu1 %v2752_v5 }
  0x12   :  { %2628 = vmatprep.subr.bf16.mxu0 %v2907_v1  ;;  %2636 = vmatprep.subr.bf16.mxu1 %v2907_v1 }
  0x14   :  { %427 = vrot.lane.b32.xlu1 %v426_v23, %s2910_s4 }
  0x15   :  { %2629 = vmatpush3.bf16.msra.mxu0 %v2753_v6  ;;  %2637 = vmatpush3.bf16.msra.mxu1 %v2754_v9 }
  0x16   :  { %2642 = vmatprep.subr.bf16.mxu0 %v2907_v1  ;;  %2650 = vmatprep.subr.bf16.mxu1 %v2907_v1 }
  0x82   :  { %v286_v54 = vpop.permute.xlu1 %285 }
  0x86   :  { %v428_v56 = vpop.permute.xlu1 %427 }
  0xce   :  { %v260_v29 = vpop.f32.mrf.mxu0 }
  0xcf   :  { %v402_v30 = vpop.f32.mrf.mxu1  ;;  %v266_v31 = vadd.f32 %v260_v29, %v203_v27 }
  0xd0   :  { %v408_v32 = vadd.f32 %v402_v30, %v346_v28  ;;  %v2616_v33 = vpop.f32.mrf.mxu0 }
  0xd1   :  { %v2624_v34 = vpop.f32.mrf.mxu1  ;;  %2779 = vtanh.f32 %v266_v31  ;;  %v2472_v41 = vmul.f32 -1.442695, %v266_v31 }
  0xd2   :  { %v263_v35 = vpop.f32.mrf.mxu0  ;;  %2781 = vtanh.f32 %v408_v32  ;;  %v2477_v42 = vmul.f32 -1.442695, %v408_v32 }
  0xd3   :  { %v405_v36 = vpop.f32.mrf.mxu1  ;;  %2783 = vpow2.f32 %v2472_v41 }
  0xd4   :  { %v2617_v37 = vpop.f32.mrf.mxu0  ;;  %2785 = vpow2.f32 %v2477_v42 }
  0xd5   :  { %v2625_v38 = vpop.f32.mrf.mxu1  ;;  %v484_v37 = vld [vmem:[#allocation6 + $0x1] sm:$0x1] }
  0xd6   :  { %v485_v38 = vunpack.c.l.bf16 %v484_v37 }
  0xde   :  { %v2780_v39 = vpop.eup %2779 }
  0xdf   :  { %290 = vrot.lane.b32.xlu0 %v2780_v39, %s2911_s21  ;;  %v2782_v40 = vpop.eup %2781 }
  0xe0   :  { %v2784_v43 = vpop.eup %2783 }
  0xe1   :  { %v273_v44 = vadd.f32 1.0, %v2784_v43  ;;  %v2786_v45 = vpop.eup %2785 }
  0xe2   :  { %v415_v46 = vadd.f32 1.0, %v2786_v45 }
  0xe3   :  { %432 = vrot.lane.b32.xlu0 %v2782_v40, %s2911_s21  ;;  %2787 = vrcp.f32 %v273_v44 }
  0xe4   :  { %2789 = vrcp.f32 %v415_v46 }
  0xf0   :  { %v2788_v47 = vpop.eup %2787 }
  0xf1   :  { %v2790_v50 = vpop.eup %2789  ;;  %v288_v55 = vmul.f32 %v2788_v47, %v286_v54 }
  0xf2   :  { %v430_v59 = vmul.f32 %v2790_v50, %v428_v56 }
 0x151   :  { %v291_v48 = vpop.permute.xlu0 %290 }
 0x152   :  { %v293_v49 = vmul.f32 %v2788_v47, %v291_v48 }
 0x154   :  { %295 = vrot.lane.b32.xlu0 %v293_v49, %s2910_s4 }
 0x155   :  { %v433_v51 = vpop.permute.xlu0 %432 }
 0x156   :  { %v435_v52 = vmul.f32 %v2790_v50, %v433_v51 }
 0x158   :  { %437 = vrot.lane.b32.xlu1 %v435_v52, %s2910_s4 }
 0x1c6   :  { %v296_v57 = vpop.permute.xlu0 %295 }
 0x1c7   :  { %v298_v58 = vadd.f32 %v296_v57, %v288_v55 }
 0x1c9   :  { %2791 = vtanh.f32 %v298_v58  ;;  %v329_v13 = vrot.slane %v298_v58, %v2995_v15 }
 0x1ca   :  { %v438_v60 = vpop.permute.xlu1 %437 }
 0x1cb   :  { %v440_v61 = vadd.f32 %v438_v60, %v430_v59 }
 0x1cd   :  { %2793 = vtanh.f32 %v440_v61  ;;  %v471_v20 = vrot.slane %v440_v61, %v2995_v15 }
 0x1d6   :  { %v2792_v63 = vpop.eup %2791 }
 0x1d7   :  { %301 = vrot.lane.b32.xlu0 %v2792_v63, %s2911_s21 }
 0x1da   :  { %v2794_v2 = vpop.eup %2793 }
 0x1db   :  { %443 = vrot.lane.b32.xlu1 %v2794_v2, %s2911_s21  ;;  %307 = vperm.xlu0 %2745, %v3038_v0  }
 0x1df   :  { %449 = vperm.xlu1 %2746, %v3044_v3  }
 0x249   :  { %v302_v7 = vpop.permute.xlu0 %301 }
 0x24a   :  { %v304_v8 = vmul.f32 %v2788_v47, %v302_v7 }
 0x24c   :  { %v317_v10 = vrot.slane %v304_v8, %v2995_v15 }
 0x24d   :  { %v444_v11 = vpop.permute.xlu1 %443 }
 0x24e   :  { %v446_v12 = vmul.f32 %v2790_v50, %v444_v11  ;;  %318 = vrot.lane.b32.xlu1 %v317_v10, %s2910_s4 }
 0x250   :  { %v459_v14 = vrot.slane %v446_v12, %v2995_v15 }
 0x252   :  { %460 = vrot.lane.b32.xlu0 %v459_v14, %s2910_s4  ;;  %330 = vrot.lane.b32.xlu1 %v329_v13, %s2913_s10 }
 0x256   :  { %472 = vrot.lane.b32.xlu0 %v471_v20, %s2913_s10  ;;  %v308_v23 = vpop.permute.xlu0 %307 }
 0x257   :  { %vm309_vm5 = vcmp.eq.s32.totalorder %v308_v23, 1 }
 0x25a   :  { %v450_v21 = vpop.permute.xlu1 %449 }
 0x25b   :  { %vm451_vm7 = vcmp.eq.s32.totalorder %v450_v21, 1 }
 0x2c0   :  { %v319_v24 = vpop.permute.xlu1 %318 }
 0x2c1   :  { %v321_v25 = vsel %vm309_vm5, %v319_v24, %v2997_v16  ;;  %v334_v26 = vsel %vm309_vm5, %v319_v24, 0.0  ;;  %v3124_v24 = vsel %vm2482_vm8, 1, %v2912_v53 }
 0x2c2   :  { %336 = vst.msk [vmem:[#allocation2] sm:$0x3] %vm192_vm1, %v321_v25  ;;  %v338_v27 = vpack.c.bf16 %v334_v26, %v334_v26  ;;  %v3130_v26 = vsel %vm2488_vm9, 1, %v2912_v53 }
 0x2c4   :  { %340 = vst.msk [vmem:[%s3641_s6] sm:$0x1] %vm339_vm6, %v338_v27  ;;  %v331_v28 = vpop.permute.xlu1 %330  ;;  %v461_v29 = vpop.permute.xlu0 %460  ;;  %v2755_v27 = vld [vmem:[%s3637_s2 + $0x8] sm:$0xff]  }
 0x2c5   :  { %v333_v30 = vsel %vm309_vm5, %v331_v28, %v3001_v18  ;;  %v463_v31 = vsel %vm451_vm7, %v461_v29, %v2999_v17  ;;  %v476_v32 = vsel %vm451_vm7, %v461_v29, 0.0  ;;  %v2756_v28 = vld [vmem:[%s3638_s3 + $0x8] sm:$0xff]   ;;  %v2757_v29 = vld [vmem:[%s3637_s2] sm:$0xff]  }
 0x2c6   :  { %337 = vst.msk [vmem:[#allocation3] sm:$0x3] %vm192_vm1, %v333_v30  ;;  %477 = vst.msk [vmem:[#allocation4] sm:$0x3] %vm192_vm1, %v463_v31  ;;  %v479_v16 = vpack.c.bf16 %v476_v32, %v476_v32  ;;  %v2758_v32 = vld [vmem:[%s3638_s3] sm:$0xff]  }
 0x2c8   :  { %2478 = vst.msk [vmem:[%s3642_s7 + $0x7] sm:$0x1] %vm339_vm6, %v479_v16  ;;  %v473_v33 = vpop.permute.xlu0 %472 }
 0x2c9   :  { %v475_v34 = vsel %vm451_vm7, %v473_v33, %v3009_v22  ;;  %v3089_v35 = vld [vmem:[#allocation2] sm:$0x3]  ;;  %v2466_v22 = vld [vmem:[%s3636_s1 + $0xd] sm:$0x1] }
 0x2ca   :  { %478 = vst.msk [vmem:[#allocation5] sm:$0x3] %vm192_vm1, %v475_v34  ;;  %v487_v17 = vpack.c.bf16 %v3089_v35, %v3089_v35  ;;  %120 = vst [vmem:[#allocation7 + $0x6] sm:$0x1] %v2466_v22  ;;  %v35_v22 = vld [vmem:[%s3635_s0 + $0x4] sm:$0x1] }
 0x2cb   :  { %36 = vst [vmem:[#allocation6 + $0x2] sm:$0x1] %v35_v22 }
 0x2cc   :  { %2631 = vmatmul.mubr.msk.bf16.vlgmr.msra.gmra.mxu0 %vm222_vm2, %v487_v17 }
 0x2cd   :  { %v3095_v18 = vld [vmem:[#allocation4] sm:$0x3]  ;;  %2646 = vmatprep.mubr.msk.bf16.mxu0 %vm2908_vm0, %v2907_v1  ;;  %v3107_v52 = vld [vmem:[#allocation3] sm:$0x3]  ;;  %2643 = vmatpush3.bf16.msra.mxu0 %v2755_v27 }
 0x2ce   :  { %v626_v36 = vpack.c.bf16 %v3095_v18, %v3095_v18  ;;  %v565_v54 = vrot.slane %v3107_v52, %v2995_v15  ;;  %2644 = vmatprep.subr.bf16.mxu0 %v2907_v1 }
 0x2d0   :  { %2639 = vmatmul.mubr.msk.bf16.vlgmr.msra.gmra.mxu1 %vm222_vm2, %v626_v36 }
 0x2d1   :  { %2654 = vmatprep.mubr.msk.bf16.mxu1 %vm2908_vm0, %v2907_v1  ;;  %v623_v39 = vld [vmem:[#allocation7 + $0x6] sm:$0x1]  ;;  %v3112_v56 = vld [vmem:[#allocation5] sm:$0x3]  ;;  %2651 = vmatpush3.bf16.msra.mxu1 %v2756_v28 }
 0x2d2   :  { %v624_v42 = vunpack.c.l.bf16 %v623_v39  ;;  %v704_v57 = vrot.slane %v3112_v56, %v2995_v15  ;;  %2645 = vmatpush3.bf16.msra.mxu0 %v2757_v29  ;;  %2652 = vmatprep.subr.bf16.mxu1 %v2907_v1 }
 0x2d3   :  { %2658 = vmatprep.subr.bf16.mxu0 %v2907_v1 }
 0x2d5   :  { %2653 = vmatpush3.bf16.msra.mxu1 %v2758_v32 }
 0x2d6   :  { %2666 = vmatprep.subr.bf16.mxu1 %v2907_v1 }
 0x38c   :  { %v541_v40 = vpop.f32.mrf.mxu0 }
 0x38d   :  { %v547_v41 = vadd.f32 %v541_v40, %v485_v38 }
 0x38e   :  { %v2632_v43 = vpop.f32.mrf.mxu0 }
 0x38f   :  { %2795 = vtanh.f32 %v547_v41  ;;  %v2483_v58 = vmul.f32 -1.442695, %v547_v41 }
 0x390   :  { %v544_v44 = vpop.f32.mrf.mxu0  ;;  %v680_v45 = vpop.f32.mrf.mxu1 }
 0x391   :  { %v686_v46 = vadd.f32 %v680_v45, %v624_v42 }
 0x392   :  { %v2633_v47 = vpop.f32.mrf.mxu0  ;;  %v2640_v48 = vpop.f32.mrf.mxu1 }
 0x393   :  { %2797 = vtanh.f32 %v686_v46  ;;  %v2489_v59 = vmul.f32 -1.442695, %v686_v46 }
 0x394   :  { %v683_v49 = vpop.f32.mrf.mxu1  ;;  %2799 = vpow2.f32 %v2483_v58 }
 0x395   :  { %2801 = vpow2.f32 %v2489_v59 }
 0x396   :  { %v2641_v50 = vpop.f32.mrf.mxu1 }
 0x39c   :  { %v2796_v51 = vpop.eup %2795 }
 0x39d   :  { %571 = vrot.lane.b32.xlu1 %v2796_v51, %s2911_s21 }
 0x3a0   :  { %v2798_v55 = vpop.eup %2797 }
 0x3a1   :  { %566 = vrot.lane.b32.xlu1 %v565_v54, %s2910_s4  ;;  %710 = vrot.lane.b32.xlu0 %v2798_v55, %s2911_s21  ;;  %v2800_v60 = vpop.eup %2799  ;;  %v2465_v55 = vld [vmem:[%s3636_s1 + $0xb] sm:$0x1] }
 0x3a2   :  { %v554_v61 = vadd.f32 1.0, %v2800_v60  ;;  %v2802_v63 = vpop.eup %2801  ;;  %118 = vst [vmem:[#allocation7 + $0x5] sm:$0x1] %v2465_v55 }
 0x3a3   :  { %v693_v2 = vadd.f32 1.0, %v2802_v63 }
 0x3a4   :  { %2803 = vrcp.f32 %v554_v61 }
 0x3a5   :  { %705 = vrot.lane.b32.xlu0 %v704_v57, %s2910_s4  ;;  %2805 = vrcp.f32 %v693_v2 }
 0x3a9   :  { %v901_v58 = vld [vmem:[#allocation7 + $0x5] sm:$0x1] }
 0x3aa   :  { %v902_v61 = vunpack.c.l.bf16 %v901_v58 }
 0x3b1   :  { %v2804_v4 = vpop.eup %2803 }
 0x3b2   :  { %v2806_v7 = vpop.eup %2805 }
 0x40f   :  { %v572_v5 = vpop.permute.xlu1 %571 }
 0x410   :  { %v574_v6 = vmul.f32 %v2804_v4, %v572_v5 }
 0x412   :  { %576 = vrot.lane.b32.xlu1 %v574_v6, %s2910_s4 }
 0x413   :  { %v711_v8 = vpop.permute.xlu0 %710  ;;  %v567_v10 = vpop.permute.xlu1 %566 }
 0x414   :  { %v713_v9 = vmul.f32 %v2806_v7, %v711_v8  ;;  %v569_v11 = vmul.f32 %v2804_v4, %v567_v10 }
 0x416   :  { %715 = vrot.lane.b32.xlu0 %v713_v9, %s2910_s4 }
 0x417   :  { %v706_v12 = vpop.permute.xlu0 %705 }
 0x418   :  { %v708_v19 = vmul.f32 %v2806_v7, %v706_v12 }
 0x484   :  { %v577_v13 = vpop.permute.xlu1 %576 }
 0x485   :  { %v579_v14 = vadd.f32 %v577_v13, %v569_v11 }
 0x487   :  { %2807 = vtanh.f32 %v579_v14  ;;  %v610_v17 = vrot.slane %v579_v14, %v2995_v15 }
 0x488   :  { %v716_v20 = vpop.permute.xlu0 %715 }
 0x489   :  { %v718_v21 = vadd.f32 %v716_v20, %v708_v19 }
 0x48b   :  { %2809 = vtanh.f32 %v718_v21  ;;  %v749_v37 = vrot.slane %v718_v21, %v2995_v15 }
 0x494   :  { %v2808_v23 = vpop.eup %2807 }
 0x495   :  { %582 = vrot.lane.b32.xlu1 %v2808_v23, %s2911_s21 }
 0x498   :  { %v2810_v25 = vpop.eup %2809 }
 0x499   :  { %588 = vperm.xlu1 %2746, %v3124_v24   ;;  %721 = vrot.lane.b32.xlu0 %v2810_v25, %s2911_s21 }
 0x49d   :  { %727 = vperm.xlu0 %2745, %v3130_v26  }
 0x507   :  { %v583_v30 = vpop.permute.xlu1 %582 }
 0x508   :  { %v585_v31 = vmul.f32 %v2804_v4, %v583_v30 }
 0x50a   :  { %v598_v16 = vrot.slane %v585_v31, %v2995_v15 }
 0x50b   :  { %v722_v33 = vpop.permute.xlu0 %721 }
 0x50c   :  { %v724_v34 = vmul.f32 %v2806_v7, %v722_v33  ;;  %599 = vrot.lane.b32.xlu1 %v598_v16, %s2910_s4 }
 0x50e   :  { %v737_v36 = vrot.slane %v724_v34, %v2995_v15 }
 0x510   :  { %611 = vrot.lane.b32.xlu1 %v610_v17, %s2913_s10  ;;  %738 = vrot.lane.b32.xlu0 %v737_v36, %s2910_s4 }
 0x514   :  { %750 = vrot.lane.b32.xlu0 %v749_v37, %s2913_s10  ;;  %v589_v38 = vpop.permute.xlu1 %588 }
 0x515   :  { %vm590_vm10 = vcmp.eq.s32.totalorder %v589_v38, 1 }
 0x518   :  { %v728_v39 = vpop.permute.xlu0 %727 }
 0x519   :  { %vm729_vm11 = vcmp.eq.s32.totalorder %v728_v39, 1 }
 0x57e   :  { %v600_v40 = vpop.permute.xlu1 %599 }
 0x57f   :  { %v602_v41 = vsel %vm590_vm10, %v600_v40, %v3089_v35  ;;  %v615_v42 = vsel %vm590_vm10, %v600_v40, 0.0 }
 0x580   :  { %616 = vst.msk [vmem:[#allocation2] sm:$0x3] %vm192_vm1, %v602_v41  ;;  %v618_v43 = vpack.c.bf16 %v615_v42, %v615_v42  ;;  %v3210_v42 = vsel %vm2494_vm12, 1, %v2912_v53 }
 0x582   :  { %2484 = vst.msk [vmem:[%s3641_s6 + $0x1] sm:$0x1] %vm339_vm6, %v618_v43  ;;  %v612_v44 = vpop.permute.xlu1 %611  ;;  %v739_v45 = vpop.permute.xlu0 %738 }
 0x583   :  { %v614_v46 = vsel %vm590_vm10, %v612_v44, %v3107_v52  ;;  %v741_v47 = vsel %vm729_vm11, %v739_v45, %v3095_v18  ;;  %v754_v48 = vsel %vm729_vm11, %v739_v45, 0.0  ;;  %v3216_v44 = vsel %vm2500_vm13, 1, %v2912_v53  ;;  %v2759_v45 = vld [vmem:[%s3637_s2 + $0x8] sm:$0xff]  }
 0x584   :  { %617 = vst.msk [vmem:[#allocation3] sm:$0x3] %vm192_vm1, %v614_v46  ;;  %755 = vst.msk [vmem:[#allocation4] sm:$0x3] %vm192_vm1, %v741_v47  ;;  %v757_v35 = vpack.c.bf16 %v754_v48, %v754_v48  ;;  %v2760_v46 = vld [vmem:[%s3638_s3 + $0x8] sm:$0xff]   ;;  %v2761_v47 = vld [vmem:[%s3637_s2] sm:$0xff]  }
 0x586   :  { %2490 = vst.msk [vmem:[%s3642_s7 + $0x6] sm:$0x1] %vm339_vm6, %v757_v35  ;;  %v751_v49 = vpop.permute.xlu0 %750 }
 0x587   :  { %v753_v50 = vsel %vm729_vm11, %v751_v49, %v3112_v56  ;;  %v3175_v51 = vld [vmem:[#allocation2] sm:$0x3]  ;;  %v762_v56 = vld [vmem:[#allocation6 + $0x2] sm:$0x1] }
 0x588   :  { %756 = vst.msk [vmem:[#allocation5] sm:$0x3] %vm192_vm1, %v753_v50  ;;  %v765_v18 = vpack.c.bf16 %v3175_v51, %v3175_v51  ;;  %v763_v57 = vunpack.c.l.bf16 %v762_v56  ;;  %v2762_v49 = vld [vmem:[%s3638_s3] sm:$0xff]  }
 0x58a   :  { %2647 = vmatmul.mubr.msk.bf16.vlgmr.msra.gmra.mxu0 %vm222_vm2, %v765_v18 }
 0x58b   :  { %v3181_v52 = vld [vmem:[#allocation4] sm:$0x3]  ;;  %2662 = vmatprep.mubr.msk.bf16.mxu0 %vm2908_vm0, %v2907_v1  ;;  %v3193_v11 = vld [vmem:[#allocation3] sm:$0x3]  ;;  %2659 = vmatpush3.bf16.msra.mxu0 %v2759_v45 }
 0x58c   :  { %v904_v54 = vpack.c.bf16 %v3181_v52, %v3181_v52  ;;  %v843_v12 = vrot.slane %v3193_v11, %v2995_v15  ;;  %2660 = vmatprep.subr.bf16.mxu0 %v2907_v1 }
 0x58e   :  { %2655 = vmatmul.mubr.msk.bf16.vlgmr.msra.gmra.mxu1 %vm222_vm2, %v904_v54 }
 0x58f   :  { %2670 = vmatprep.mubr.msk.bf16.mxu1 %vm2908_vm0, %v2907_v1  ;;  %v3198_v14 = vld [vmem:[#allocation5] sm:$0x3]  ;;  %2667 = vmatpush3.bf16.msra.mxu1 %v2760_v46 }
 0x590   :  { %v982_v19 = vrot.slane %v3198_v14, %v2995_v15  ;;  %2661 = vmatpush3.bf16.msra.mxu0 %v2761_v47  ;;  %2668 = vmatprep.subr.bf16.mxu1 %v2907_v1 }
 0x591   :  { %2674 = vmatprep.subr.bf16.mxu0 %v2907_v1 }
 0x593   :  { %2669 = vmatpush3.bf16.msra.mxu1 %v2762_v49 }
 0x594   :  { %2682 = vmatprep.subr.bf16.mxu1 %v2907_v1 }
 0x64a   :  { %v819_v59 = vpop.f32.mrf.mxu0 }
 0x64b   :  { %v825_v60 = vadd.f32 %v819_v59, %v763_v57  ;;  %v37_v57 = vld [vmem:[%s3635_s0 + $0x6] sm:$0x1] }
 0x64c   :  { %v2648_v63 = vpop.f32.mrf.mxu0  ;;  %38 = vst [vmem:[#allocation6 + $0x3] sm:$0x1] %v37_v57 }
 0x64d   :  { %2811 = vtanh.f32 %v825_v60  ;;  %v2495_v20 = vmul.f32 -1.442695, %v825_v60 }
 0x64e   :  { %v822_v2 = vpop.f32.mrf.mxu0  ;;  %v958_v4 = vpop.f32.mrf.mxu1 }
 0x64f   :  { %v964_v5 = vadd.f32 %v958_v4, %v902_v61 }
 0x650   :  { %v2649_v6 = vpop.f32.mrf.mxu0  ;;  %v2656_v7 = vpop.f32.mrf.mxu1 }
 0x651   :  { %2813 = vtanh.f32 %v964_v5  ;;  %v2501_v21 = vmul.f32 -1.442695, %v964_v5 }
 0x652   :  { %v961_v8 = vpop.f32.mrf.mxu1  ;;  %2815 = vpow2.f32 %v2495_v20 }
 0x653   :  { %2817 = vpow2.f32 %v2501_v21  ;;  %v1040_v20 = vld [vmem:[#allocation6 + $0x3] sm:$0x1] }
 0x654   :  { %v2657_v9 = vpop.f32.mrf.mxu1  ;;  %v1041_v21 = vunpack.c.l.bf16 %v1040_v20 }
 0x65a   :  { %v2812_v10 = vpop.eup %2811 }
 0x65b   :  { %849 = vrot.lane.b32.xlu1 %v2812_v10, %s2911_s21 }
 0x65e   :  { %v2814_v13 = vpop.eup %2813 }
 0x65f   :  { %844 = vrot.lane.b32.xlu1 %v843_v12, %s2910_s4  ;;  %988 = vrot.lane.b32.xlu0 %v2814_v13, %s2911_s21  ;;  %v2816_v23 = vpop.eup %2815 }
 0x660   :  { %v832_v25 = vadd.f32 1.0, %v2816_v23  ;;  %v2818_v27 = vpop.eup %2817 }
 0x661   :  { %v971_v28 = vadd.f32 1.0, %v2818_v27 }
 0x662   :  { %2819 = vrcp.f32 %v832_v25 }
 0x663   :  { %983 = vrot.lane.b32.xlu0 %v982_v19, %s2910_s4  ;;  %2821 = vrcp.f32 %v971_v28 }
 0x66f   :  { %v2820_v29 = vpop.eup %2819 }
 0x670   :  { %v2822_v32 = vpop.eup %2821 }
 0x6cd   :  { %v850_v30 = vpop.permute.xlu1 %849 }
 0x6ce   :  { %v852_v31 = vmul.f32 %v2820_v29, %v850_v30 }
 0x6d0   :  { %854 = vrot.lane.b32.xlu1 %v852_v31, %s2910_s4 }
 0x6d1   :  { %v989_v16 = vpop.permute.xlu0 %988  ;;  %v845_v34 = vpop.permute.xlu1 %844 }
 0x6d2   :  { %v991_v33 = vmul.f32 %v2822_v32, %v989_v16  ;;  %v847_v17 = vmul.f32 %v2820_v29, %v845_v34 }
 0x6d4   :  { %993 = vrot.lane.b32.xlu0 %v991_v33, %s2910_s4 }
 0x6d5   :  { %v984_v36 = vpop.permute.xlu0 %983 }
 0x6d6   :  { %v986_v38 = vmul.f32 %v2822_v32, %v984_v36 }
 0x742   :  { %v855_v22 = vpop.permute.xlu1 %854 }
 0x743   :  { %v857_v37 = vadd.f32 %v855_v22, %v847_v17 }
 0x745   :  { %2823 = vtanh.f32 %v857_v37  ;;  %v888_v55 = vrot.slane %v857_v37, %v2995_v15 }
 0x746   :  { %v994_v39 = vpop.permute.xlu0 %993 }
 0x747   :  { %v996_v40 = vadd.f32 %v994_v39, %v986_v38 }
 0x749   :  { %2825 = vtanh.f32 %v996_v40  ;;  %v1027_v58 = vrot.slane %v996_v40, %v2995_v15 }
 0x752   :  { %v2824_v41 = vpop.eup %2823 }
 0x753   :  { %860 = vrot.lane.b32.xlu1 %v2824_v41, %s2911_s21 }
 0x756   :  { %v2826_v43 = vpop.eup %2825 }
 0x757   :  { %866 = vperm.xlu1 %2746, %v3210_v42   ;;  %999 = vrot.lane.b32.xlu0 %v2826_v43, %s2911_s21 }
 0x75b   :  { %1005 = vperm.xlu0 %2745, %v3216_v44  }
 0x7c5   :  { %v861_v48 = vpop.permute.xlu1 %860 }
 0x7c6   :  { %v863_v35 = vmul.f32 %v2820_v29, %v861_v48 }
 0x7c8   :  { %v876_v50 = vrot.slane %v863_v35, %v2995_v15 }
 0x7c9   :  { %v1000_v18 = vpop.permute.xlu0 %999 }
 0x7ca   :  { %v1002_v54 = vmul.f32 %v2822_v32, %v1000_v18  ;;  %877 = vrot.lane.b32.xlu1 %v876_v50, %s2910_s4 }
 0x7cc   :  { %v1015_v56 = vrot.slane %v1002_v54, %v2995_v15 }
 0x7ce   :  { %889 = vrot.lane.b32.xlu1 %v888_v55, %s2913_s10  ;;  %1016 = vrot.lane.b32.xlu0 %v1015_v56, %s2910_s4 }
 0x7d2   :  { %1028 = vrot.lane.b32.xlu0 %v1027_v58, %s2913_s10  ;;  %v867_v59 = vpop.permute.xlu1 %866 }
 0x7d3   :  { %vm868_vm14 = vcmp.eq.s32.totalorder %v867_v59, 1 }
 0x7d6   :  { %v1006_v60 = vpop.permute.xlu0 %1005 }
 0x7d7   :  { %vm1007_vm15 = vcmp.eq.s32.totalorder %v1006_v60, 1 }
 0x83c   :  { %v878_v61 = vpop.permute.xlu1 %877 }
 0x83d   :  { %v880_v63 = vsel %vm868_vm14, %v878_v61, %v3175_v51  ;;  %v893_v2 = vsel %vm868_vm14, %v878_v61, 0.0 }
 0x83e   :  { %894 = vst.msk [vmem:[#allocation2] sm:$0x3] %vm192_vm1, %v880_v63  ;;  %v896_v4 = vpack.c.bf16 %v893_v2, %v893_v2 }
 0x840   :  { %2496 = vst.msk [vmem:[%s3641_s6 + $0x2] sm:$0x1] %vm339_vm6, %v896_v4  ;;  %v890_v5 = vpop.permute.xlu1 %889  ;;  %v1017_v6 = vpop.permute.xlu0 %1016 }
 0x841   :  { %v892_v7 = vsel %vm868_vm14, %v890_v5, %v3193_v11  ;;  %v1019_v8 = vsel %vm1007_vm15, %v1017_v6, %v3181_v52  ;;  %v1032_v9 = vsel %vm1007_vm15, %v1017_v6, 0.0  ;;  %v3296_v5 = vsel %vm2506_vm3, 1, %v2912_v53 }
 0x842   :  { %895 = vst.msk [vmem:[#allocation3] sm:$0x3] %vm192_vm1, %v892_v7  ;;  %1033 = vst.msk [vmem:[#allocation4] sm:$0x3] %vm192_vm1, %v1019_v8  ;;  %v1035_v51 = vpack.c.bf16 %v1032_v9, %v1032_v9  ;;  %v3302_v7 = vsel %vm2512_vm4, 1, %v2912_v53  ;;  %v2763_v8 = vld [vmem:[%s3637_s2 + $0x8] sm:$0xff]  }
 0x843   :  { %v2765_v9 = vld [vmem:[%s3637_s2] sm:$0xff]  }
 0x844   :  { %2502 = vst.msk [vmem:[%s3642_s7 + $0x5] sm:$0x1] %vm339_vm6, %v1035_v51  ;;  %v1029_v10 = vpop.permute.xlu0 %1028 }
 0x845   :  { %v1031_v12 = vsel %vm1007_vm15, %v1029_v10, %v3198_v14  ;;  %v3261_v13 = vld [vmem:[#allocation2] sm:$0x3]  ;;  %v2464_v14 = vld [vmem:[%s3636_s1 + $0x9] sm:$0x1] }
 0x846   :  { %1034 = vst.msk [vmem:[#allocation5] sm:$0x3] %vm192_vm1, %v1031_v12  ;;  %v1043_v52 = vpack.c.bf16 %v3261_v13, %v3261_v13  ;;  %116 = vst [vmem:[#allocation7 + $0x4] sm:$0x1] %v2464_v14  ;;  %v2766_v10 = vld [vmem:[%s3638_s3] sm:$0xff]  }
 0x848   :  { %2663 = vmatmul.mubr.msk.bf16.vlgmr.msra.gmra.mxu0 %vm222_vm2, %v1043_v52 }
 0x849   :  { %v3267_v11 = vld [vmem:[#allocation4] sm:$0x3]  ;;  %2678 = vmatprep.mubr.msk.bf16.mxu0 %vm2908_vm0, %v2907_v1  ;;  %v3279_v22 = vld [vmem:[#allocation3] sm:$0x3]  ;;  %2675 = vmatpush3.bf16.msra.mxu0 %v2763_v8 }
 0x84a   :  { %v1182_v19 = vpack.c.bf16 %v3267_v11, %v3267_v11  ;;  %v1121_v37 = vrot.slane %v3279_v22, %v2995_v15  ;;  %2676 = vmatprep.subr.bf16.mxu0 %v2907_v1 }
 0x84c   :  { %2671 = vmatmul.mubr.msk.bf16.vlgmr.msra.gmra.mxu1 %vm222_vm2, %v1182_v19 }
 0x84d   :  { %2686 = vmatprep.mubr.msk.bf16.mxu1 %vm2908_vm0, %v2907_v1  ;;  %v1179_v23 = vld [vmem:[#allocation7 + $0x4] sm:$0x1]  ;;  %v3284_v39 = vld [vmem:[#allocation5] sm:$0x3]  ;;  %2683 = vmatpush3.bf16.msra.mxu1 %v2764_v62 }
 0x84e   :  { %v1180_v28 = vunpack.c.l.bf16 %v1179_v23  ;;  %v1260_v40 = vrot.slane %v3284_v39, %v2995_v15  ;;  %2677 = vmatpush3.bf16.msra.mxu0 %v2765_v9  ;;  %2684 = vmatprep.subr.bf16.mxu1 %v2907_v1 }
 0x84f   :  { %2690 = vmatprep.subr.bf16.mxu0 %v2907_v1 }
 0x851   :  { %2685 = vmatpush3.bf16.msra.mxu1 %v2766_v10 }
 0x852   :  { %2698 = vmatprep.subr.bf16.mxu1 %v2907_v1 }
 0x908   :  { %v1097_v25 = vpop.f32.mrf.mxu0 }
 0x909   :  { %v1103_v27 = vadd.f32 %v1097_v25, %v1041_v21  ;;  %v39_v21 = vld [vmem:[%s3635_s0 + $0x8] sm:$0x1] }
 0x90a   :  { %v2664_v29 = vpop.f32.mrf.mxu0  ;;  %40 = vst [vmem:[#allocation6 + $0x4] sm:$0x1] %v39_v21 }
 0x90b   :  { %2827 = vtanh.f32 %v1103_v27  ;;  %v2507_v41 = vmul.f32 -1.442695, %v1103_v27 }
 0x90c   :  { %v1100_v30 = vpop.f32.mrf.mxu0  ;;  %v1236_v31 = vpop.f32.mrf.mxu1 }
 0x90d   :  { %v1242_v32 = vadd.f32 %v1236_v31, %v1180_v28 }
 0x90e   :  { %v2665_v16 = vpop.f32.mrf.mxu0  ;;  %v2672_v33 = vpop.f32.mrf.mxu1 }
 0x90f   :  { %2829 = vtanh.f32 %v1242_v32  ;;  %v2513_v43 = vmul.f32 -1.442695, %v1242_v32 }
 0x910   :  { %v1239_v34 = vpop.f32.mrf.mxu1  ;;  %2831 = vpow2.f32 %v2507_v41 }
 0x911   :  { %2833 = vpow2.f32 %v2513_v43  ;;  %v1318_v41 = vld [vmem:[#allocation6 + $0x4] sm:$0x1] }
 0x912   :  { %v2673_v17 = vpop.f32.mrf.mxu1  ;;  %v1319_v43 = vunpack.c.l.bf16 %v1318_v41 }
 0x918   :  { %v2828_v36 = vpop.eup %2827 }
 0x919   :  { %1127 = vrot.lane.b32.xlu1 %v2828_v36, %s2911_s21 }
 0x91c   :  { %v2830_v38 = vpop.eup %2829 }
 0x91d   :  { %1122 = vrot.lane.b32.xlu1 %v1121_v37, %s2910_s4  ;;  %1266 = vrot.lane.b32.xlu0 %v2830_v38, %s2911_s21  ;;  %v2832_v45 = vpop.eup %2831 }
 0x91e   :  { %v1110_v46 = vadd.f32 1.0, %v2832_v45  ;;  %v2834_v47 = vpop.eup %2833 }
 0x91f   :  { %v1249_v48 = vadd.f32 1.0, %v2834_v47 }
 0x920   :  { %2835 = vrcp.f32 %v1110_v46 }
 0x921   :  { %1261 = vrot.lane.b32.xlu0 %v1260_v40, %s2910_s4  ;;  %2837 = vrcp.f32 %v1249_v48 }
 0x92d   :  { %v2836_v35 = vpop.eup %2835 }
 0x92e   :  { %v2838_v18 = vpop.eup %2837 }
 0x98b   :  { %v1128_v49 = vpop.permute.xlu1 %1127 }
 0x98c   :  { %v1130_v50 = vmul.f32 %v2836_v35, %v1128_v49 }
 0x98e   :  { %1132 = vrot.lane.b32.xlu1 %v1130_v50, %s2910_s4 }
 0x98f   :  { %v1267_v54 = vpop.permute.xlu0 %1266  ;;  %v1123_v56 = vpop.permute.xlu1 %1122 }
 0x990   :  { %v1269_v55 = vmul.f32 %v2838_v18, %v1267_v54  ;;  %v1125_v57 = vmul.f32 %v2836_v35, %v1123_v56 }
 0x992   :  { %1271 = vrot.lane.b32.xlu0 %v1269_v55, %s2910_s4 }
 0x993   :  { %v1262_v58 = vpop.permute.xlu0 %1261 }
 0x994   :  { %v1264_v61 = vmul.f32 %v2838_v18, %v1262_v58 }
 0xa00   :  { %v1133_v59 = vpop.permute.xlu1 %1132 }
 0xa01   :  { %v1135_v60 = vadd.f32 %v1133_v59, %v1125_v57 }
 0xa03   :  { %2839 = vtanh.f32 %v1135_v60  ;;  %v1166_v14 = vrot.slane %v1135_v60, %v2995_v15 }
 0xa04   :  { %v1272_v63 = vpop.permute.xlu0 %1271 }
 0xa05   :  { %v1274_v2 = vadd.f32 %v1272_v63, %v1264_v61 }
 0xa07   :  { %2841 = vtanh.f32 %v1274_v2  ;;  %v1305_v23 = vrot.slane %v1274_v2, %v2995_v15 }
 0xa10   :  { %v2840_v4 = vpop.eup %2839 }
 0xa11   :  { %1138 = vrot.lane.b32.xlu1 %v2840_v4, %s2911_s21 }
 0xa14   :  { %v2842_v6 = vpop.eup %2841 }
 0xa15   :  { %1144 = vperm.xlu1 %2746, %v3296_v5   ;;  %1277 = vrot.lane.b32.xlu0 %v2842_v6, %s2911_s21 }
 0xa19   :  { %1283 = vperm.xlu0 %2745, %v3302_v7  }
 0xa83   :  { %v1139_v51 = vpop.permute.xlu1 %1138 }
 0xa84   :  { %v1141_v53 = vmul.f32 %v2836_v35, %v1139_v51 }
 0xa86   :  { %v1154_v12 = vrot.slane %v1141_v53, %v2995_v15 }
 0xa87   :  { %v1278_v52 = vpop.permute.xlu0 %1277 }
 0xa88   :  { %v1280_v19 = vmul.f32 %v2838_v18, %v1278_v52  ;;  %1155 = vrot.lane.b32.xlu1 %v1154_v12, %s2910_s4 }
 0xa8a   :  { %v1293_v20 = vrot.slane %v1280_v19, %v2995_v15 }
 0xa8c   :  { %1167 = vrot.lane.b32.xlu1 %v1166_v14, %s2913_s10  ;;  %1294 = vrot.lane.b32.xlu0 %v1293_v20, %s2910_s4 }
 0xa90   :  { %1306 = vrot.lane.b32.xlu0 %v1305_v23, %s2913_s10  ;;  %v1145_v25 = vpop.permute.xlu1 %1144 }
 0xa91   :  { %vm1146_vm5 = vcmp.eq.s32.totalorder %v1145_v25, 1 }
 0xa94   :  { %v1284_v27 = vpop.permute.xlu0 %1283 }
 0xa95   :  { %vm1285_vm7 = vcmp.eq.s32.totalorder %v1284_v27, 1 }
 0xafa   :  { %v1156_v28 = vpop.permute.xlu1 %1155 }
 0xafb   :  { %v1158_v29 = vsel %vm1146_vm5, %v1156_v28, %v3261_v13  ;;  %v1171_v30 = vsel %vm1146_vm5, %v1156_v28, 0.0 }
 0xafc   :  { %1172 = vst.msk [vmem:[#allocation2] sm:$0x3] %vm192_vm1, %v1158_v29  ;;  %v1174_v31 = vpack.c.bf16 %v1171_v30, %v1171_v30 }
 0xafe   :  { %2508 = vst.msk [vmem:[%s3641_s6 + $0x3] sm:$0x1] %vm339_vm6, %v1174_v31  ;;  %v1168_v32 = vpop.permute.xlu1 %1167  ;;  %v1295_v16 = vpop.permute.xlu0 %1294 }
 0xaff   :  { %v1170_v33 = vsel %vm1146_vm5, %v1168_v32, %v3279_v22  ;;  %v1297_v34 = vsel %vm1285_vm7, %v1295_v16, %v3267_v11  ;;  %v1310_v17 = vsel %vm1285_vm7, %v1295_v16, 0.0  ;;  %v2767_v16 = vld [vmem:[%s3637_s2 + $0x8] sm:$0xff]  }
 0xb00   :  { %1173 = vst.msk [vmem:[#allocation3] sm:$0x3] %vm192_vm1, %v1170_v33  ;;  %1311 = vst.msk [vmem:[#allocation4] sm:$0x3] %vm192_vm1, %v1297_v34  ;;  %v1313_v13 = vpack.c.bf16 %v1310_v17, %v1310_v17  ;;  %v2768_v33 = vld [vmem:[%s3638_s3 + $0x8] sm:$0xff]   ;;  %v2769_v34 = vld [vmem:[%s3637_s2] sm:$0xff]  }
 0xb02   :  { %2514 = vst.msk [vmem:[%s3642_s7 + $0x4] sm:$0x1] %vm339_vm6, %v1313_v13  ;;  %v1307_v36 = vpop.permute.xlu0 %1306 }
 0xb03   :  { %v1309_v37 = vsel %vm1285_vm7, %v1307_v36, %v3284_v39  ;;  %v3347_v38 = vld [vmem:[#allocation2] sm:$0x3]  ;;  %v2463_v39 = vld [vmem:[%s3636_s1 + $0x7] sm:$0x1] }
 0xb04   :  { %1312 = vst.msk [vmem:[#allocation5] sm:$0x3] %vm192_vm1, %v1309_v37  ;;  %v1321_v11 = vpack.c.bf16 %v3347_v38, %v3347_v38  ;;  %114 = vst [vmem:[#allocation7 + $0x3] sm:$0x1] %v2463_v39  ;;  %v41_v39 = vld [vmem:[%s3635_s0 + $0xa] sm:$0x1] }
 0xb05   :  { %42 = vst [vmem:[#allocation6 + $0x5] sm:$0x1] %v41_v39 }
 0xb06   :  { %2679 = vmatmul.mubr.msk.bf16.vlgmr.msra.gmra.mxu0 %vm222_vm2, %v1321_v11 }
 0xb07   :  { %v3353_v22 = vld [vmem:[#allocation4] sm:$0x3]  ;;  %2694 = vmatprep.mubr.msk.bf16.mxu0 %vm2908_vm0, %v2907_v1  ;;  %v3365_v59 = vld [vmem:[#allocation3] sm:$0x3]  ;;  %2691 = vmatpush3.bf16.msra.mxu0 %v2767_v16 }
 0xb08   :  { %v1460_v40 = vpack.c.bf16 %v3353_v22, %v3353_v22  ;;  %v1399_v60 = vrot.slane %v3365_v59, %v2995_v15  ;;  %2692 = vmatprep.subr.bf16.mxu0 %v2907_v1 }
 0xb0a   :  { %2687 = vmatmul.mubr.msk.bf16.vlgmr.msra.gmra.mxu1 %vm222_vm2, %v1460_v40 }
 0xb0b   :  { %2702 = vmatprep.mubr.msk.bf16.mxu1 %vm2908_vm0, %v2907_v1  ;;  %v1457_v45 = vld [vmem:[#allocation7 + $0x3] sm:$0x1]  ;;  %v3370_v63 = vld [vmem:[#allocation5] sm:$0x3]  ;;  %2699 = vmatpush3.bf16.msra.mxu1 %v2768_v33 }
 0xb0c   :  { %v1458_v48 = vunpack.c.l.bf16 %v1457_v45  ;;  %v1538_v2 = vrot.slane %v3370_v63, %v2995_v15  ;;  %2693 = vmatpush3.bf16.msra.mxu0 %v2769_v34  ;;  %2700 = vmatprep.subr.bf16.mxu1 %v2907_v1 }
 0xb0d   :  { %2706 = vmatprep.subr.bf16.mxu0 %v2907_v1 }
 0xbc6   :  { %v1375_v46 = vpop.f32.mrf.mxu0 }
 0xbc7   :  { %v1381_v47 = vadd.f32 %v1375_v46, %v1319_v43 }
 0xbc8   :  { %v2680_v35 = vpop.f32.mrf.mxu0 }
 0xbc9   :  { %2843 = vtanh.f32 %v1381_v47  ;;  %v2519_v4 = vmul.f32 -1.442695, %v1381_v47 }
 0xbca   :  { %v1378_v49 = vpop.f32.mrf.mxu0  ;;  %v1514_v50 = vpop.f32.mrf.mxu1 }
 0xbcb   :  { %v1520_v18 = vadd.f32 %v1514_v50, %v1458_v48 }
 0xbcc   :  { %v2681_v54 = vpop.f32.mrf.mxu0  ;;  %v2688_v55 = vpop.f32.mrf.mxu1 }
 0xbcd   :  { %2845 = vtanh.f32 %v1520_v18  ;;  %v2525_v6 = vmul.f32 -1.442695, %v1520_v18 }
 0xbce   :  { %v1517_v56 = vpop.f32.mrf.mxu1  ;;  %2847 = vpow2.f32 %v2519_v4 }
 0xbcf   :  { %2849 = vpow2.f32 %v2525_v6 }
 0xbd0   :  { %v2689_v57 = vpop.f32.mrf.mxu1 }
 0xbd6   :  { %v2844_v58 = vpop.eup %2843 }
 0xbd7   :  { %1405 = vrot.lane.b32.xlu1 %v2844_v58, %s2911_s21 }
 0xbda   :  { %v2846_v61 = vpop.eup %2845 }
 0xbdb   :  { %1400 = vrot.lane.b32.xlu1 %v1399_v60, %s2910_s4  ;;  %1544 = vrot.lane.b32.xlu0 %v2846_v61, %s2911_s21  ;;  %v2848_v8 = vpop.eup %2847  ;;  %v2462_v61 = vld [vmem:[%s3636_s1 + $0x5] sm:$0x1] }
 0xbdc   :  { %v1388_v62 = vadd.f32 1.0, %v2848_v8  ;;  %v2850_v9 = vpop.eup %2849  ;;  %112 = vst [vmem:[#allocation7 + $0x2] sm:$0x1] %v2462_v61 }
 0xbdd   :  { %v1527_v51 = vadd.f32 1.0, %v2850_v9 }
 0xbde   :  { %2851 = vrcp.f32 %v1388_v62 }
 0xbdf   :  { %1539 = vrot.lane.b32.xlu0 %v1538_v2, %s2910_s4  ;;  %2853 = vrcp.f32 %v1527_v51 }
 0xbe3   :  { %v1735_v4 = vld [vmem:[#allocation7 + $0x2] sm:$0x1] }
 0xbe4   :  { %v1736_v62 = vunpack.c.l.bf16 %v1735_v4 }
 0xbeb   :  { %v2852_v53 = vpop.eup %2851 }
 0xbec   :  { %v2854_v52 = vpop.eup %2853 }
 0xc49   :  { %v1406_v10 = vpop.permute.xlu1 %1405 }
 0xc4a   :  { %v1408_v12 = vmul.f32 %v2852_v53, %v1406_v10 }
 0xc4c   :  { %1410 = vrot.lane.b32.xlu1 %v1408_v12, %s2910_s4 }
 0xc4d   :  { %v1545_v19 = vpop.permute.xlu0 %1544  ;;  %v1401_v20 = vpop.permute.xlu1 %1400 }
 0xc4e   :  { %v1547_v14 = vmul.f32 %v2854_v52, %v1545_v19  ;;  %v1403_v21 = vmul.f32 %v2852_v53, %v1401_v20 }
 0xc50   :  { %1549 = vrot.lane.b32.xlu0 %v1547_v14, %s2910_s4 }
 0xc51   :  { %v1540_v23 = vpop.permute.xlu0 %1539 }
 0xc52   :  { %v1542_v28 = vmul.f32 %v2854_v52, %v1540_v23 }
 0xcbe   :  { %v1411_v25 = vpop.permute.xlu1 %1410 }
 0xcbf   :  { %v1413_v27 = vadd.f32 %v1411_v25, %v1403_v21 }
 0xcc1   :  { %2855 = vtanh.f32 %v1413_v27  ;;  %v1444_v11 = vrot.slane %v1413_v27, %v2995_v15 }
 0xcc2   :  { %v1550_v29 = vpop.permute.xlu0 %1549 }
 0xcc3   :  { %v1552_v30 = vadd.f32 %v1550_v29, %v1542_v28 }
 0xcc5   :  { %2857 = vtanh.f32 %v1552_v30  ;;  %v1583_v41 = vrot.slane %v1552_v30, %v2995_v15 }
 0xcce   :  { %v2856_v31 = vpop.eup %2855 }
 0xccf   :  { %1416 = vrot.lane.b32.xlu1 %v2856_v31, %s2911_s21 }
 0xcd2   :  { %v2858_v32 = vpop.eup %2857 }
 0xcd3   :  { %1422 = vperm.xlu1 %2746, %v3302_v7   ;;  %1555 = vrot.lane.b32.xlu0 %v2858_v32, %s2911_s21 }
 0xcd7   :  { %1561 = vperm.xlu0 %2745, %v3296_v5   ;;  %v2770_v5 = vld [vmem:[%s3638_s3] sm:$0xff]  }
 0xcd8   :  { %2701 = vmatpush3.bf16.msra.mxu1 %v2770_v5 }
 0xcd9   :  { %2714 = vmatprep.subr.bf16.mxu1 %v2907_v1 }
 0xd41   :  { %v1417_v7 = vpop.permute.xlu1 %1416 }
 0xd42   :  { %v1419_v17 = vmul.f32 %v2852_v53, %v1417_v7 }
 0xd44   :  { %v1432_v13 = vrot.slane %v1419_v17, %v2995_v15 }
 0xd45   :  { %v1556_v36 = vpop.permute.xlu0 %1555 }
 0xd46   :  { %v1558_v37 = vmul.f32 %v2854_v52, %v1556_v36  ;;  %1433 = vrot.lane.b32.xlu1 %v1432_v13, %s2910_s4 }
 0xd48   :  { %v1571_v40 = vrot.slane %v1558_v37, %v2995_v15 }
 0xd4a   :  { %1445 = vrot.lane.b32.xlu1 %v1444_v11, %s2913_s10  ;;  %1572 = vrot.lane.b32.xlu0 %v1571_v40, %s2910_s4 }
 0xd4e   :  { %1584 = vrot.lane.b32.xlu0 %v1583_v41, %s2913_s10  ;;  %v1423_v43 = vpop.permute.xlu1 %1422 }
 0xd4f   :  { %vm1424_vm8 = vcmp.eq.s32.totalorder %v1423_v43, 1 }
 0xd52   :  { %v1562_v45 = vpop.permute.xlu0 %1561 }
 0xd53   :  { %vm1563_vm9 = vcmp.eq.s32.totalorder %v1562_v45, 1 }
 0xdb8   :  { %v1434_v46 = vpop.permute.xlu1 %1433 }
 0xdb9   :  { %v1436_v47 = vsel %vm1424_vm8, %v1434_v46, %v3347_v38  ;;  %v1449_v48 = vsel %vm1424_vm8, %v1434_v46, 0.0 }
 0xdba   :  { %1450 = vst.msk [vmem:[#allocation2] sm:$0x3] %vm192_vm1, %v1436_v47  ;;  %v1452_v35 = vpack.c.bf16 %v1449_v48, %v1449_v48 }
 0xdbc   :  { %2520 = vst.msk [vmem:[%s3641_s6 + $0x4] sm:$0x1] %vm339_vm6, %v1452_v35  ;;  %v1446_v49 = vpop.permute.xlu1 %1445  ;;  %v1573_v50 = vpop.permute.xlu0 %1572  ;;  %v2771_v35 = vld [vmem:[%s3637_s2 + $0x8] sm:$0xff]  }
 0xdbd   :  { %v1448_v18 = vsel %vm1424_vm8, %v1446_v49, %v3365_v59  ;;  %v1575_v54 = vsel %vm1563_vm9, %v1573_v50, %v3353_v22  ;;  %v1588_v55 = vsel %vm1563_vm9, %v1573_v50, 0.0  ;;  %v2772_v49 = vld [vmem:[%s3638_s3 + $0x8] sm:$0xff]   ;;  %v2773_v50 = vld [vmem:[%s3637_s2] sm:$0xff]  }
 0xdbe   :  { %1451 = vst.msk [vmem:[#allocation3] sm:$0x3] %vm192_vm1, %v1448_v18  ;;  %1589 = vst.msk [vmem:[#allocation4] sm:$0x3] %vm192_vm1, %v1575_v54  ;;  %v1591_v38 = vpack.c.bf16 %v1588_v55, %v1588_v55 }
 0xdc0   :  { %2526 = vst.msk [vmem:[%s3642_s7 + $0x3] sm:$0x1] %vm339_vm6, %v1591_v38  ;;  %v1585_v56 = vpop.permute.xlu0 %1584 }
 0xdc1   :  { %v1587_v57 = vsel %vm1563_vm9, %v1585_v56, %v3370_v63  ;;  %v3425_v58 = vld [vmem:[#allocation2] sm:$0x3]  ;;  %v1596_v63 = vld [vmem:[#allocation6 + $0x5] sm:$0x1] }
 0xdc2   :  { %1590 = vst.msk [vmem:[#allocation5] sm:$0x3] %vm192_vm1, %v1587_v57  ;;  %v1599_v22 = vpack.c.bf16 %v3425_v58, %v3425_v58  ;;  %v1597_v2 = vunpack.c.l.bf16 %v1596_v63 }
 0xdc4   :  { %2695 = vmatmul.mubr.msk.bf16.vlgmr.msra.gmra.mxu0 %vm222_vm2, %v1599_v22  ;;  %v43_v22 = vld [vmem:[%s3635_s0 + $0xc] sm:$0x1] }
 0xdc5   :  { %v3431_v59 = vld [vmem:[#allocation4] sm:$0x3]  ;;  %2710 = vmatprep.mubr.msk.bf16.mxu0 %vm2908_vm0, %v2907_v1  ;;  %v3443_v21 = vld [vmem:[#allocation3] sm:$0x3]  ;;  %2707 = vmatpush3.bf16.msra.mxu0 %v2771_v35  ;;  %44 = vst [vmem:[#allocation6 + $0x6] sm:$0x1] %v43_v22 }
 0xdc6   :  { %v1738_v60 = vpack.c.bf16 %v3431_v59, %v3431_v59  ;;  %v1677_v23 = vrot.slane %v3443_v21, %v2995_v15  ;;  %2708 = vmatprep.subr.bf16.mxu0 %v2907_v1 }
 0xdc8   :  { %2703 = vmatmul.mubr.msk.bf16.vlgmr.msra.gmra.mxu1 %vm222_vm2, %v1738_v60 }
 0xdc9   :  { %2718 = vmatprep.mubr.msk.bf16.mxu1 %vm2908_vm0, %v2907_v1  ;;  %v3448_v27 = vld [vmem:[#allocation5] sm:$0x3]  ;;  %2715 = vmatpush3.bf16.msra.mxu1 %v2772_v49 }
 0xdca   :  { %v1816_v28 = vrot.slane %v3448_v27, %v2995_v15  ;;  %2709 = vmatpush3.bf16.msra.mxu0 %v2773_v50  ;;  %2716 = vmatprep.subr.bf16.mxu1 %v2907_v1 }
 0xdcb   :  { %2722 = vmatprep.subr.bf16.mxu0 %v2907_v1 }
 0xe84   :  { %v1653_v6 = vpop.f32.mrf.mxu0 }
 0xe85   :  { %v1659_v8 = vadd.f32 %v1653_v6, %v1597_v2 }
 0xe86   :  { %v2696_v9 = vpop.f32.mrf.mxu0 }
 0xe87   :  { %2859 = vtanh.f32 %v1659_v8  ;;  %v2531_v29 = vmul.f32 -1.442695, %v1659_v8 }
 0xe88   :  { %v1656_v51 = vpop.f32.mrf.mxu0  ;;  %v1792_v53 = vpop.f32.mrf.mxu1 }
 0xe89   :  { %v1798_v10 = vadd.f32 %v1792_v53, %v1736_v62 }
 0xe8a   :  { %v2697_v12 = vpop.f32.mrf.mxu0  ;;  %v2704_v52 = vpop.f32.mrf.mxu1 }
 0xe8b   :  { %2861 = vtanh.f32 %v1798_v10  ;;  %v2537_v30 = vmul.f32 -1.442695, %v1798_v10 }
 0xe8c   :  { %v1795_v19 = vpop.f32.mrf.mxu1  ;;  %2863 = vpow2.f32 %v2531_v29 }
 0xe8d   :  { %2865 = vpow2.f32 %v2537_v30 }
 0xe8e   :  { %v2705_v14 = vpop.f32.mrf.mxu1 }
 0xe94   :  { %v2860_v20 = vpop.eup %2859 }
 0xe95   :  { %1683 = vrot.lane.b32.xlu1 %v2860_v20, %s2911_s21 }
 0xe98   :  { %v2862_v25 = vpop.eup %2861 }
 0xe99   :  { %1678 = vrot.lane.b32.xlu1 %v1677_v23, %s2910_s4  ;;  %1822 = vrot.lane.b32.xlu0 %v2862_v25, %s2911_s21  ;;  %v2864_v31 = vpop.eup %2863  ;;  %v1874_v23 = vld [vmem:[#allocation6 + $0x6] sm:$0x1] }
 0xe9a   :  { %v1666_v32 = vadd.f32 1.0, %v2864_v31  ;;  %v2866_v16 = vpop.eup %2865  ;;  %v1875_v25 = vunpack.c.l.bf16 %v1874_v23 }
 0xe9b   :  { %v1805_v33 = vadd.f32 1.0, %v2866_v16 }
 0xe9c   :  { %2867 = vrcp.f32 %v1666_v32 }
 0xe9d   :  { %1817 = vrot.lane.b32.xlu0 %v1816_v28, %s2910_s4  ;;  %2869 = vrcp.f32 %v1805_v33 }
 0xea9   :  { %v2868_v34 = vpop.eup %2867 }
 0xeaa   :  { %v2870_v5 = vpop.eup %2869 }
 0xf07   :  { %v1684_v7 = vpop.permute.xlu1 %1683 }
 0xf08   :  { %v1686_v17 = vmul.f32 %v2868_v34, %v1684_v7 }
 0xf0a   :  { %1688 = vrot.lane.b32.xlu1 %v1686_v17, %s2910_s4 }
 0xf0b   :  { %v1823_v13 = vpop.permute.xlu0 %1822  ;;  %v1679_v37 = vpop.permute.xlu1 %1678 }
 0xf0c   :  { %v1825_v36 = vmul.f32 %v2870_v5, %v1823_v13  ;;  %v1681_v11 = vmul.f32 %v2868_v34, %v1679_v37 }
 0xf0e   :  { %1827 = vrot.lane.b32.xlu0 %v1825_v36, %s2910_s4 }
 0xf0f   :  { %v1818_v40 = vpop.permute.xlu0 %1817 }
 0xf10   :  { %v1820_v43 = vmul.f32 %v2870_v5, %v1818_v40 }
 0xf7c   :  { %v1689_v39 = vpop.permute.xlu1 %1688 }
 0xf7d   :  { %v1691_v41 = vadd.f32 %v1689_v39, %v1681_v11 }
 0xf7f   :  { %2871 = vtanh.f32 %v1691_v41  ;;  %v1722_v56 = vrot.slane %v1691_v41, %v2995_v15 }
 0xf80   :  { %v1828_v45 = vpop.permute.xlu0 %1827 }
 0xf81   :  { %v1830_v46 = vadd.f32 %v1828_v45, %v1820_v43 }
 0xf83   :  { %2873 = vtanh.f32 %v1830_v46  ;;  %v1861_v60 = vrot.slane %v1830_v46, %v2995_v15 }
 0xf8c   :  { %v2872_v47 = vpop.eup %2871 }
 0xf8d   :  { %1694 = vrot.lane.b32.xlu1 %v2872_v47, %s2911_s21 }
 0xf90   :  { %v2874_v48 = vpop.eup %2873 }
 0xf91   :  { %1700 = vperm.xlu1 %2746, %v3216_v44   ;;  %1833 = vrot.lane.b32.xlu0 %v2874_v48, %s2911_s21 }
 0xf95   :  { %1839 = vperm.xlu0 %2745, %v3210_v42   ;;  %v2774_v42 = vld [vmem:[%s3638_s3] sm:$0xff]  }
 0xf96   :  { %2717 = vmatpush3.bf16.msra.mxu1 %v2774_v42 }
 0xf97   :  { %2730 = vmatprep.subr.bf16.mxu1 %v2907_v1 }
 0xfff   :  { %v1695_v44 = vpop.permute.xlu1 %1694 }
0x1000   :  { %v1697_v18 = vmul.f32 %v2868_v34, %v1695_v44 }
0x1002   :  { %v1710_v54 = vrot.slane %v1697_v18, %v2995_v15 }
0x1003   :  { %v1834_v55 = vpop.permute.xlu0 %1833 }
0x1004   :  { %v1836_v38 = vmul.f32 %v2870_v5, %v1834_v55  ;;  %1711 = vrot.lane.b32.xlu1 %v1710_v54, %s2910_s4 }
0x1006   :  { %v1849_v57 = vrot.slane %v1836_v38, %v2995_v15 }
0x1008   :  { %1723 = vrot.lane.b32.xlu1 %v1722_v56, %s2913_s10  ;;  %1850 = vrot.lane.b32.xlu0 %v1849_v57, %s2910_s4 }
0x100c   :  { %1862 = vrot.lane.b32.xlu0 %v1861_v60, %s2913_s10  ;;  %v1701_v61 = vpop.permute.xlu1 %1700 }
0x100d   :  { %vm1702_vm10 = vcmp.eq.s32.totalorder %v1701_v61, 1 }
0x1010   :  { %v1840_v63 = vpop.permute.xlu0 %1839 }
0x1011   :  { %vm1841_vm11 = vcmp.eq.s32.totalorder %v1840_v63, 1 }
0x1076   :  { %v1712_v2 = vpop.permute.xlu1 %1711 }
0x1077   :  { %v1714_v4 = vsel %vm1702_vm10, %v1712_v2, %v3425_v58  ;;  %v1727_v6 = vsel %vm1702_vm10, %v1712_v2, 0.0 }
0x1078   :  { %1728 = vst.msk [vmem:[#allocation2] sm:$0x3] %vm192_vm1, %v1714_v4  ;;  %v1730_v8 = vpack.c.bf16 %v1727_v6, %v1727_v6  ;;  %v2775_v4 = vld [vmem:[%s3637_s2 + $0x8] sm:$0xff]  }
0x1079   :  { %v2776_v6 = vld [vmem:[%s3638_s3 + $0x8] sm:$0xff]  }
0x107a   :  { %2532 = vst.msk [vmem:[%s3641_s6 + $0x5] sm:$0x1] %vm339_vm6, %v1730_v8  ;;  %v1724_v62 = vpop.permute.xlu1 %1723  ;;  %v1851_v9 = vpop.permute.xlu0 %1850  ;;  %v2777_v8 = vld [vmem:[%s3637_s2] sm:$0xff]  }
0x107b   :  { %v1726_v51 = vsel %vm1702_vm10, %v1724_v62, %v3443_v21  ;;  %v1853_v53 = vsel %vm1841_vm11, %v1851_v9, %v3431_v59  ;;  %v1866_v10 = vsel %vm1841_vm11, %v1851_v9, 0.0  ;;  %v2461_v21 = vld [vmem:[%s3636_s1 + $0x3] sm:$0x1] }
0x107c   :  { %1729 = vst.msk [vmem:[#allocation3] sm:$0x3] %vm192_vm1, %v1726_v51  ;;  %1867 = vst.msk [vmem:[#allocation4] sm:$0x3] %vm192_vm1, %v1853_v53  ;;  %v1869_v58 = vpack.c.bf16 %v1866_v10, %v1866_v10 }
0x107d   :  { %110 = vst [vmem:[#allocation7 + $0x1] sm:$0x1] %v2461_v21 }
0x107e   :  { %2538 = vst.msk [vmem:[%s3642_s7 + $0x2] sm:$0x1] %vm339_vm6, %v1869_v58  ;;  %v1863_v12 = vpop.permute.xlu0 %1862 }
0x107f   :  { %v1865_v52 = vsel %vm1841_vm11, %v1863_v12, %v3448_v27  ;;  %v3503_v19 = vld [vmem:[#allocation2] sm:$0x3]  ;;  %v45_v12 = vld [vmem:[%s3635_s0 + $0xe] sm:$0x1] }
0x1080   :  { %1868 = vst.msk [vmem:[#allocation5] sm:$0x3] %vm192_vm1, %v1865_v52  ;;  %v1877_v59 = vpack.c.bf16 %v3503_v19, %v3503_v19  ;;  %46 = vst [vmem:[#allocation6 + $0x7] sm:$0x1] %v45_v12 }
0x1082   :  { %2711 = vmatmul.mubr.msk.bf16.vlgmr.msra.gmra.mxu0 %vm222_vm2, %v1877_v59 }
0x1083   :  { %v3509_v14 = vld [vmem:[#allocation4] sm:$0x3]  ;;  %2726 = vmatprep.mubr.msk.bf16.mxu0 %vm2908_vm0, %v2907_v1  ;;  %v3521_v36 = vld [vmem:[#allocation3] sm:$0x3]  ;;  %2723 = vmatpush3.bf16.msra.mxu0 %v2775_v4 }
0x1084   :  { %v2016_v20 = vpack.c.bf16 %v3509_v14, %v3509_v14  ;;  %v2013_v27 = vld [vmem:[#allocation7 + $0x1] sm:$0x1]  ;;  %v1955_v37 = vrot.slane %v3521_v36, %v2995_v15  ;;  %2724 = vmatprep.subr.bf16.mxu0 %v2907_v1 }
0x1085   :  { %v2014_v30 = vunpack.c.l.bf16 %v2013_v27 }
0x1086   :  { %2719 = vmatmul.mubr.msk.bf16.vlgmr.msra.gmra.mxu1 %vm222_vm2, %v2016_v20 }
0x1087   :  { %2734 = vmatprep.mubr.msk.bf16.mxu1 %vm2908_vm0, %v2907_v1  ;;  %v3526_v40 = vld [vmem:[#allocation5] sm:$0x3]  ;;  %2731 = vmatpush3.bf16.msra.mxu1 %v2776_v6 }
0x1088   :  { %v2094_v39 = vrot.slane %v3526_v40, %v2995_v15  ;;  %2725 = vmatpush3.bf16.msra.mxu0 %v2777_v8  ;;  %2732 = vmatprep.subr.bf16.mxu1 %v2907_v1 }
0x1142   :  { %v1931_v28 = vpop.f32.mrf.mxu0 }
0x1143   :  { %v1937_v29 = vadd.f32 %v1931_v28, %v1875_v25 }
0x1144   :  { %v2712_v31 = vpop.f32.mrf.mxu0 }
0x1145   :  { %2875 = vtanh.f32 %v1937_v29  ;;  %v2543_v41 = vmul.f32 -1.442695, %v1937_v29 }
0x1146   :  { %v1934_v32 = vpop.f32.mrf.mxu0  ;;  %v2070_v16 = vpop.f32.mrf.mxu1 }
0x1147   :  { %v2076_v33 = vadd.f32 %v2070_v16, %v2014_v30 }
0x1148   :  { %v2713_v34 = vpop.f32.mrf.mxu0  ;;  %v2720_v7 = vpop.f32.mrf.mxu1 }
0x1149   :  { %2877 = vtanh.f32 %v2076_v33  ;;  %v2549_v43 = vmul.f32 -1.442695, %v2076_v33 }
0x114a   :  { %v2073_v17 = vpop.f32.mrf.mxu1  ;;  %2879 = vpow2.f32 %v2543_v41 }
0x114b   :  { %2881 = vpow2.f32 %v2549_v43  ;;  %v2460_v17 = vld [vmem:[%s3636_s1 + $0x1] sm:$0x1] }
0x114c   :  { %v2721_v5 = vpop.f32.mrf.mxu1  ;;  %108 = vst [vmem:[#allocation7] sm:$0x1] %v2460_v17 }
0x114d   :  { %v2152_v5 = vld [vmem:[#allocation6 + $0x7] sm:$0x1] }
0x1152   :  { %v2876_v13 = vpop.eup %2875 }
0x1153   :  { %1961 = vrot.lane.b32.xlu1 %v2876_v13, %s2911_s21  ;;  %v2153_v13 = vunpack.c.l.bf16 %v2152_v5 }
0x1156   :  { %v2878_v11 = vpop.eup %2877 }
0x1157   :  { %1956 = vrot.lane.b32.xlu1 %v1955_v37, %s2910_s4  ;;  %2100 = vrot.lane.b32.xlu0 %v2878_v11, %s2911_s21  ;;  %v2880_v45 = vpop.eup %2879 }
0x1158   :  { %v1944_v46 = vadd.f32 1.0, %v2880_v45  ;;  %v2882_v47 = vpop.eup %2881 }
0x1159   :  { %v2083_v48 = vadd.f32 1.0, %v2882_v47 }
0x115a   :  { %2883 = vrcp.f32 %v1944_v46 }
0x115b   :  { %2095 = vrot.lane.b32.xlu0 %v2094_v39, %s2910_s4  ;;  %2885 = vrcp.f32 %v2083_v48 }
0x1167   :  { %v2884_v35 = vpop.eup %2883 }
0x1168   :  { %v2886_v44 = vpop.eup %2885 }
0x11c5   :  { %v1962_v49 = vpop.permute.xlu1 %1961 }
0x11c6   :  { %v1964_v50 = vmul.f32 %v2884_v35, %v1962_v49 }
0x11c8   :  { %1966 = vrot.lane.b32.xlu1 %v1964_v50, %s2910_s4 }
0x11c9   :  { %v2101_v18 = vpop.permute.xlu0 %2100  ;;  %v1957_v54 = vpop.permute.xlu1 %1956 }
0x11ca   :  { %v2103_v42 = vmul.f32 %v2886_v44, %v2101_v18  ;;  %v1959_v55 = vmul.f32 %v2884_v35, %v1957_v54 }
0x11cc   :  { %2105 = vrot.lane.b32.xlu0 %v2103_v42, %s2910_s4 }
0x11cd   :  { %v2096_v38 = vpop.permute.xlu0 %2095 }
0x11ce   :  { %v2098_v22 = vmul.f32 %v2886_v44, %v2096_v38 }
0x123a   :  { %v1967_v56 = vpop.permute.xlu1 %1966 }
0x123b   :  { %v1969_v57 = vadd.f32 %v1967_v56, %v1959_v55 }
0x123d   :  { %2887 = vtanh.f32 %v1969_v57  ;;  %v2000_v10 = vrot.slane %v1969_v57, %v2995_v15 }
0x123e   :  { %v2106_v60 = vpop.permute.xlu0 %2105 }
0x123f   :  { %v2108_v61 = vadd.f32 %v2106_v60, %v2098_v22 }
0x1241   :  { %2889 = vtanh.f32 %v2108_v61  ;;  %v2139_v1 = vrot.slane %v2108_v61, %v2995_v15 }
0x124a   :  { %v2888_v63 = vpop.eup %2887 }
0x124b   :  { %1972 = vrot.lane.b32.xlu1 %v2888_v63, %s2911_s21 }
0x124e   :  { %v2890_v2 = vpop.eup %2889 }
0x124f   :  { %1978 = vperm.xlu1 %2746, %v3130_v26   ;;  %2111 = vrot.lane.b32.xlu0 %v2890_v2, %s2911_s21 }
0x1253   :  { %2117 = vperm.xlu0 %2745, %v3124_v24   ;;  %v2778_v24 = vld [vmem:[%s3638_s3] sm:$0xff]  }
0x1254   :  { %2733 = vmatpush3.bf16.msra.mxu1 %v2778_v24 }
0x12bd   :  { %v1973_v26 = vpop.permute.xlu1 %1972 }
0x12be   :  { %v1975_v62 = vmul.f32 %v2884_v35, %v1973_v26 }
0x12c0   :  { %v1988_v9 = vrot.slane %v1975_v62, %v2995_v15 }
0x12c1   :  { %v2112_v51 = vpop.permute.xlu0 %2111 }
0x12c2   :  { %v2114_v53 = vmul.f32 %v2886_v44, %v2112_v51  ;;  %1989 = vrot.lane.b32.xlu1 %v1988_v9, %s2910_s4 }
0x12c4   :  { %v2127_v58 = vrot.slane %v2114_v53, %v2995_v15 }
0x12c6   :  { %2001 = vrot.lane.b32.xlu1 %v2000_v10, %s2913_s10  ;;  %2128 = vrot.lane.b32.xlu0 %v2127_v58, %s2910_s4 }
0x12ca   :  { %2140 = vrot.lane.b32.xlu0 %v2139_v1, %s2913_s10  ;;  %v1979_v52 = vpop.permute.xlu1 %1978 }
0x12cb   :  { %vm1980_vm0 = vcmp.eq.s32.totalorder %v1979_v52, 1 }
0x12ce   :  { %v2118_v59 = vpop.permute.xlu0 %2117 }
0x12cf   :  { %vm2119_vm12 = vcmp.eq.s32.totalorder %v2118_v59, 1 }
0x1334   :  { %v1990_v20 = vpop.permute.xlu1 %1989 }
0x1335   :  { %v1992_v21 = vsel %vm1980_vm0, %v1990_v20, %v3503_v19  ;;  %v2005_v23 = vsel %vm1980_vm0, %v1990_v20, 0.0 }
0x1336   :  { %2006 = vst.msk [vmem:[#allocation2] sm:$0x3] %vm192_vm1, %v1992_v21  ;;  %v2008_v25 = vpack.c.bf16 %v2005_v23, %v2005_v23 }
0x1338   :  { %2544 = vst.msk [vmem:[%s3641_s6 + $0x6] sm:$0x1] %vm339_vm6, %v2008_v25  ;;  %v2002_v27 = vpop.permute.xlu1 %2001  ;;  %v2129_v28 = vpop.permute.xlu0 %2128 }
0x1339   :  { %v2004_v29 = vsel %vm1980_vm0, %v2002_v27, %v3521_v36  ;;  %v2131_v30 = vsel %vm2119_vm12, %v2129_v28, %v3509_v14  ;;  %v2144_v31 = vsel %vm2119_vm12, %v2129_v28, 0.0  ;;  %v2289_v36 = vld [vmem:[#allocation7] sm:$0x1] }
0x133a   :  { %2007 = vst.msk [vmem:[#allocation3] sm:$0x3] %vm192_vm1, %v2004_v29  ;;  %2145 = vst.msk [vmem:[#allocation4] sm:$0x3] %vm192_vm1, %v2131_v30  ;;  %v2147_v19 = vpack.c.bf16 %v2144_v31, %v2144_v31 }
0x133c   :  { %2550 = vst.msk [vmem:[%s3642_s7 + $0x1] sm:$0x1] %vm339_vm6, %v2147_v19  ;;  %v2141_v32 = vpop.permute.xlu0 %2140 }
0x133d   :  { %v2143_v16 = vsel %vm2119_vm12, %v2141_v32, %v3526_v40  ;;  %v3579_v33 = vld [vmem:[#allocation2] sm:$0x3]  ;;  %v2290_v40 = vunpack.c.l.bf16 %v2289_v36 }
0x133e   :  { %2146 = vst.msk [vmem:[#allocation5] sm:$0x3] %vm192_vm1, %v2143_v16  ;;  %v2155_v14 = vpack.c.bf16 %v3579_v33, %v3579_v33 }
0x1340   :  { %2727 = vmatmul.mubr.msk.bf16.vlgmr.msra.gmra.mxu0 %vm222_vm2, %v2155_v14 }
0x1341   :  { %v3585_v34 = vld [vmem:[#allocation4] sm:$0x3]  ;;  %v3593_v50 = vld [vmem:[#allocation3] sm:$0x3] }
0x1342   :  { %v2292_v7 = vpack.c.bf16 %v3585_v34, %v3585_v34  ;;  %v2233_v44 = vrot.slane %v3593_v50, %v2995_v15 }
0x1344   :  { %2735 = vmatmul.mubr.msk.bf16.vlgmr.msra.gmra.mxu1 %vm222_vm2, %v2292_v7 }
0x1345   :  { %v3598_v42 = vld [vmem:[#allocation5] sm:$0x3] }
0x1346   :  { %v2370_v54 = vrot.slane %v3598_v42, %v2995_v15 }
0x1400   :  { %v2209_v37 = vpop.f32.mrf.mxu0 }
0x1401   :  { %v2215_v11 = vadd.f32 %v2209_v37, %v2153_v13 }
0x1402   :  { %v2728_v39 = vpop.f32.mrf.mxu0 }
0x1403   :  { %2891 = vtanh.f32 %v2215_v11  ;;  %v2555_v55 = vmul.f32 -1.442695, %v2215_v11 }
0x1404   :  { %v2212_v41 = vpop.f32.mrf.mxu0  ;;  %v2346_v43 = vpop.f32.mrf.mxu1 }
0x1405   :  { %v2352_v45 = vadd.f32 %v2346_v43, %v2290_v40 }
0x1406   :  { %v2729_v46 = vpop.f32.mrf.mxu0  ;;  %v2736_v47 = vpop.f32.mrf.mxu1 }
0x1407   :  { %2893 = vtanh.f32 %v2352_v45  ;;  %v2561_v38 = vmul.f32 -1.442695, %v2352_v45 }
0x1408   :  { %v2349_v48 = vpop.f32.mrf.mxu1  ;;  %2895 = vpow2.f32 %v2555_v55 }
0x1409   :  { %2897 = vpow2.f32 %v2561_v38 }
0x140a   :  { %v2737_v35 = vpop.f32.mrf.mxu1 }
0x1410   :  { %v2892_v49 = vpop.eup %2891 }
0x1411   :  { %2239 = vrot.lane.b32.xlu1 %v2892_v49, %s2911_s21 }
0x1414   :  { %v2894_v18 = vpop.eup %2893 }
0x1415   :  { %2234 = vrot.lane.b32.xlu1 %v2233_v44, %s2910_s4  ;;  %2376 = vrot.lane.b32.xlu0 %v2894_v18, %s2911_s21  ;;  %v2896_v56 = vpop.eup %2895 }
0x1416   :  { %v2222_v57 = vadd.f32 1.0, %v2896_v56  ;;  %v2898_v22 = vpop.eup %2897 }
0x1417   :  { %v2359_v60 = vadd.f32 1.0, %v2898_v22 }
0x1418   :  { %2899 = vrcp.f32 %v2222_v57 }
0x1419   :  { %2371 = vrot.lane.b32.xlu0 %v2370_v54, %s2910_s4  ;;  %2901 = vrcp.f32 %v2359_v60 }
0x1425   :  { %v2900_v61 = vpop.eup %2899 }
0x1426   :  { %v2902_v4 = vpop.eup %2901 }
0x1483   :  { %v2240_v63 = vpop.permute.xlu1 %2239 }
0x1484   :  { %v2242_v2 = vmul.f32 %v2900_v61, %v2240_v63 }
0x1486   :  { %2244 = vrot.lane.b32.xlu1 %v2242_v2, %s2910_s4 }
0x1487   :  { %v2377_v6 = vpop.permute.xlu0 %2376  ;;  %v2235_v26 = vpop.permute.xlu1 %2234 }
0x1488   :  { %v2379_v8 = vmul.f32 %v2902_v4, %v2377_v6  ;;  %v2237_v62 = vmul.f32 %v2900_v61, %v2235_v26 }
0x148a   :  { %2381 = vrot.lane.b32.xlu0 %v2379_v8, %s2910_s4 }
0x148b   :  { %v2372_v24 = vpop.permute.xlu0 %2371 }
0x148c   :  { %v2374_v53 = vmul.f32 %v2902_v4, %v2372_v24 }
0x14f8   :  { %v2245_v9 = vpop.permute.xlu1 %2244 }
0x14f9   :  { %v2247_v51 = vadd.f32 %v2245_v9, %v2237_v62 }
0x14fb   :  { %2903 = vtanh.f32 %v2247_v51  ;;  %v2278_v25 = vrot.slane %v2247_v51, %v2995_v15 }
0x14fc   :  { %v2382_v10 = vpop.permute.xlu0 %2381 }
0x14fd   :  { %v2384_v58 = vadd.f32 %v2382_v10, %v2374_v53 }
0x14ff   :  { %2905 = vtanh.f32 %v2384_v58 }
0x1508   :  { %v2904_v12 = vpop.eup %2903 }
0x1509   :  { %2250 = vrot.lane.b32.xlu1 %v2904_v12, %s2911_s21 }
0x150c   :  { %v2906_v1 = vpop.eup %2905 }
0x150d   :  { %2256 = vperm.xlu1 %2746, %v3044_v3   ;;  %2387 = vrot.lane.b32.xlu0 %v2906_v1, %s2911_s21  ;;  %v2415_v3 = vrot.slane %v2384_v58, %v2995_v15 }
0x1511   :  { %2393 = vperm.xlu0 %2745, %v3038_v0  }
0x157b   :  { %v2251_v52 = vpop.permute.xlu1 %2250 }
0x157c   :  { %v2253_v59 = vmul.f32 %v2900_v61, %v2251_v52 }
0x157e   :  { %v2266_v20 = vrot.slane %v2253_v59, %v2995_v15 }
0x157f   :  { %v2388_v21 = vpop.permute.xlu0 %2387 }
0x1580   :  { %v2390_v23 = vmul.f32 %v2902_v4, %v2388_v21  ;;  %2267 = vrot.lane.b32.xlu1 %v2266_v20, %s2910_s4 }
0x1582   :  { %v2403_v27 = vrot.slane %v2390_v23, %v2995_v15 }
0x1584   :  { %2279 = vrot.lane.b32.xlu1 %v2278_v25, %s2913_s10  ;;  %2404 = vrot.lane.b32.xlu0 %v2403_v27, %s2910_s4 }
0x1588   :  { %2416 = vrot.lane.b32.xlu0 %v2415_v3, %s2913_s10  ;;  %v2257_v0 = vpop.permute.xlu1 %2256 }
0x1589   :  { %vm2258_vm2 = vcmp.eq.s32.totalorder %v2257_v0, 1 }
0x158c   :  { %v2394_v28 = vpop.permute.xlu0 %2393 }
0x158d   :  { %vm2395_vm13 = vcmp.eq.s32.totalorder %v2394_v28, 1 }
0x15f2   :  { %v2268_v29 = vpop.permute.xlu1 %2267 }
0x15f3   :  { %v2270_v30 = vsel %vm2258_vm2, %v2268_v29, %v3579_v33  ;;  %v2283_v31 = vsel %vm2258_vm2, %v2268_v29, 0.0 }
0x15f4   :  { %2284 = vst.msk [vmem:[#allocation2] sm:$0x3] %vm192_vm1, %v2270_v30  ;;  %v2286_v19 = vpack.c.bf16 %v2283_v31, %v2283_v31 }
0x15f6   :  { %2556 = vst.msk [vmem:[%s3641_s6 + $0x7] sm:$0x1] %vm339_vm6, %v2286_v19  ;;  %v2280_v32 = vpop.permute.xlu1 %2279  ;;  %v2405_v15 = vpop.permute.xlu0 %2404 }
0x15f7   :  { %v2282_v16 = vsel %vm2258_vm2, %v2280_v32, %v3593_v50  ;;  %v2407_v14 = vsel %vm2395_vm13, %v2405_v15, %v3585_v34  ;;  %v2420_v7 = vsel %vm2395_vm13, %v2405_v15, 0.0 }
0x15f8   :  { %2285 = vst.msk [vmem:[#allocation3] sm:$0x3] %vm192_vm1, %v2282_v16  ;;  %2421 = vst.msk [vmem:[#allocation4] sm:$0x3] %vm192_vm1, %v2407_v14  ;;  %v2423_v33 = vpack.c.bf16 %v2420_v7, %v2420_v7 }
0x15fa   :  { %2424 = vst.msk [vmem:[%s3642_s7] sm:$0x1] %vm339_vm6, %v2423_v33  ;;  %v2417_v17 = vpop.permute.xlu0 %2416 }
0x15fb   :  { %v2419_v5 = vsel %vm2395_vm13, %v2417_v17, %v3598_v42 }
0x15fc   :  { %2422 = vst.msk [vmem:[#allocation5] sm:$0x3] %vm192_vm1, %v2419_v5 }

</bundles_post_ra>
